<compile_context>
chip_gen: v5e
topology: v5e:2x2
jax: 0.10.0
libtpu: 0.0.40
codegen_flags: <defaults>
</compile_context>

<pallas_src>
import numpy as np
import jax
import jax.numpy as jnp
from jax.experimental import pallas as pl
from jax.experimental.pallas import tpu as pltpu


# ----------------------------------------------------------------------------
# helpers: padding to (8, 128) quanta, per-gate column padding + reorder
# ----------------------------------------------------------------------------
def _round_up(n, m):
    return ((n + m - 1) // m) * m


def _pad2(x, rows, cols):
    return jnp.zeros((rows, cols), x.dtype).at[:x.shape[0], :x.shape[1]].set(x)


def _pad_gate_cols(w_t, H, H_pad):
    """(D, 4H) in PyTorch gate order (i,f,g,o) -> (D, 4*H_pad) in kernel order
    (i,f,o,g), per-gate zero padded.  (i,f,o) contiguous -> single sigmoid,
    g last -> single tanh (one EUP issue each in cell())."""
    D = w_t.shape[0]
    w4 = w_t.reshape(D, 4, H)[:, (0, 1, 3, 2), :]
    out = jnp.zeros((D, 4, H_pad), w_t.dtype).at[:, :, :H].set(w4)
    return out.reshape(D, 4 * H_pad)


# ----------------------------------------------------------------------------
# Pallas kernel: one grid step processes one chunk of T_chunk timesteps.
# Recurrent state persists in VMEM scratch across grid steps.
# ----------------------------------------------------------------------------
def _make_decoder_kernel(num_layers, T_chunk, B_pad, H_pad):
    L = num_layers
    HP = H_pad
    G = 4 * HP

    def kernel(lens_ref, ctx_ref, x_ref, *refs):
        # refs = [w0_ctx, w0_in, w0_hh, b0,
        #         (wcat_l, b_l) for l in 1..L-1, w_out,
        #         out_ref, h0_scr, c_scr, (xin_scr), ctxb_scr, xg_scr]
        n_w = 4 + 2 * (L - 1) + 1
        w = refs[:n_w]
        out_ref = refs[n_w]
        scr = refs[n_w + 1:]
        if L > 1:
            h0_scr, c_scr, xin_scr, ctxb_scr, xg_scr = scr
        else:
            h0_scr, c_scr, ctxb_scr, xg_scr = scr
            xin_scr = None

        w0c_ref, w0i_ref, whh0_ref, b0_ref = w[0], w[1], w[2], w[3]
        wcat_refs = [w[4 + 2 * (l - 1)] for l in range(1, L)]
        bl_refs = [w[5 + 2 * (l - 1)] for l in range(1, L)]
        wout_ref = w[n_w - 1]

        chunk = pl.program_id(0)

        # -- once, before the first chunk: zero recurrent state and fold the
        #    time-invariant context gates + layer-0 bias into one small term --
        @pl.when(chunk == 0)
        def _():
            h0_scr[...] = jnp.zeros_like(h0_scr)
            c_scr[...] = jnp.zeros_like(c_scr)
            if L > 1:
                xin_scr[...] = jnp.zeros_like(xin_scr)
            ctxb_scr[...] = (
                jnp.dot(ctx_ref[...], w0c_ref[...],
                        preferred_element_type=jnp.float32) + b0_ref[...])

        # -- hoisted off the recurrence: this chunk's layer-0 input gates,
        #    one lane-dense bf16 MXU pass ------------------------------------
        xg = jnp.dot(x_ref[...], w0i_ref[...],
                     preferred_element_type=jnp.float32)       # (Tc*B, G)
        xg_scr[...] = xg.reshape(T_chunk, B_pad, G)

        lens = lens_ref[...]                                   # (B_pad, 1) i32

        def cell(gates, c):
            # gate order (i,f,o,g): one sigmoid over 3 contiguous gates,
            # one tanh over the last -> 2 EUP issues per layer per step.
            sig = jax.nn.sigmoid(gates[:, :3 * HP])
            i_g = sig[:, 0 * HP:1 * HP]
            f_g = sig[:, 1 * HP:2 * HP]
            o_g = sig[:, 2 * HP:3 * HP]
            g_g = jnp.tanh(gates[:, 3 * HP:])
            c_new = f_g * c + i_g * g_g
            h_new = o_g * jnp.tanh(c_new)
            return h_new, c_new

        def step(t, carry):
            del carry
            t_glob = chunk * T_chunk + t
            # layer 0: only h @ W_hh (bf16 MXU, f32 accum) on the critical path
            gates0 = (xg_scr[t] + ctxb_scr[...] +
                      jnp.dot(h0_scr[...], whh0_ref[...],
                              preferred_element_type=jnp.float32))
            h0, c0 = cell(gates0, c_scr[0])
            c_scr[0] = c0
            h_bf = h0.astype(jnp.bfloat16)     # bf16 only on the MXU operand
            h0_scr[...] = h_bf
            h_last = h_bf
            if L > 1:
                xin_scr[0, :, 0:HP] = h_bf     # feeds layer 1, no concat copy
            # layers >= 1: fused [W_ih; W_hh] dot against [prev_h | own_h]
            for li in range(1, L):
                gates = (jnp.dot(xin_scr[li - 1], wcat_refs[li - 1][...],
                                 preferred_element_type=jnp.float32)
                         + bl_refs[li - 1][...])
                h_l, c_l = cell(gates, c_scr[li])
                c_scr[li] = c_l
                h_bf = h_l.astype(jnp.bfloat16)
                xin_scr[li - 1, :, HP:2 * HP] = h_bf   # own state for next t
                if li + 1 < L:
                    xin_scr[li, :, 0:HP] = h_bf        # feeds next layer
                h_last = h_bf
            # fused bias-free Linear head + pack/pad masking (lane-dense vst)
            y = jnp.dot(h_last, wout_ref[...],
                        preferred_element_type=jnp.float32)    # (B, O_pad)
            mask = (lens > t_glob).astype(jnp.float32)          # (B, 1)
            out_ref[t] = (y * mask).astype(out_ref.dtype)
            return None

        # Bounded unroll: keeps vreg live ranges short at production T_chunk.
        jax.lax.fori_loop(0, T_chunk, step, None, unroll=min(T_chunk, 8))

    return kernel


# ----------------------------------------------------------------------------
# Wrapper: pack weights into aligned bf16 kernel layout, call pallas_call.
# ----------------------------------------------------------------------------
def rnn_decoder_forward(context_vector, padded_input, lengths, params,
                        *, t_chunk=None):
    B, T, I = padded_input.shape
    C = context_vector.shape[1]
    H = params["hidden"]
    L = params["num_layers"]
    O = params["out_size"]

    B_pad = _round_up(B, 8)
    I_pad = _round_up(I, 128)
    C_pad = _round_up(C, 128)
    H_pad = _round_up(H, 128)
    O_pad = _round_up(O, 128)
    G = 4 * H_pad

    if t_chunk is None:
        t_chunk = min(T, 64)
    T_pad = _round_up(T, t_chunk)
    n_chunks = T_pad // t_chunk

    wdt = jnp.bfloat16   # MXU-native operand dtype; f32 accumulation in-kernel

    # ---- weights -> MXU/vreg-aligned bf16 kernel layout ---------------------
    w_ih0_t = params["w_ih"][0].T                     # (C+I, 4H), ctx cols first
    w0c = _pad2(_pad_gate_cols(w_ih0_t[:C], H, H_pad), C_pad, G).astype(wdt)
    w0i = _pad2(_pad_gate_cols(w_ih0_t[C:], H, H_pad), I_pad, G).astype(wdt)
    whh0 = _pad2(_pad_gate_cols(params["w_hh"][0].T, H, H_pad), H_pad, G).astype(wdt)
    b0 = _pad_gate_cols(params["b"][0].reshape(1, 4 * H), H, H_pad)   # (1, G) f32
    weight_args = [w0c, w0i, whh0, b0]
    for l in range(1, L):
        wih = _pad2(_pad_gate_cols(params["w_ih"][l].T, H, H_pad), H_pad, G)
        whh = _pad2(_pad_gate_cols(params["w_hh"][l].T, H, H_pad), H_pad, G)
        wcat = jnp.concatenate([wih, whh], axis=0).astype(wdt)        # (2HP, G)
        bl = _pad_gate_cols(params["b"][l].reshape(1, 4 * H), H, H_pad)
        weight_args += [wcat, bl]
    wout = _pad2(params["w_out"].T, H_pad, O_pad).astype(wdt)         # (HP, O_pad)
    weight_args.append(wout)

    # ---- inputs: time-major, flattened (T*B, I), bf16; context NOT broadcast
    x_tm = jnp.zeros((T_pad, B_pad, I_pad), jnp.float32)
    x_tm = x_tm.at[:T, :B, :I].set(
        jnp.transpose(padded_input, (1, 0, 2)).astype(jnp.float32))
    x_flat = x_tm.reshape(T_pad * B_pad, I_pad).astype(wdt)
    ctx = jnp.zeros((B_pad, C_pad), wdt).at[:B, :C].set(
        context_vector.astype(wdt))
    lens = jnp.zeros((B_pad, 1), jnp.int32).at[:B, 0].set(
        lengths.astype(jnp.int32))

    kernel = _make_decoder_kernel(L, t_chunk, B_pad, H_pad)

    const2 = lambda i: (0, 0)
    in_specs = [
        pl.BlockSpec((B_pad, 1), const2),                        # lengths
        pl.BlockSpec((B_pad, C_pad), const2),                    # context
        pl.BlockSpec((t_chunk * B_pad, I_pad), lambda i: (i, 0)),  # x chunk
        pl.BlockSpec((C_pad, G), const2),                        # W_ih0 (ctx)
        pl.BlockSpec((I_pad, G), const2),                        # W_ih0 (input)
        pl.BlockSpec((H_pad, G), const2),                        # W_hh0
        pl.BlockSpec((1, G), const2),                            # bias0
    ]
    for _ in range(1, L):
        in_specs += [pl.BlockSpec((2 * H_pad, G), const2),       # [W_ih; W_hh]
                     pl.BlockSpec((1, G), const2)]               # bias_l
    in_specs += [pl.BlockSpec((H_pad, O_pad), const2)]           # Linear head

    scratch_shapes = [
        pltpu.VMEM((B_pad, H_pad), jnp.bfloat16),      # layer-0 h (MXU operand)
        pltpu.VMEM((L, B_pad, H_pad), jnp.float32),    # cell states (f32)
    ]
    if L > 1:
        # [prev_layer_h | own_h] per layer >= 1: removes per-step concatenate
        scratch_shapes += [pltpu.VMEM((L - 1, B_pad, 2 * H_pad), jnp.bfloat16)]
    scratch_shapes += [
        pltpu.VMEM((B_pad, G), jnp.float32),           # ctx gates + bias0
        pltpu.VMEM((t_chunk, B_pad, G), jnp.float32),  # per-chunk input gates
    ]

    out_tm = pl.pallas_call(
        kernel,
        grid=(n_chunks,),
        in_specs=in_specs,
        out_specs=pl.BlockSpec((t_chunk, B_pad, O_pad), lambda i: (i, 0, 0)),
        out_shape=jax.ShapeDtypeStruct((T_pad, B_pad, O_pad), jnp.float32),
        scratch_shapes=scratch_shapes,
        compiler_params=pltpu.CompilerParams(
            dimension_semantics=("arbitrary",)),       # recurrence is sequential
    )(lens, ctx, x_flat, *weight_args)

    return jnp.transpose(out_tm, (1, 0, 2))[:B, :T, :O]


# ----------------------------------------------------------------------------
# Pure-JAX reference (PyTorch semantics, f32) for correctness checking.
# ----------------------------------------------------------------------------
def rnn_decoder_reference(context_vector, padded_input, lengths, params):
    B, T, I = padded_input.shape
    C = context_vector.shape[1]
    H = params["hidden"]
    L = params["num_layers"]

    ctx = jnp.broadcast_to(context_vector[:, None, :], (B, T, C))
    x = jnp.concatenate([ctx, padded_input], axis=-1)
    x_tm = jnp.transpose(x, (1, 0, 2)).astype(jnp.float32)

    def step(carry, x_t):
        hs, cs = carry
        inp = x_t
        new_h, new_c = [], []
        for l in range(L):
            gates = (inp @ params["w_ih"][l].T + hs[l] @ params["w_hh"][l].T
                     + params["b"][l])
            i_g = jax.nn.sigmoid(gates[:, :H])
            f_g = jax.nn.sigmoid(gates[:, H:2 * H])
            g_g = jnp.tanh(gates[:, 2 * H:3 * H])
            o_g = jax.nn.sigmoid(gates[:, 3 * H:])
            c = f_g * cs[l] + i_g * g_g
            h = o_g * jnp.tanh(c)
            new_h.append(h)
            new_c.append(c)
            inp = h
        return (new_h, new_c), inp

    init = ([jnp.zeros((B, H), jnp.float32)] * L,
            [jnp.zeros((B, H), jnp.float32)] * L)
    _, hs = jax.lax.scan(step, init, x_tm)              # (T, B, H)
    y = hs @ params["w_out"].T                          # (T, B, O)
    mask = (jnp.arange(T)[:, None, None] < lengths[None, :, None]).astype(y.dtype)
    return jnp.transpose(y * mask, (1, 0, 2))


# ----------------------------------------------------------------------------
# Deterministic PyTorch-style parameter init (uniform(-1/sqrt(H), 1/sqrt(H))).
# ----------------------------------------------------------------------------
def init_params(key, input_vector_size, context_vector_size, hidden, num_layers,
                output_size):
    D0 = input_vector_size + context_vector_size
    bound = 1.0 / float(np.sqrt(hidden))
    p = {"hidden": hidden, "num_layers": num_layers, "out_size": output_size,
         "w_ih": [], "w_hh": [], "b": []}
    for l in range(num_layers):
        d_l = D0 if l == 0 else hidden
        key, k1, k2, k3, k4 = jax.random.split(key, 5)
        w_ih = jax.random.uniform(k1, (4 * hidden, d_l), jnp.float32, -bound, bound)
        w_hh = jax.random.uniform(k2, (4 * hidden, hidden), jnp.float32, -bound, bound)
        b_ih = jax.random.uniform(k3, (4 * hidden,), jnp.float32, -bound, bound)
        b_hh = jax.random.uniform(k4, (4 * hidden,), jnp.float32, -bound, bound)
        p["w_ih"].append(w_ih)
        p["w_hh"].append(w_hh)
        p["b"].append(b_ih + b_hh)
    key, k5 = jax.random.split(key)
    p["w_out"] = jax.random.uniform(k5, (output_size, hidden), jnp.float32,
                                    -bound, bound)
    return p


if __name__ == "__main__":
    input_vector_size = 8
    context_vector_size = 8
    hidden_state_size = 32
    num_layers = 2
    output_size = 16
    B, T = 2, 8

    key = jax.random.PRNGKey(0)
    kp, kc, kx = jax.random.split(key, 3)

    params = init_params(kp, input_vector_size, context_vector_size,
                         hidden_state_size, num_layers, output_size)

    context_vector = jax.random.normal(kc, (B, context_vector_size), jnp.float32)
    padded_input = jax.random.normal(kx, (B, T, input_vector_size), jnp.float32)
    lengths = jnp.array([T, 5], dtype=jnp.int32)

    # t_chunk=4 -> grid=(2,), exercising the cross-chunk recurrent-state carry.
    out = rnn_decoder_forward(context_vector, padded_input, lengths, params,
                              t_chunk=4)
    out = jax.block_until_ready(out)

    ref = rnn_decoder_reference(context_vector, padded_input, lengths, params)
    # bf16 MXU operands (f32 accumulation) need a slightly looser tolerance
    # than the pure-f32 variant.
    np.testing.assert_allclose(np.asarray(out), np.asarray(ref),
                               rtol=2e-2, atol=2e-2)

    assert out.shape == (B, T, output_size)
    print("KERNEL_OK")
</pallas_src>

<mosaic_0001>
module attributes {stable_mosaic.version = 11 : i64} {
  func.func @kernel(%arg0: i32, %arg1: memref<8x1xi32, #tpu.memory_space<vmem>>, %arg2: memref<8x128xbf16, #tpu.memory_space<vmem>>, %arg3: memref<32x128xbf16, #tpu.memory_space<vmem>>, %arg4: memref<128x512xbf16, #tpu.memory_space<vmem>>, %arg5: memref<128x512xbf16, #tpu.memory_space<vmem>>, %arg6: memref<128x512xbf16, #tpu.memory_space<vmem>>, %arg7: memref<1x512xf32, #tpu.memory_space<vmem>>, %arg8: memref<256x512xbf16, #tpu.memory_space<vmem>>, %arg9: memref<1x512xf32, #tpu.memory_space<vmem>>, %arg10: memref<128x128xbf16, #tpu.memory_space<vmem>>, %arg11: memref<4x8x128xf32, #tpu.memory_space<vmem>>, %arg12: memref<8x128xbf16, #tpu.memory_space<vmem>>, %arg13: memref<2x8x128xf32, #tpu.memory_space<vmem>>, %arg14: memref<1x8x256xbf16, #tpu.memory_space<vmem>>, %arg15: memref<8x512xf32, #tpu.memory_space<vmem>>, %arg16: memref<4x8x512xf32, #tpu.memory_space<vmem>>) attributes {dimension_semantics = [#tpu.dimension_semantics<arbitrary>], iteration_bounds = array<i64: 2>, scalar_prefetch = 0 : i64, scratch_operands = 5 : i64, tpu.core_type = #tpu.core_type<tc>, window_params = [{pipeline_mode = #tpu.pipeline_mode<synchronous>, transform_indices = @transform_0, window_bounds = array<i64: 8, 1>}, {pipeline_mode = #tpu.pipeline_mode<synchronous>, transform_indices = @transform_1, window_bounds = array<i64: 8, 128>}, {transform_indices = @transform_2, window_bounds = array<i64: 32, 128>}, {pipeline_mode = #tpu.pipeline_mode<synchronous>, transform_indices = @transform_3, window_bounds = array<i64: 128, 512>}, {pipeline_mode = #tpu.pipeline_mode<synchronous>, transform_indices = @transform_4, window_bounds = array<i64: 128, 512>}, {pipeline_mode = #tpu.pipeline_mode<synchronous>, transform_indices = @transform_5, window_bounds = array<i64: 128, 512>}, {pipeline_mode = #tpu.pipeline_mode<synchronous>, transform_indices = @transform_6, window_bounds = array<i64: 1, 512>}, {pipeline_mode = #tpu.pipeline_mode<synchronous>, transform_indices = @transform_7, window_bounds = array<i64: 256, 512>}, {pipeline_mode = #tpu.pipeline_mode<synchronous>, transform_indices = @transform_8, window_bounds = array<i64: 1, 512>}, {pipeline_mode = #tpu.pipeline_mode<synchronous>, transform_indices = @transform_9, window_bounds = array<i64: 128, 128>}, {transform_indices = @transform_10, window_bounds = array<i64: 4, 8, 128>}]} {
    %c0_i32 = arith.constant 0 : i32
    %0 = arith.cmpi eq, %arg0, %c0_i32 : i32
    %1 = arith.extui %0 : i1 to i32
    %c0_i32_0 = arith.constant 0 : i32
    %2 = arith.cmpi ne, %1, %c0_i32_0 : i32
    scf.if %2 {
      %cst_188 = arith.constant 0.000000e+00 : bf16
      %333 = vector.broadcast %cst_188 : bf16 to vector<8x128xbf16>
      %c0_189 = arith.constant 0 : index
      %c0_190 = arith.constant 0 : index
      %334 = vector.load %arg12[%c0_189, %c0_190] : memref<8x128xbf16, #tpu.memory_space<vmem>>, vector<8x128xbf16>
      tpu.vector_store %arg12[%c0_189, %c0_190], %333 {strides = array<i32>} : memref<8x128xbf16, #tpu.memory_space<vmem>>, vector<8x128xbf16>,
      %cst_191 = arith.constant 0.000000e+00 : f32
      %335 = vector.broadcast %cst_191 : f32 to vector<2x8x128xf32>
      %c0_192 = arith.constant 0 : index
      %c0_193 = arith.constant 0 : index
      %c0_194 = arith.constant 0 : index
      %336 = vector.load %arg13[%c0_192, %c0_193, %c0_194] : memref<2x8x128xf32, #tpu.memory_space<vmem>>, vector<2x8x128xf32>
      tpu.vector_store %arg13[%c0_192, %c0_193, %c0_194], %335 {strides = array<i32>} : memref<2x8x128xf32, #tpu.memory_space<vmem>>, vector<2x8x128xf32>,
      %cst_195 = arith.constant 0.000000e+00 : bf16
      %337 = vector.broadcast %cst_195 : bf16 to vector<1x8x256xbf16>
      %c0_196 = arith.constant 0 : index
      %c0_197 = arith.constant 0 : index
      %c0_198 = arith.constant 0 : index
      %338 = vector.load %arg14[%c0_196, %c0_197, %c0_198] : memref<1x8x256xbf16, #tpu.memory_space<vmem>>, vector<1x8x256xbf16>
      tpu.vector_store %arg14[%c0_196, %c0_197, %c0_198], %337 {strides = array<i32>} : memref<1x8x256xbf16, #tpu.memory_space<vmem>>, vector<1x8x256xbf16>,
      %c0_199 = arith.constant 0 : index
      %c0_200 = arith.constant 0 : index
      %339 = vector.load %arg2[%c0_199, %c0_200] : memref<8x128xbf16, #tpu.memory_space<vmem>>, vector<8x128xbf16>
      %c0_201 = arith.constant 0 : index
      %c0_202 = arith.constant 0 : index
      %340 = vector.load %arg4[%c0_201, %c0_202] : memref<128x512xbf16, #tpu.memory_space<vmem>>, vector<128x512xbf16>
      %cst_203 = arith.constant dense<0.000000e+00> : vector<8x512xf32>
      %341 = tpu.matmul %339, %340, %cst_203 {dimension_numbers = #tpu.dot_dimension_numbers<[1], [0], [0], [1], [0, 0, 1, 1], [], []>} : vector<8x128xbf16>, vector<128x512xbf16>, vector<8x512xf32> -> vector<8x512xf32>
      %c0_204 = arith.constant 0 : index
      %c0_205 = arith.constant 0 : index
      %342 = vector.load %arg7[%c0_204, %c0_205] : memref<1x512xf32, #tpu.memory_space<vmem>>, vector<1x512xf32>
      %343 = vector.broadcast %342 : vector<1x512xf32> to vector<8x512xf32>
      %344 = arith.addf %341, %343 : vector<8x512xf32>
      %c0_206 = arith.constant 0 : index
      %c0_207 = arith.constant 0 : index
      %345 = vector.load %arg15[%c0_206, %c0_207] : memref<8x512xf32, #tpu.memory_space<vmem>>, vector<8x512xf32>
      tpu.vector_store %arg15[%c0_206, %c0_207], %344 {strides = array<i32>} : memref<8x512xf32, #tpu.memory_space<vmem>>, vector<8x512xf32>,
    } else {
    }
    %c0 = arith.constant 0 : index
    %c0_1 = arith.constant 0 : index
    %3 = vector.load %arg3[%c0, %c0_1] : memref<32x128xbf16, #tpu.memory_space<vmem>>, vector<32x128xbf16>
    %c0_2 = arith.constant 0 : index
    %c0_3 = arith.constant 0 : index
    %4 = vector.load %arg5[%c0_2, %c0_3] : memref<128x512xbf16, #tpu.memory_space<vmem>>, vector<128x512xbf16>
    %cst = arith.constant dense<0.000000e+00> : vector<32x512xf32>
    %5 = tpu.matmul %3, %4, %cst {dimension_numbers = #tpu.dot_dimension_numbers<[1], [0], [0], [1], [0, 0, 1, 1], [], []>} : vector<32x128xbf16>, vector<128x512xbf16>, vector<32x512xf32> -> vector<32x512xf32>
    %6 = vector.shape_cast %5 : vector<32x512xf32> to vector<4x8x512xf32>
    %c0_4 = arith.constant 0 : index
    %c0_5 = arith.constant 0 : index
    %c0_6 = arith.constant 0 : index
    %7 = vector.load %arg16[%c0_4, %c0_5, %c0_6] : memref<4x8x512xf32, #tpu.memory_space<vmem>>, vector<4x8x512xf32>
    tpu.vector_store %arg16[%c0_4, %c0_5, %c0_6], %6 {strides = array<i32>} : memref<4x8x512xf32, #tpu.memory_space<vmem>>, vector<4x8x512xf32>,
    %c0_7 = arith.constant 0 : index
    %c0_8 = arith.constant 0 : index
    %8 = vector.load %arg1[%c0_7, %c0_8] : memref<8x1xi32, #tpu.memory_space<vmem>>, vector<8x1xi32>
    %c0_i32_9 = arith.constant 0 : i32
    %c4_i32 = arith.constant 4 : i32
    %9 = arith.muli %arg0, %c4_i32 : i32
    %10 = arith.addi %9, %c0_i32_9 : i32
    %11 = arith.index_cast %c0_i32_9 : i32 to index
    %c0_10 = arith.constant 0 : index
    %c0_11 = arith.constant 0 : index
    %12 = vector.load %arg16[%11, %c0_10, %c0_11] : memref<4x8x512xf32, #tpu.memory_space<vmem>>, vector<1x8x512xf32>
    %13 = vector.shape_cast %12 : vector<1x8x512xf32> to vector<8x512xf32>
    %c0_12 = arith.constant 0 : index
    %c0_13 = arith.constant 0 : index
    %14 = vector.load %arg15[%c0_12, %c0_13] : memref<8x512xf32, #tpu.memory_space<vmem>>, vector<8x512xf32>
    %15 = arith.addf %13, %14 : vector<8x512xf32>
    %c0_14 = arith.constant 0 : index
    %c0_15 = arith.constant 0 : index
    %16 = vector.load %arg12[%c0_14, %c0_15] : memref<8x128xbf16, #tpu.memory_space<vmem>>, vector<8x128xbf16>
    %c0_16 = arith.constant 0 : index
    %c0_17 = arith.constant 0 : index
    %17 = vector.load %arg6[%c0_16, %c0_17] : memref<128x512xbf16, #tpu.memory_space<vmem>>, vector<128x512xbf16>
    %cst_18 = arith.constant dense<0.000000e+00> : vector<8x512xf32>
    %18 = tpu.matmul %16, %17, %cst_18 {dimension_numbers = #tpu.dot_dimension_numbers<[1], [0], [0], [1], [0, 0, 1, 1], [], []>} : vector<8x128xbf16>, vector<128x512xbf16>, vector<8x512xf32> -> vector<8x512xf32>
    %19 = arith.addf %15, %18 : vector<8x512xf32>
    %c0_19 = arith.constant 0 : index
    %c0_20 = arith.constant 0 : index
    %c0_21 = arith.constant 0 : index
    %20 = vector.load %arg13[%c0_19, %c0_20, %c0_21] : memref<2x8x128xf32, #tpu.memory_space<vmem>>, vector<1x8x128xf32>
    %21 = vector.shape_cast %20 : vector<1x8x128xf32> to vector<8x128xf32>
    %22 = vector.extract_strided_slice %19 {offsets = [0, 0], sizes = [8, 384], strides = [1, 1]} : vector<8x512xf32> to vector<8x384xf32>
    %23 = arith.negf %22 : vector<8x384xf32>
    %24 = math.exp %23 : vector<8x384xf32>
    %cst_22 = arith.constant 1.000000e+00 : f32
    %25 = vector.broadcast %cst_22 : f32 to vector<8x384xf32>
    %26 = arith.addf %25, %24 : vector<8x384xf32>
    %27 = arith.divf %25, %26 : vector<8x384xf32>
    %28 = vector.extract_strided_slice %27 {offsets = [0, 0], sizes = [8, 128], strides = [1, 1]} : vector<8x384xf32> to vector<8x128xf32>
    %29 = vector.extract_strided_slice %27 {offsets = [0, 128], sizes = [8, 128], strides = [1, 1]} : vector<8x384xf32> to vector<8x128xf32>
    %30 = vector.extract_strided_slice %27 {offsets = [0, 256], sizes = [8, 128], strides = [1, 1]} : vector<8x384xf32> to vector<8x128xf32>
    %31 = vector.extract_strided_slice %19 {offsets = [0, 384], sizes = [8, 128], strides = [1, 1]} : vector<8x512xf32> to vector<8x128xf32>
    %32 = math.tanh %31 : vector<8x128xf32>
    %33 = arith.mulf %29, %21 : vector<8x128xf32>
    %34 = arith.mulf %28, %32 : vector<8x128xf32>
    %35 = arith.addf %33, %34 : vector<8x128xf32>
    %36 = math.tanh %35 : vector<8x128xf32>
    %37 = arith.mulf %30, %36 : vector<8x128xf32>
    %c0_23 = arith.constant 0 : index
    %c0_24 = arith.constant 0 : index
    %c0_25 = arith.constant 0 : index
    %38 = vector.load %arg13[%c0_23, %c0_24, %c0_25] : memref<2x8x128xf32, #tpu.memory_space<vmem>>, vector<1x8x128xf32>
    %39 = vector.shape_cast %38 : vector<1x8x128xf32> to vector<8x128xf32>
    %40 = vector.shape_cast %35 : vector<8x128xf32> to vector<1x8x128xf32>
    tpu.vector_store %arg13[%c0_23, %c0_24, %c0_25], %40 {strides = array<i32>} : memref<2x8x128xf32, #tpu.memory_space<vmem>>, vector<1x8x128xf32>,
    %41 = arith.truncf %37 : vector<8x128xf32> to vector<8x128xbf16>
    %c0_26 = arith.constant 0 : index
    %c0_27 = arith.constant 0 : index
    %42 = vector.load %arg12[%c0_26, %c0_27] : memref<8x128xbf16, #tpu.memory_space<vmem>>, vector<8x128xbf16>
    tpu.vector_store %arg12[%c0_26, %c0_27], %41 {strides = array<i32>} : memref<8x128xbf16, #tpu.memory_space<vmem>>, vector<8x128xbf16>,
    %c0_28 = arith.constant 0 : index
    %c0_29 = arith.constant 0 : index
    %c0_30 = arith.constant 0 : index
    %43 = vector.load %arg14[%c0_28, %c0_29, %c0_30] : memref<1x8x256xbf16, #tpu.memory_space<vmem>>, vector<1x8x128xbf16>
    %44 = vector.shape_cast %43 : vector<1x8x128xbf16> to vector<8x128xbf16>
    %45 = vector.shape_cast %41 : vector<8x128xbf16> to vector<1x8x128xbf16>
    tpu.vector_store %arg14[%c0_28, %c0_29, %c0_30], %45 {strides = array<i32>} : memref<1x8x256xbf16, #tpu.memory_space<vmem>>, vector<1x8x128xbf16>,
    %c0_31 = arith.constant 0 : index
    %c0_32 = arith.constant 0 : index
    %c0_33 = arith.constant 0 : index
    %46 = vector.load %arg14[%c0_31, %c0_32, %c0_33] : memref<1x8x256xbf16, #tpu.memory_space<vmem>>, vector<1x8x256xbf16>
    %47 = vector.shape_cast %46 : vector<1x8x256xbf16> to vector<8x256xbf16>
    %c0_34 = arith.constant 0 : index
    %c0_35 = arith.constant 0 : index
    %48 = vector.load %arg8[%c0_34, %c0_35] : memref<256x512xbf16, #tpu.memory_space<vmem>>, vector<256x512xbf16>
    %cst_36 = arith.constant dense<0.000000e+00> : vector<8x512xf32>
    %49 = tpu.matmul %47, %48, %cst_36 {dimension_numbers = #tpu.dot_dimension_numbers<[1], [0], [0], [1], [0, 0, 1, 1], [], []>} : vector<8x256xbf16>, vector<256x512xbf16>, vector<8x512xf32> -> vector<8x512xf32>
    %c0_37 = arith.constant 0 : index
    %c0_38 = arith.constant 0 : index
    %50 = vector.load %arg9[%c0_37, %c0_38] : memref<1x512xf32, #tpu.memory_space<vmem>>, vector<1x512xf32>
    %51 = vector.broadcast %50 : vector<1x512xf32> to vector<8x512xf32>
    %52 = arith.addf %49, %51 : vector<8x512xf32>
    %c1 = arith.constant 1 : index
    %c0_39 = arith.constant 0 : index
    %c0_40 = arith.constant 0 : index
    %53 = vector.load %arg13[%c1, %c0_39, %c0_40] : memref<2x8x128xf32, #tpu.memory_space<vmem>>, vector<1x8x128xf32>
    %54 = vector.shape_cast %53 : vector<1x8x128xf32> to vector<8x128xf32>
    %55 = vector.extract_strided_slice %52 {offsets = [0, 0], sizes = [8, 384], strides = [1, 1]} : vector<8x512xf32> to vector<8x384xf32>
    %56 = arith.negf %55 : vector<8x384xf32>
    %57 = math.exp %56 : vector<8x384xf32>
    %cst_41 = arith.constant 1.000000e+00 : f32
    %58 = vector.broadcast %cst_41 : f32 to vector<8x384xf32>
    %59 = arith.addf %58, %57 : vector<8x384xf32>
    %60 = arith.divf %58, %59 : vector<8x384xf32>
    %61 = vector.extract_strided_slice %60 {offsets = [0, 0], sizes = [8, 128], strides = [1, 1]} : vector<8x384xf32> to vector<8x128xf32>
    %62 = vector.extract_strided_slice %60 {offsets = [0, 128], sizes = [8, 128], strides = [1, 1]} : vector<8x384xf32> to vector<8x128xf32>
    %63 = vector.extract_strided_slice %60 {offsets = [0, 256], sizes = [8, 128], strides = [1, 1]} : vector<8x384xf32> to vector<8x128xf32>
    %64 = vector.extract_strided_slice %52 {offsets = [0, 384], sizes = [8, 128], strides = [1, 1]} : vector<8x512xf32> to vector<8x128xf32>
    %65 = math.tanh %64 : vector<8x128xf32>
    %66 = arith.mulf %62, %54 : vector<8x128xf32>
    %67 = arith.mulf %61, %65 : vector<8x128xf32>
    %68 = arith.addf %66, %67 : vector<8x128xf32>
    %69 = math.tanh %68 : vector<8x128xf32>
    %70 = arith.mulf %63, %69 : vector<8x128xf32>
    %c1_42 = arith.constant 1 : index
    %c0_43 = arith.constant 0 : index
    %c0_44 = arith.constant 0 : index
    %71 = vector.load %arg13[%c1_42, %c0_43, %c0_44] : memref<2x8x128xf32, #tpu.memory_space<vmem>>, vector<1x8x128xf32>
    %72 = vector.shape_cast %71 : vector<1x8x128xf32> to vector<8x128xf32>
    %73 = vector.shape_cast %68 : vector<8x128xf32> to vector<1x8x128xf32>
    tpu.vector_store %arg13[%c1_42, %c0_43, %c0_44], %73 {strides = array<i32>} : memref<2x8x128xf32, #tpu.memory_space<vmem>>, vector<1x8x128xf32>,
    %74 = arith.truncf %70 : vector<8x128xf32> to vector<8x128xbf16>
    %c0_45 = arith.constant 0 : index
    %c0_46 = arith.constant 0 : index
    %c128 = arith.constant 128 : index
    %75 = vector.load %arg14[%c0_45, %c0_46, %c128] : memref<1x8x256xbf16, #tpu.memory_space<vmem>>, vector<1x8x128xbf16>
    %76 = vector.shape_cast %75 : vector<1x8x128xbf16> to vector<8x128xbf16>
    %77 = vector.shape_cast %74 : vector<8x128xbf16> to vector<1x8x128xbf16>
    tpu.vector_store %arg14[%c0_45, %c0_46, %c128], %77 {strides = array<i32>} : memref<1x8x256xbf16, #tpu.memory_space<vmem>>, vector<1x8x128xbf16>,
    %c0_47 = arith.constant 0 : index
    %c0_48 = arith.constant 0 : index
    %78 = vector.load %arg10[%c0_47, %c0_48] : memref<128x128xbf16, #tpu.memory_space<vmem>>, vector<128x128xbf16>
    %cst_49 = arith.constant dense<0.000000e+00> : vector<8x128xf32>
    %79 = tpu.matmul %74, %78, %cst_49 {dimension_numbers = #tpu.dot_dimension_numbers<[1], [0], [0], [1], [0, 0, 1, 1], [], []>} : vector<8x128xbf16>, vector<128x128xbf16>, vector<8x128xf32> -> vector<8x128xf32>
    %80 = vector.broadcast %10 : i32 to vector<8x1xi32>
    %81 = arith.cmpi sgt, %8, %80 : vector<8x1xi32>
    %82 = arith.extui %81 : vector<8x1xi1> to vector<8x1xi32>
    %83 = arith.sitofp %82 : vector<8x1xi32> to vector<8x1xf32>
    %84 = vector.broadcast %83 : vector<8x1xf32> to vector<8x128xf32>
    %85 = arith.mulf %79, %84 : vector<8x128xf32>
    %86 = arith.index_cast %c0_i32_9 : i32 to index
    %c0_50 = arith.constant 0 : index
    %c0_51 = arith.constant 0 : index
    %87 = vector.load %arg11[%86, %c0_50, %c0_51] : memref<4x8x128xf32, #tpu.memory_space<vmem>>, vector<1x8x128xf32>
    %88 = vector.shape_cast %87 : vector<1x8x128xf32> to vector<8x128xf32>
    %89 = vector.shape_cast %85 : vector<8x128xf32> to vector<1x8x128xf32>
    tpu.vector_store %arg11[%86, %c0_50, %c0_51], %89 {strides = array<i32>} : memref<4x8x128xf32, #tpu.memory_space<vmem>>, vector<1x8x128xf32>,
    %c1_i32 = arith.constant 1 : i32
    %c4_i32_52 = arith.constant 4 : i32
    %90 = arith.muli %arg0, %c4_i32_52 : i32
    %91 = arith.addi %90, %c1_i32 : i32
    %92 = arith.index_cast %c1_i32 : i32 to index
    %c0_53 = arith.constant 0 : index
    %c0_54 = arith.constant 0 : index
    %93 = vector.load %arg16[%92, %c0_53, %c0_54] : memref<4x8x512xf32, #tpu.memory_space<vmem>>, vector<1x8x512xf32>
    %94 = vector.shape_cast %93 : vector<1x8x512xf32> to vector<8x512xf32>
    %c0_55 = arith.constant 0 : index
    %c0_56 = arith.constant 0 : index
    %95 = vector.load %arg15[%c0_55, %c0_56] : memref<8x512xf32, #tpu.memory_space<vmem>>, vector<8x512xf32>
    %96 = arith.addf %94, %95 : vector<8x512xf32>
    %c0_57 = arith.constant 0 : index
    %c0_58 = arith.constant 0 : index
    %97 = vector.load %arg12[%c0_57, %c0_58] : memref<8x128xbf16, #tpu.memory_space<vmem>>, vector<8x128xbf16>
    %c0_59 = arith.constant 0 : index
    %c0_60 = arith.constant 0 : index
    %98 = vector.load %arg6[%c0_59, %c0_60] : memref<128x512xbf16, #tpu.memory_space<vmem>>, vector<128x512xbf16>
    %cst_61 = arith.constant dense<0.000000e+00> : vector<8x512xf32>
    %99 = tpu.matmul %97, %98, %cst_61 {dimension_numbers = #tpu.dot_dimension_numbers<[1], [0], [0], [1], [0, 0, 1, 1], [], []>} : vector<8x128xbf16>, vector<128x512xbf16>, vector<8x512xf32> -> vector<8x512xf32>
    %100 = arith.addf %96, %99 : vector<8x512xf32>
    %c0_62 = arith.constant 0 : index
    %c0_63 = arith.constant 0 : index
    %c0_64 = arith.constant 0 : index
    %101 = vector.load %arg13[%c0_62, %c0_63, %c0_64] : memref<2x8x128xf32, #tpu.memory_space<vmem>>, vector<1x8x128xf32>
    %102 = vector.shape_cast %101 : vector<1x8x128xf32> to vector<8x128xf32>
    %103 = vector.extract_strided_slice %100 {offsets = [0, 0], sizes = [8, 384], strides = [1, 1]} : vector<8x512xf32> to vector<8x384xf32>
    %104 = arith.negf %103 : vector<8x384xf32>
    %105 = math.exp %104 : vector<8x384xf32>
    %cst_65 = arith.constant 1.000000e+00 : f32
    %106 = vector.broadcast %cst_65 : f32 to vector<8x384xf32>
    %107 = arith.addf %106, %105 : vector<8x384xf32>
    %108 = arith.divf %106, %107 : vector<8x384xf32>
    %109 = vector.extract_strided_slice %108 {offsets = [0, 0], sizes = [8, 128], strides = [1, 1]} : vector<8x384xf32> to vector<8x128xf32>
    %110 = vector.extract_strided_slice %108 {offsets = [0, 128], sizes = [8, 128], strides = [1, 1]} : vector<8x384xf32> to vector<8x128xf32>
    %111 = vector.extract_strided_slice %108 {offsets = [0, 256], sizes = [8, 128], strides = [1, 1]} : vector<8x384xf32> to vector<8x128xf32>
    %112 = vector.extract_strided_slice %100 {offsets = [0, 384], sizes = [8, 128], strides = [1, 1]} : vector<8x512xf32> to vector<8x128xf32>
    %113 = math.tanh %112 : vector<8x128xf32>
    %114 = arith.mulf %110, %102 : vector<8x128xf32>
    %115 = arith.mulf %109, %113 : vector<8x128xf32>
    %116 = arith.addf %114, %115 : vector<8x128xf32>
    %117 = math.tanh %116 : vector<8x128xf32>
    %118 = arith.mulf %111, %117 : vector<8x128xf32>
    %c0_66 = arith.constant 0 : index
    %c0_67 = arith.constant 0 : index
    %c0_68 = arith.constant 0 : index
    %119 = vector.load %arg13[%c0_66, %c0_67, %c0_68] : memref<2x8x128xf32, #tpu.memory_space<vmem>>, vector<1x8x128xf32>
    %120 = vector.shape_cast %119 : vector<1x8x128xf32> to vector<8x128xf32>
    %121 = vector.shape_cast %116 : vector<8x128xf32> to vector<1x8x128xf32>
    tpu.vector_store %arg13[%c0_66, %c0_67, %c0_68], %121 {strides = array<i32>} : memref<2x8x128xf32, #tpu.memory_space<vmem>>, vector<1x8x128xf32>,
    %122 = arith.truncf %118 : vector<8x128xf32> to vector<8x128xbf16>
    %c0_69 = arith.constant 0 : index
    %c0_70 = arith.constant 0 : index
    %123 = vector.load %arg12[%c0_69, %c0_70] : memref<8x128xbf16, #tpu.memory_space<vmem>>, vector<8x128xbf16>
    tpu.vector_store %arg12[%c0_69, %c0_70], %122 {strides = array<i32>} : memref<8x128xbf16, #tpu.memory_space<vmem>>, vector<8x128xbf16>,
    %c0_71 = arith.constant 0 : index
    %c0_72 = arith.constant 0 : index
    %c0_73 = arith.constant 0 : index
    %124 = vector.load %arg14[%c0_71, %c0_72, %c0_73] : memref<1x8x256xbf16, #tpu.memory_space<vmem>>, vector<1x8x128xbf16>
    %125 = vector.shape_cast %124 : vector<1x8x128xbf16> to vector<8x128xbf16>
    %126 = vector.shape_cast %122 : vector<8x128xbf16> to vector<1x8x128xbf16>
    tpu.vector_store %arg14[%c0_71, %c0_72, %c0_73], %126 {strides = array<i32>} : memref<1x8x256xbf16, #tpu.memory_space<vmem>>, vector<1x8x128xbf16>,
    %c0_74 = arith.constant 0 : index
    %c0_75 = arith.constant 0 : index
    %c0_76 = arith.constant 0 : index
    %127 = vector.load %arg14[%c0_74, %c0_75, %c0_76] : memref<1x8x256xbf16, #tpu.memory_space<vmem>>, vector<1x8x256xbf16>
    %128 = vector.shape_cast %127 : vector<1x8x256xbf16> to vector<8x256xbf16>
    %c0_77 = arith.constant 0 : index
    %c0_78 = arith.constant 0 : index
    %129 = vector.load %arg8[%c0_77, %c0_78] : memref<256x512xbf16, #tpu.memory_space<vmem>>, vector<256x512xbf16>
    %cst_79 = arith.constant dense<0.000000e+00> : vector<8x512xf32>
    %130 = tpu.matmul %128, %129, %cst_79 {dimension_numbers = #tpu.dot_dimension_numbers<[1], [0], [0], [1], [0, 0, 1, 1], [], []>} : vector<8x256xbf16>, vector<256x512xbf16>, vector<8x512xf32> -> vector<8x512xf32>
    %c0_80 = arith.constant 0 : index
    %c0_81 = arith.constant 0 : index
    %131 = vector.load %arg9[%c0_80, %c0_81] : memref<1x512xf32, #tpu.memory_space<vmem>>, vector<1x512xf32>
    %132 = vector.broadcast %131 : vector<1x512xf32> to vector<8x512xf32>
    %133 = arith.addf %130, %132 : vector<8x512xf32>
    %c1_82 = arith.constant 1 : index
    %c0_83 = arith.constant 0 : index
    %c0_84 = arith.constant 0 : index
    %134 = vector.load %arg13[%c1_82, %c0_83, %c0_84] : memref<2x8x128xf32, #tpu.memory_space<vmem>>, vector<1x8x128xf32>
    %135 = vector.shape_cast %134 : vector<1x8x128xf32> to vector<8x128xf32>
    %136 = vector.extract_strided_slice %133 {offsets = [0, 0], sizes = [8, 384], strides = [1, 1]} : vector<8x512xf32> to vector<8x384xf32>
    %137 = arith.negf %136 : vector<8x384xf32>
    %138 = math.exp %137 : vector<8x384xf32>
    %cst_85 = arith.constant 1.000000e+00 : f32
    %139 = vector.broadcast %cst_85 : f32 to vector<8x384xf32>
    %140 = arith.addf %139, %138 : vector<8x384xf32>
    %141 = arith.divf %139, %140 : vector<8x384xf32>
    %142 = vector.extract_strided_slice %141 {offsets = [0, 0], sizes = [8, 128], strides = [1, 1]} : vector<8x384xf32> to vector<8x128xf32>
    %143 = vector.extract_strided_slice %141 {offsets = [0, 128], sizes = [8, 128], strides = [1, 1]} : vector<8x384xf32> to vector<8x128xf32>
    %144 = vector.extract_strided_slice %141 {offsets = [0, 256], sizes = [8, 128], strides = [1, 1]} : vector<8x384xf32> to vector<8x128xf32>
    %145 = vector.extract_strided_slice %133 {offsets = [0, 384], sizes = [8, 128], strides = [1, 1]} : vector<8x512xf32> to vector<8x128xf32>
    %146 = math.tanh %145 : vector<8x128xf32>
    %147 = arith.mulf %143, %135 : vector<8x128xf32>
    %148 = arith.mulf %142, %146 : vector<8x128xf32>
    %149 = arith.addf %147, %148 : vector<8x128xf32>
    %150 = math.tanh %149 : vector<8x128xf32>
    %151 = arith.mulf %144, %150 : vector<8x128xf32>
    %c1_86 = arith.constant 1 : index
    %c0_87 = arith.constant 0 : index
    %c0_88 = arith.constant 0 : index
    %152 = vector.load %arg13[%c1_86, %c0_87, %c0_88] : memref<2x8x128xf32, #tpu.memory_space<vmem>>, vector<1x8x128xf32>
    %153 = vector.shape_cast %152 : vector<1x8x128xf32> to vector<8x128xf32>
    %154 = vector.shape_cast %149 : vector<8x128xf32> to vector<1x8x128xf32>
    tpu.vector_store %arg13[%c1_86, %c0_87, %c0_88], %154 {strides = array<i32>} : memref<2x8x128xf32, #tpu.memory_space<vmem>>, vector<1x8x128xf32>,
    %155 = arith.truncf %151 : vector<8x128xf32> to vector<8x128xbf16>
    %c0_89 = arith.constant 0 : index
    %c0_90 = arith.constant 0 : index
    %c128_91 = arith.constant 128 : index
    %156 = vector.load %arg14[%c0_89, %c0_90, %c128_91] : memref<1x8x256xbf16, #tpu.memory_space<vmem>>, vector<1x8x128xbf16>
    %157 = vector.shape_cast %156 : vector<1x8x128xbf16> to vector<8x128xbf16>
    %158 = vector.shape_cast %155 : vector<8x128xbf16> to vector<1x8x128xbf16>
    tpu.vector_store %arg14[%c0_89, %c0_90, %c128_91], %158 {strides = array<i32>} : memref<1x8x256xbf16, #tpu.memory_space<vmem>>, vector<1x8x128xbf16>,
    %c0_92 = arith.constant 0 : index
    %c0_93 = arith.constant 0 : index
    %159 = vector.load %arg10[%c0_92, %c0_93] : memref<128x128xbf16, #tpu.memory_space<vmem>>, vector<128x128xbf16>
    %cst_94 = arith.constant dense<0.000000e+00> : vector<8x128xf32>
    %160 = tpu.matmul %155, %159, %cst_94 {dimension_numbers = #tpu.dot_dimension_numbers<[1], [0], [0], [1], [0, 0, 1, 1], [], []>} : vector<8x128xbf16>, vector<128x128xbf16>, vector<8x128xf32> -> vector<8x128xf32>
    %161 = vector.broadcast %91 : i32 to vector<8x1xi32>
    %162 = arith.cmpi sgt, %8, %161 : vector<8x1xi32>
    %163 = arith.extui %162 : vector<8x1xi1> to vector<8x1xi32>
    %164 = arith.sitofp %163 : vector<8x1xi32> to vector<8x1xf32>
    %165 = vector.broadcast %164 : vector<8x1xf32> to vector<8x128xf32>
    %166 = arith.mulf %160, %165 : vector<8x128xf32>
    %167 = arith.index_cast %c1_i32 : i32 to index
    %c0_95 = arith.constant 0 : index
    %c0_96 = arith.constant 0 : index
    %168 = vector.load %arg11[%167, %c0_95, %c0_96] : memref<4x8x128xf32, #tpu.memory_space<vmem>>, vector<1x8x128xf32>
    %169 = vector.shape_cast %168 : vector<1x8x128xf32> to vector<8x128xf32>
    %170 = vector.shape_cast %166 : vector<8x128xf32> to vector<1x8x128xf32>
    tpu.vector_store %arg11[%167, %c0_95, %c0_96], %170 {strides = array<i32>} : memref<4x8x128xf32, #tpu.memory_space<vmem>>, vector<1x8x128xf32>,
    %c2_i32 = arith.constant 2 : i32
    %c4_i32_97 = arith.constant 4 : i32
    %171 = arith.muli %arg0, %c4_i32_97 : i32
    %172 = arith.addi %171, %c2_i32 : i32
    %173 = arith.index_cast %c2_i32 : i32 to index
    %c0_98 = arith.constant 0 : index
    %c0_99 = arith.constant 0 : index
    %174 = vector.load %arg16[%173, %c0_98, %c0_99] : memref<4x8x512xf32, #tpu.memory_space<vmem>>, vector<1x8x512xf32>
    %175 = vector.shape_cast %174 : vector<1x8x512xf32> to vector<8x512xf32>
    %c0_100 = arith.constant 0 : index
    %c0_101 = arith.constant 0 : index
    %176 = vector.load %arg15[%c0_100, %c0_101] : memref<8x512xf32, #tpu.memory_space<vmem>>, vector<8x512xf32>
    %177 = arith.addf %175, %176 : vector<8x512xf32>
    %c0_102 = arith.constant 0 : index
    %c0_103 = arith.constant 0 : index
    %178 = vector.load %arg12[%c0_102, %c0_103] : memref<8x128xbf16, #tpu.memory_space<vmem>>, vector<8x128xbf16>
    %c0_104 = arith.constant 0 : index
    %c0_105 = arith.constant 0 : index
    %179 = vector.load %arg6[%c0_104, %c0_105] : memref<128x512xbf16, #tpu.memory_space<vmem>>, vector<128x512xbf16>
    %cst_106 = arith.constant dense<0.000000e+00> : vector<8x512xf32>
    %180 = tpu.matmul %178, %179, %cst_106 {dimension_numbers = #tpu.dot_dimension_numbers<[1], [0], [0], [1], [0, 0, 1, 1], [], []>} : vector<8x128xbf16>, vector<128x512xbf16>, vector<8x512xf32> -> vector<8x512xf32>
    %181 = arith.addf %177, %180 : vector<8x512xf32>
    %c0_107 = arith.constant 0 : index
    %c0_108 = arith.constant 0 : index
    %c0_109 = arith.constant 0 : index
    %182 = vector.load %arg13[%c0_107, %c0_108, %c0_109] : memref<2x8x128xf32, #tpu.memory_space<vmem>>, vector<1x8x128xf32>
    %183 = vector.shape_cast %182 : vector<1x8x128xf32> to vector<8x128xf32>
    %184 = vector.extract_strided_slice %181 {offsets = [0, 0], sizes = [8, 384], strides = [1, 1]} : vector<8x512xf32> to vector<8x384xf32>
    %185 = arith.negf %184 : vector<8x384xf32>
    %186 = math.exp %185 : vector<8x384xf32>
    %cst_110 = arith.constant 1.000000e+00 : f32
    %187 = vector.broadcast %cst_110 : f32 to vector<8x384xf32>
    %188 = arith.addf %187, %186 : vector<8x384xf32>
    %189 = arith.divf %187, %188 : vector<8x384xf32>
    %190 = vector.extract_strided_slice %189 {offsets = [0, 0], sizes = [8, 128], strides = [1, 1]} : vector<8x384xf32> to vector<8x128xf32>
    %191 = vector.extract_strided_slice %189 {offsets = [0, 128], sizes = [8, 128], strides = [1, 1]} : vector<8x384xf32> to vector<8x128xf32>
    %192 = vector.extract_strided_slice %189 {offsets = [0, 256], sizes = [8, 128], strides = [1, 1]} : vector<8x384xf32> to vector<8x128xf32>
    %193 = vector.extract_strided_slice %181 {offsets = [0, 384], sizes = [8, 128], strides = [1, 1]} : vector<8x512xf32> to vector<8x128xf32>
    %194 = math.tanh %193 : vector<8x128xf32>
    %195 = arith.mulf %191, %183 : vector<8x128xf32>
    %196 = arith.mulf %190, %194 : vector<8x128xf32>
    %197 = arith.addf %195, %196 : vector<8x128xf32>
    %198 = math.tanh %197 : vector<8x128xf32>
    %199 = arith.mulf %192, %198 : vector<8x128xf32>
    %c0_111 = arith.constant 0 : index
    %c0_112 = arith.constant 0 : index
    %c0_113 = arith.constant 0 : index
    %200 = vector.load %arg13[%c0_111, %c0_112, %c0_113] : memref<2x8x128xf32, #tpu.memory_space<vmem>>, vector<1x8x128xf32>
    %201 = vector.shape_cast %200 : vector<1x8x128xf32> to vector<8x128xf32>
    %202 = vector.shape_cast %197 : vector<8x128xf32> to vector<1x8x128xf32>
    tpu.vector_store %arg13[%c0_111, %c0_112, %c0_113], %202 {strides = array<i32>} : memref<2x8x128xf32, #tpu.memory_space<vmem>>, vector<1x8x128xf32>,
    %203 = arith.truncf %199 : vector<8x128xf32> to vector<8x128xbf16>
    %c0_114 = arith.constant 0 : index
    %c0_115 = arith.constant 0 : index
    %204 = vector.load %arg12[%c0_114, %c0_115] : memref<8x128xbf16, #tpu.memory_space<vmem>>, vector<8x128xbf16>
    tpu.vector_store %arg12[%c0_114, %c0_115], %203 {strides = array<i32>} : memref<8x128xbf16, #tpu.memory_space<vmem>>, vector<8x128xbf16>,
    %c0_116 = arith.constant 0 : index
    %c0_117 = arith.constant 0 : index
    %c0_118 = arith.constant 0 : index
    %205 = vector.load %arg14[%c0_116, %c0_117, %c0_118] : memref<1x8x256xbf16, #tpu.memory_space<vmem>>, vector<1x8x128xbf16>
    %206 = vector.shape_cast %205 : vector<1x8x128xbf16> to vector<8x128xbf16>
    %207 = vector.shape_cast %203 : vector<8x128xbf16> to vector<1x8x128xbf16>
    tpu.vector_store %arg14[%c0_116, %c0_117, %c0_118], %207 {strides = array<i32>} : memref<1x8x256xbf16, #tpu.memory_space<vmem>>, vector<1x8x128xbf16>,
    %c0_119 = arith.constant 0 : index
    %c0_120 = arith.constant 0 : index
    %c0_121 = arith.constant 0 : index
    %208 = vector.load %arg14[%c0_119, %c0_120, %c0_121] : memref<1x8x256xbf16, #tpu.memory_space<vmem>>, vector<1x8x256xbf16>
    %209 = vector.shape_cast %208 : vector<1x8x256xbf16> to vector<8x256xbf16>
    %c0_122 = arith.constant 0 : index
    %c0_123 = arith.constant 0 : index
    %210 = vector.load %arg8[%c0_122, %c0_123] : memref<256x512xbf16, #tpu.memory_space<vmem>>, vector<256x512xbf16>
    %cst_124 = arith.constant dense<0.000000e+00> : vector<8x512xf32>
    %211 = tpu.matmul %209, %210, %cst_124 {dimension_numbers = #tpu.dot_dimension_numbers<[1], [0], [0], [1], [0, 0, 1, 1], [], []>} : vector<8x256xbf16>, vector<256x512xbf16>, vector<8x512xf32> -> vector<8x512xf32>
    %c0_125 = arith.constant 0 : index
    %c0_126 = arith.constant 0 : index
    %212 = vector.load %arg9[%c0_125, %c0_126] : memref<1x512xf32, #tpu.memory_space<vmem>>, vector<1x512xf32>
    %213 = vector.broadcast %212 : vector<1x512xf32> to vector<8x512xf32>
    %214 = arith.addf %211, %213 : vector<8x512xf32>
    %c1_127 = arith.constant 1 : index
    %c0_128 = arith.constant 0 : index
    %c0_129 = arith.constant 0 : index
    %215 = vector.load %arg13[%c1_127, %c0_128, %c0_129] : memref<2x8x128xf32, #tpu.memory_space<vmem>>, vector<1x8x128xf32>
    %216 = vector.shape_cast %215 : vector<1x8x128xf32> to vector<8x128xf32>
    %217 = vector.extract_strided_slice %214 {offsets = [0, 0], sizes = [8, 384], strides = [1, 1]} : vector<8x512xf32> to vector<8x384xf32>
    %218 = arith.negf %217 : vector<8x384xf32>
    %219 = math.exp %218 : vector<8x384xf32>
    %cst_130 = arith.constant 1.000000e+00 : f32
    %220 = vector.broadcast %cst_130 : f32 to vector<8x384xf32>
    %221 = arith.addf %220, %219 : vector<8x384xf32>
    %222 = arith.divf %220, %221 : vector<8x384xf32>
    %223 = vector.extract_strided_slice %222 {offsets = [0, 0], sizes = [8, 128], strides = [1, 1]} : vector<8x384xf32> to vector<8x128xf32>
    %224 = vector.extract_strided_slice %222 {offsets = [0, 128], sizes = [8, 128], strides = [1, 1]} : vector<8x384xf32> to vector<8x128xf32>
    %225 = vector.extract_strided_slice %222 {offsets = [0, 256], sizes = [8, 128], strides = [1, 1]} : vector<8x384xf32> to vector<8x128xf32>
    %226 = vector.extract_strided_slice %214 {offsets = [0, 384], sizes = [8, 128], strides = [1, 1]} : vector<8x512xf32> to vector<8x128xf32>
    %227 = math.tanh %226 : vector<8x128xf32>
    %228 = arith.mulf %224, %216 : vector<8x128xf32>
    %229 = arith.mulf %223, %227 : vector<8x128xf32>
    %230 = arith.addf %228, %229 : vector<8x128xf32>
    %231 = math.tanh %230 : vector<8x128xf32>
    %232 = arith.mulf %225, %231 : vector<8x128xf32>
    %c1_131 = arith.constant 1 : index
    %c0_132 = arith.constant 0 : index
    %c0_133 = arith.constant 0 : index
    %233 = vector.load %arg13[%c1_131, %c0_132, %c0_133] : memref<2x8x128xf32, #tpu.memory_space<vmem>>, vector<1x8x128xf32>
    %234 = vector.shape_cast %233 : vector<1x8x128xf32> to vector<8x128xf32>
    %235 = vector.shape_cast %230 : vector<8x128xf32> to vector<1x8x128xf32>
    tpu.vector_store %arg13[%c1_131, %c0_132, %c0_133], %235 {strides = array<i32>} : memref<2x8x128xf32, #tpu.memory_space<vmem>>, vector<1x8x128xf32>,
    %236 = arith.truncf %232 : vector<8x128xf32> to vector<8x128xbf16>
    %c0_134 = arith.constant 0 : index
    %c0_135 = arith.constant 0 : index
    %c128_136 = arith.constant 128 : index
    %237 = vector.load %arg14[%c0_134, %c0_135, %c128_136] : memref<1x8x256xbf16, #tpu.memory_space<vmem>>, vector<1x8x128xbf16>
    %238 = vector.shape_cast %237 : vector<1x8x128xbf16> to vector<8x128xbf16>
    %239 = vector.shape_cast %236 : vector<8x128xbf16> to vector<1x8x128xbf16>
    tpu.vector_store %arg14[%c0_134, %c0_135, %c128_136], %239 {strides = array<i32>} : memref<1x8x256xbf16, #tpu.memory_space<vmem>>, vector<1x8x128xbf16>,
    %c0_137 = arith.constant 0 : index
    %c0_138 = arith.constant 0 : index
    %240 = vector.load %arg10[%c0_137, %c0_138] : memref<128x128xbf16, #tpu.memory_space<vmem>>, vector<128x128xbf16>
    %cst_139 = arith.constant dense<0.000000e+00> : vector<8x128xf32>
    %241 = tpu.matmul %236, %240, %cst_139 {dimension_numbers = #tpu.dot_dimension_numbers<[1], [0], [0], [1], [0, 0, 1, 1], [], []>} : vector<8x128xbf16>, vector<128x128xbf16>, vector<8x128xf32> -> vector<8x128xf32>
    %242 = vector.broadcast %172 : i32 to vector<8x1xi32>
    %243 = arith.cmpi sgt, %8, %242 : vector<8x1xi32>
    %244 = arith.extui %243 : vector<8x1xi1> to vector<8x1xi32>
    %245 = arith.sitofp %244 : vector<8x1xi32> to vector<8x1xf32>
    %246 = vector.broadcast %245 : vector<8x1xf32> to vector<8x128xf32>
    %247 = arith.mulf %241, %246 : vector<8x128xf32>
    %248 = arith.index_cast %c2_i32 : i32 to index
    %c0_140 = arith.constant 0 : index
    %c0_141 = arith.constant 0 : index
    %249 = vector.load %arg11[%248, %c0_140, %c0_141] : memref<4x8x128xf32, #tpu.memory_space<vmem>>, vector<1x8x128xf32>
    %250 = vector.shape_cast %249 : vector<1x8x128xf32> to vector<8x128xf32>
    %251 = vector.shape_cast %247 : vector<8x128xf32> to vector<1x8x128xf32>
    tpu.vector_store %arg11[%248, %c0_140, %c0_141], %251 {strides = array<i32>} : memref<4x8x128xf32, #tpu.memory_space<vmem>>, vector<1x8x128xf32>,
    %c3_i32 = arith.constant 3 : i32
    %c4_i32_142 = arith.constant 4 : i32
    %252 = arith.muli %arg0, %c4_i32_142 : i32
    %253 = arith.addi %252, %c3_i32 : i32
    %254 = arith.index_cast %c3_i32 : i32 to index
    %c0_143 = arith.constant 0 : index
    %c0_144 = arith.constant 0 : index
    %255 = vector.load %arg16[%254, %c0_143, %c0_144] : memref<4x8x512xf32, #tpu.memory_space<vmem>>, vector<1x8x512xf32>
    %256 = vector.shape_cast %255 : vector<1x8x512xf32> to vector<8x512xf32>
    %c0_145 = arith.constant 0 : index
    %c0_146 = arith.constant 0 : index
    %257 = vector.load %arg15[%c0_145, %c0_146] : memref<8x512xf32, #tpu.memory_space<vmem>>, vector<8x512xf32>
    %258 = arith.addf %256, %257 : vector<8x512xf32>
    %c0_147 = arith.constant 0 : index
    %c0_148 = arith.constant 0 : index
    %259 = vector.load %arg12[%c0_147, %c0_148] : memref<8x128xbf16, #tpu.memory_space<vmem>>, vector<8x128xbf16>
    %c0_149 = arith.constant 0 : index
    %c0_150 = arith.constant 0 : index
    %260 = vector.load %arg6[%c0_149, %c0_150] : memref<128x512xbf16, #tpu.memory_space<vmem>>, vector<128x512xbf16>
    %cst_151 = arith.constant dense<0.000000e+00> : vector<8x512xf32>
    %261 = tpu.matmul %259, %260, %cst_151 {dimension_numbers = #tpu.dot_dimension_numbers<[1], [0], [0], [1], [0, 0, 1, 1], [], []>} : vector<8x128xbf16>, vector<128x512xbf16>, vector<8x512xf32> -> vector<8x512xf32>
    %262 = arith.addf %258, %261 : vector<8x512xf32>
    %c0_152 = arith.constant 0 : index
    %c0_153 = arith.constant 0 : index
    %c0_154 = arith.constant 0 : index
    %263 = vector.load %arg13[%c0_152, %c0_153, %c0_154] : memref<2x8x128xf32, #tpu.memory_space<vmem>>, vector<1x8x128xf32>
    %264 = vector.shape_cast %263 : vector<1x8x128xf32> to vector<8x128xf32>
    %265 = vector.extract_strided_slice %262 {offsets = [0, 0], sizes = [8, 384], strides = [1, 1]} : vector<8x512xf32> to vector<8x384xf32>
    %266 = arith.negf %265 : vector<8x384xf32>
    %267 = math.exp %266 : vector<8x384xf32>
    %cst_155 = arith.constant 1.000000e+00 : f32
    %268 = vector.broadcast %cst_155 : f32 to vector<8x384xf32>
    %269 = arith.addf %268, %267 : vector<8x384xf32>
    %270 = arith.divf %268, %269 : vector<8x384xf32>
    %271 = vector.extract_strided_slice %270 {offsets = [0, 0], sizes = [8, 128], strides = [1, 1]} : vector<8x384xf32> to vector<8x128xf32>
    %272 = vector.extract_strided_slice %270 {offsets = [0, 128], sizes = [8, 128], strides = [1, 1]} : vector<8x384xf32> to vector<8x128xf32>
    %273 = vector.extract_strided_slice %270 {offsets = [0, 256], sizes = [8, 128], strides = [1, 1]} : vector<8x384xf32> to vector<8x128xf32>
    %274 = vector.extract_strided_slice %262 {offsets = [0, 384], sizes = [8, 128], strides = [1, 1]} : vector<8x512xf32> to vector<8x128xf32>
    %275 = math.tanh %274 : vector<8x128xf32>
    %276 = arith.mulf %272, %264 : vector<8x128xf32>
    %277 = arith.mulf %271, %275 : vector<8x128xf32>
    %278 = arith.addf %276, %277 : vector<8x128xf32>
    %279 = math.tanh %278 : vector<8x128xf32>
    %280 = arith.mulf %273, %279 : vector<8x128xf32>
    %c0_156 = arith.constant 0 : index
    %c0_157 = arith.constant 0 : index
    %c0_158 = arith.constant 0 : index
    %281 = vector.load %arg13[%c0_156, %c0_157, %c0_158] : memref<2x8x128xf32, #tpu.memory_space<vmem>>, vector<1x8x128xf32>
    %282 = vector.shape_cast %281 : vector<1x8x128xf32> to vector<8x128xf32>
    %283 = vector.shape_cast %278 : vector<8x128xf32> to vector<1x8x128xf32>
    tpu.vector_store %arg13[%c0_156, %c0_157, %c0_158], %283 {strides = array<i32>} : memref<2x8x128xf32, #tpu.memory_space<vmem>>, vector<1x8x128xf32>,
    %284 = arith.truncf %280 : vector<8x128xf32> to vector<8x128xbf16>
    %c0_159 = arith.constant 0 : index
    %c0_160 = arith.constant 0 : index
    %285 = vector.load %arg12[%c0_159, %c0_160] : memref<8x128xbf16, #tpu.memory_space<vmem>>, vector<8x128xbf16>
    tpu.vector_store %arg12[%c0_159, %c0_160], %284 {strides = array<i32>} : memref<8x128xbf16, #tpu.memory_space<vmem>>, vector<8x128xbf16>,
    %c0_161 = arith.constant 0 : index
    %c0_162 = arith.constant 0 : index
    %c0_163 = arith.constant 0 : index
    %286 = vector.load %arg14[%c0_161, %c0_162, %c0_163] : memref<1x8x256xbf16, #tpu.memory_space<vmem>>, vector<1x8x128xbf16>
    %287 = vector.shape_cast %286 : vector<1x8x128xbf16> to vector<8x128xbf16>
    %288 = vector.shape_cast %284 : vector<8x128xbf16> to vector<1x8x128xbf16>
    tpu.vector_store %arg14[%c0_161, %c0_162, %c0_163], %288 {strides = array<i32>} : memref<1x8x256xbf16, #tpu.memory_space<vmem>>, vector<1x8x128xbf16>,
    %c0_164 = arith.constant 0 : index
    %c0_165 = arith.constant 0 : index
    %c0_166 = arith.constant 0 : index
    %289 = vector.load %arg14[%c0_164, %c0_165, %c0_166] : memref<1x8x256xbf16, #tpu.memory_space<vmem>>, vector<1x8x256xbf16>
    %290 = vector.shape_cast %289 : vector<1x8x256xbf16> to vector<8x256xbf16>
    %c0_167 = arith.constant 0 : index
    %c0_168 = arith.constant 0 : index
    %291 = vector.load %arg8[%c0_167, %c0_168] : memref<256x512xbf16, #tpu.memory_space<vmem>>, vector<256x512xbf16>
    %cst_169 = arith.constant dense<0.000000e+00> : vector<8x512xf32>
    %292 = tpu.matmul %290, %291, %cst_169 {dimension_numbers = #tpu.dot_dimension_numbers<[1], [0], [0], [1], [0, 0, 1, 1], [], []>} : vector<8x256xbf16>, vector<256x512xbf16>, vector<8x512xf32> -> vector<8x512xf32>
    %c0_170 = arith.constant 0 : index
    %c0_171 = arith.constant 0 : index
    %293 = vector.load %arg9[%c0_170, %c0_171] : memref<1x512xf32, #tpu.memory_space<vmem>>, vector<1x512xf32>
    %294 = vector.broadcast %293 : vector<1x512xf32> to vector<8x512xf32>
    %295 = arith.addf %292, %294 : vector<8x512xf32>
    %c1_172 = arith.constant 1 : index
    %c0_173 = arith.constant 0 : index
    %c0_174 = arith.constant 0 : index
    %296 = vector.load %arg13[%c1_172, %c0_173, %c0_174] : memref<2x8x128xf32, #tpu.memory_space<vmem>>, vector<1x8x128xf32>
    %297 = vector.shape_cast %296 : vector<1x8x128xf32> to vector<8x128xf32>
    %298 = vector.extract_strided_slice %295 {offsets = [0, 0], sizes = [8, 384], strides = [1, 1]} : vector<8x512xf32> to vector<8x384xf32>
    %299 = arith.negf %298 : vector<8x384xf32>
    %300 = math.exp %299 : vector<8x384xf32>
    %cst_175 = arith.constant 1.000000e+00 : f32
    %301 = vector.broadcast %cst_175 : f32 to vector<8x384xf32>
    %302 = arith.addf %301, %300 : vector<8x384xf32>
    %303 = arith.divf %301, %302 : vector<8x384xf32>
    %304 = vector.extract_strided_slice %303 {offsets = [0, 0], sizes = [8, 128], strides = [1, 1]} : vector<8x384xf32> to vector<8x128xf32>
    %305 = vector.extract_strided_slice %303 {offsets = [0, 128], sizes = [8, 128], strides = [1, 1]} : vector<8x384xf32> to vector<8x128xf32>
    %306 = vector.extract_strided_slice %303 {offsets = [0, 256], sizes = [8, 128], strides = [1, 1]} : vector<8x384xf32> to vector<8x128xf32>
    %307 = vector.extract_strided_slice %295 {offsets = [0, 384], sizes = [8, 128], strides = [1, 1]} : vector<8x512xf32> to vector<8x128xf32>
    %308 = math.tanh %307 : vector<8x128xf32>
    %309 = arith.mulf %305, %297 : vector<8x128xf32>
    %310 = arith.mulf %304, %308 : vector<8x128xf32>
    %311 = arith.addf %309, %310 : vector<8x128xf32>
    %312 = math.tanh %311 : vector<8x128xf32>
    %313 = arith.mulf %306, %312 : vector<8x128xf32>
    %c1_176 = arith.constant 1 : index
    %c0_177 = arith.constant 0 : index
    %c0_178 = arith.constant 0 : index
    %314 = vector.load %arg13[%c1_176, %c0_177, %c0_178] : memref<2x8x128xf32, #tpu.memory_space<vmem>>, vector<1x8x128xf32>
    %315 = vector.shape_cast %314 : vector<1x8x128xf32> to vector<8x128xf32>
    %316 = vector.shape_cast %311 : vector<8x128xf32> to vector<1x8x128xf32>
    tpu.vector_store %arg13[%c1_176, %c0_177, %c0_178], %316 {strides = array<i32>} : memref<2x8x128xf32, #tpu.memory_space<vmem>>, vector<1x8x128xf32>,
    %317 = arith.truncf %313 : vector<8x128xf32> to vector<8x128xbf16>
    %c0_179 = arith.constant 0 : index
    %c0_180 = arith.constant 0 : index
    %c128_181 = arith.constant 128 : index
    %318 = vector.load %arg14[%c0_179, %c0_180, %c128_181] : memref<1x8x256xbf16, #tpu.memory_space<vmem>>, vector<1x8x128xbf16>
    %319 = vector.shape_cast %318 : vector<1x8x128xbf16> to vector<8x128xbf16>
    %320 = vector.shape_cast %317 : vector<8x128xbf16> to vector<1x8x128xbf16>
    tpu.vector_store %arg14[%c0_179, %c0_180, %c128_181], %320 {strides = array<i32>} : memref<1x8x256xbf16, #tpu.memory_space<vmem>>, vector<1x8x128xbf16>,
    %c0_182 = arith.constant 0 : index
    %c0_183 = arith.constant 0 : index
    %321 = vector.load %arg10[%c0_182, %c0_183] : memref<128x128xbf16, #tpu.memory_space<vmem>>, vector<128x128xbf16>
    %cst_184 = arith.constant dense<0.000000e+00> : vector<8x128xf32>
    %322 = tpu.matmul %317, %321, %cst_184 {dimension_numbers = #tpu.dot_dimension_numbers<[1], [0], [0], [1], [0, 0, 1, 1], [], []>} : vector<8x128xbf16>, vector<128x128xbf16>, vector<8x128xf32> -> vector<8x128xf32>
    %323 = vector.broadcast %253 : i32 to vector<8x1xi32>
    %324 = arith.cmpi sgt, %8, %323 : vector<8x1xi32>
    %325 = arith.extui %324 : vector<8x1xi1> to vector<8x1xi32>
    %326 = arith.sitofp %325 : vector<8x1xi32> to vector<8x1xf32>
    %327 = vector.broadcast %326 : vector<8x1xf32> to vector<8x128xf32>
    %328 = arith.mulf %322, %327 : vector<8x128xf32>
    %329 = arith.index_cast %c3_i32 : i32 to index
    %c0_185 = arith.constant 0 : index
    %c0_186 = arith.constant 0 : index
    %330 = vector.load %arg11[%329, %c0_185, %c0_186] : memref<4x8x128xf32, #tpu.memory_space<vmem>>, vector<1x8x128xf32>
    %331 = vector.shape_cast %330 : vector<1x8x128xf32> to vector<8x128xf32>
    %332 = vector.shape_cast %328 : vector<8x128xf32> to vector<1x8x128xf32>
    tpu.vector_store %arg11[%329, %c0_185, %c0_186], %332 {strides = array<i32>} : memref<4x8x128xf32, #tpu.memory_space<vmem>>, vector<1x8x128xf32>,
    %c4_i32_187 = arith.constant 4 : i32
    return
  }
  func.func @transform_0(%arg0: i32) -> (i32, i32) {
    %c0_i32 = arith.constant 0 : i32
    %c0_i32_0 = arith.constant 0 : i32
    %c0_i32_1 = arith.constant 0 : i32
    return %c0_i32, %c0_i32_0 : i32, i32
  }
  func.func @transform_1(%arg0: i32) -> (i32, i32) {
    %c0_i32 = arith.constant 0 : i32
    %c0_i32_0 = arith.constant 0 : i32
    %c0_i32_1 = arith.constant 0 : i32
    return %c0_i32, %c0_i32_0 : i32, i32
  }
  func.func @transform_2(%arg0: i32) -> (i32, i32) {
    %c0_i32 = arith.constant 0 : i32
    %c0_i32_0 = arith.constant 0 : i32
    return %arg0, %c0_i32 : i32, i32
  }
  func.func @transform_3(%arg0: i32) -> (i32, i32) {
    %c0_i32 = arith.constant 0 : i32
    %c0_i32_0 = arith.constant 0 : i32
    %c0_i32_1 = arith.constant 0 : i32
    return %c0_i32, %c0_i32_0 : i32, i32
  }
  func.func @transform_4(%arg0: i32) -> (i32, i32) {
    %c0_i32 = arith.constant 0 : i32
    %c0_i32_0 = arith.constant 0 : i32
    %c0_i32_1 = arith.constant 0 : i32
    return %c0_i32, %c0_i32_0 : i32, i32
  }
  func.func @transform_5(%arg0: i32) -> (i32, i32) {
    %c0_i32 = arith.constant 0 : i32
    %c0_i32_0 = arith.constant 0 : i32
    %c0_i32_1 = arith.constant 0 : i32
    return %c0_i32, %c0_i32_0 : i32, i32
  }
  func.func @transform_6(%arg0: i32) -> (i32, i32) {
    %c0_i32 = arith.constant 0 : i32
    %c0_i32_0 = arith.constant 0 : i32
    %c0_i32_1 = arith.constant 0 : i32
    return %c0_i32, %c0_i32_0 : i32, i32
  }
  func.func @transform_7(%arg0: i32) -> (i32, i32) {
    %c0_i32 = arith.constant 0 : i32
    %c0_i32_0 = arith.constant 0 : i32
    %c0_i32_1 = arith.constant 0 : i32
    return %c0_i32, %c0_i32_0 : i32, i32
  }
  func.func @transform_8(%arg0: i32) -> (i32, i32) {
    %c0_i32 = arith.constant 0 : i32
    %c0_i32_0 = arith.constant 0 : i32
    %c0_i32_1 = arith.constant 0 : i32
    return %c0_i32, %c0_i32_0 : i32, i32
  }
  func.func @transform_9(%arg0: i32) -> (i32, i32) {
    %c0_i32 = arith.constant 0 : i32
    %c0_i32_0 = arith.constant 0 : i32
    %c0_i32_1 = arith.constant 0 : i32
    return %c0_i32, %c0_i32_0 : i32, i32
  }
  func.func @transform_10(%arg0: i32) -> (i32, i32, i32) {
    %c0_i32 = arith.constant 0 : i32
    %c0_i32_0 = arith.constant 0 : i32
    %c0_i32_1 = arith.constant 0 : i32
    return %arg0, %c0_i32, %c0_i32_0 : i32, i32, i32
  }
}

</mosaic_0001>

<bundles_post_ra>
// kernel: tpu_custom_call.1
= control target key start
LH: loop header
LB: loop body
LE: loop exit
PB: predicated region body
PF: predicated region fallthrough
CT: control target
= control target key end

     0   :  { %s8964_s0 = inlined_call_operand.vmem [shape: s32[8,1], index: 0, kind: input, shape index: {}]   ;;  %s8965_s1 = inlined_call_operand.vmem [shape: bf16[8,128], index: 1, kind: input, shape index: {}]   ;;  %s8966_s2 = inlined_call_operand.hbm [shape: bf16[64,128], index: 2, kind: input, shape index: {}]   ;;  %s8967_s3 = inlined_call_operand.hbm [shape: bf16[128,512], index: 3, kind: input, shape index: {}]   ;;  %s8968_s4 = inlined_call_operand.hbm [shape: bf16[128,512], index: 4, kind: input, shape index: {}]   ;;  %s8969_s5 = inlined_call_operand.hbm [shape: bf16[128,512], index: 5, kind: input, shape index: {}]   ;;  %s8970_s6 = inlined_call_operand.vmem [shape: f32[1,512], index: 6, kind: input, shape index: {}]   ;;  %s8971_s7 = inlined_call_operand.hbm [shape: bf16[256,512], index: 7, kind: input, shape index: {}]   ;;  %s8972_s8 = inlined_call_operand.vmem [shape: f32[1,512], index: 8, kind: input, shape index: {}]   ;;  %s8973_s9 = inlined_call_operand.hbm [shape: bf16[128,128], index: 9, kind: input, shape index: {}]   ;;  %s8974_s10 = inlined_call_operand.hbm [shape: f32[8,8,128], index: 10, kind: output, shape index: {}]  }
   0x1   :  { %8977 = sst [smem:[#allocation24_spill]] %s8967_s3 }
   0x2   :  { %8978 = sst [smem:[#allocation25_spill]] %s8968_s4 }
   0x3   :  { %8979 = sst [smem:[#allocation26_spill]] %s8969_s5 }
   0x4   :  { %8980 = sst [smem:[#allocation27_spill]] %s8971_s7 }
   0x5   :  { %15 = vsyncpa [#allocation8], 0 }
   0x6   :  { %17 = vsyncpa [#allocation8 + $0x1], 0 }
   0x7   :  { %18 = vsyncpa [#allocation11], 0 }
   0x8   :  { %19 = vsyncpa [#allocation14], 0 }
   0x9   :  { %20 = vsyncpa [#allocation17], 0 }
   0xa   :  { %21 = vsyncpa [#allocation9], 0 }
   0xb   :  { %23 = vsyncpa [#allocation9 + $0x1], 0  ;;  %s8195_s13 = smov 0   ;;  %s8197_s14 = smov 0  }
   0xc   :  { %s8199_s15 = smov 0   ;;  %s8201_s16 = smov 0  }
   0xd LB: > { %s8981_s3 = sld [smem:[#allocation24_spill]]  ;;  %s8219_s20 = sadd.s32 4294967295, %s8123_s16   ;;  %s8123_s16 = sphi %s8201_s16, %s9030_s16   ;;  %s8119_s15 = sphi %s8199_s15, %s9029_s15   ;;  %s8115_s14 = sphi %s8197_s14, %s9028_s14   ;;  %s8111_s13 = sphi %s8195_s13, %s9027_s13  }
   0xe   : > { %p5143_p0 = scmp.ge.s32.totalorder %s8123_s16, 1  ;;  %p92_p1 = scmp.eq.s32.totalorder %s8219_s20, 0 }
   0xf   : > { %p275_p2 = scmp.lt.s32.totalorder %s8123_s16, 3  ;;  %s8125_s22 = smov [#allocation10]  }
  0x10   : > { %s294_s23 = sshll.u32 %s8125_s22, 4  ;;  %s8983_s5 = sld [smem:[#allocation26_spill]]  ;;  %s295_s23 = int_to_ptr.vmem [resolvable:$true] %s294_s23 }
  0x11   : > { %p8225_p4 = pnand %p5143_p0, %p275_p2  ;;  %s8985_s4 = sld [smem:[#allocation25_spill]] }
  0x12   : > { %s8126_s11 = smov [#allocation13]   ;;  %s8127_s17 = smov 256  }
  0x13   : > { %s292_s19 = sshll.u32 %s8981_s3, 4  ;;  %p7635_p5 = pneg %p8225_p4  ;;  %s293_s19 = int_to_ptr.hbm [resolvable:$true] %s292_s19 }
  0x14   : > { %s322_s12 = sshll.u32 %s8126_s11, 4  ;;  %s8128_s18 = smov 16   ;;  %s323_s12 = int_to_ptr.vmem [resolvable:$true] %s322_s12 }
  0x15   : > { %p8237_p7 = pnand %p7635_p5, %p92_p1  ;;  %s8986_s7 = sld [smem:[#allocation27_spill]] }
  0x16   : > { %s320_s26 = sshll.u32 %s8983_s5, 4  ;;  %s8129_s3 = smov [#allocation12]   ;;  %s321_s26 = int_to_ptr.hbm [resolvable:$true] %s320_s26 }
  0x17   : > { %s306_s30 = sshll.u32 %s8985_s4, 4  ;;  %s308_s5 = sshll.u32 %s8129_s3, 4  ;;  %s307_s30 = int_to_ptr.hbm [resolvable:$true] %s306_s30  ;;  %s309_s5 = int_to_ptr.vmem [resolvable:$true] %s308_s5 }
  0x18   : > { %7638 = dma.hbm_to_vmem [thread:$0]  (!%p8237_p7), %s293_s19, 4096, %s295_s23, [#allocation11], %s8127_s17, %s8127_s17, %s8128_s18  }
  0x19   : > { %7644 = dma.hbm_to_vmem [thread:$0]  (!%p8237_p7), %s321_s26, 4096, %s323_s12, [#allocation14], %s8127_s17, %s8127_s17, %s8128_s18  }
  0x1a   : > { %7641 = dma.hbm_to_vmem [thread:$0]  (!%p8237_p7), %s307_s30, 4096, %s309_s5, [#allocation11], %s8127_s17, %s8127_s17, %s8128_s18  }
  0x1b   : > { %s337_s25 = sshll.u32 %s8986_s7, 4  ;;  %s8130_s19 = smov [#allocation15]   ;;  %s338_s25 = int_to_ptr.hbm [resolvable:$true] %s337_s25 }
  0x1c   : > { %s339_s23 = sshll.u32 %s8130_s19, 4  ;;  %s354_s29 = sshll.u32 %s8973_s9, 4  ;;  %s340_s23 = int_to_ptr.vmem [resolvable:$true] %s339_s23  ;;  %s355_s29 = int_to_ptr.hbm [resolvable:$true] %s354_s29 }
  0x1d   : > { %7647 = dma.hbm_to_vmem [thread:$0]  (!%p8237_p7), %s338_s25, 8192, %s340_s23, [#allocation14], %s8127_s17, %s8127_s17, %s8128_s18  }
  0x1e   : > { %s8131_s3 = smov [#allocation16]   ;;  %s8975_s30 = smov 64  }
  0x1f   : > { %s356_s5 = sshll.u32 %s8131_s3, 4  ;;  %s8976_s11 = smov 4   ;;  %s357_s5 = int_to_ptr.vmem [resolvable:$true] %s356_s5 }
  0x20   : > { %7650 = dma.hbm_to_vmem [thread:$0]  (!%p8237_p7), %s355_s29, 1024, %s357_s5, [#allocation17], %s8975_s30, %s8975_s30, %s8976_s11  }
  0x21   : > { %s5142_s12 = sadd.s32 4294967294, %s8123_s16   ;;  %s8265_s22 = sadd.s32 1, %s8123_s16  }
  0x22   : > { %s78_s24 = sadd.s32 1, %s8119_s15  ;;  %s75_s17 = ssub.s32 %s8123_s16, %s8265_s22 }
  0x23   : > { %p85_p8 = scmp.ne.s32.totalorder %s8119_s15, %s8115_s14  ;;  %p76_p9 = scmp.eq.s32.totalorder %s75_s17, 0 }
  0x24   : > { %p86_p10 = scmp.eq.s32.totalorder %s8123_s16, 0  ;;  %p91_p11 = scmp.ne.s32.totalorder %s8115_s14, %s8111_s13 }
  0x25   : > { %p262_p12 = scmp.eq.s32.totalorder %s8219_s20, 1  ;;  %p268_p2 = scmp.eq.s32.totalorder %s5142_s12, 1 }
  0x26   : > { %s8277_s18 = scalar_select %p76_p9, %s8119_s15, %s78_s24  }
  0x27   : > { %p8281_p13 = por %p92_p1, %p91_p11  ;;  %p8285_p0 = por %p262_p12, %p85_p8 }
  0x28   : > { %p87_p5 = por %p86_p10, %p85_p8  ;;  %s370_s19 = sand.u32 1, %s8119_s15  }
  0x29   : > { %p8290_p7 = por %p268_p2, %p91_p11  ;;  %p7664_p6 = scmp.lt.s32.totalorder %s8123_s16, 2 }
  0x2a   : > { %s5150_s26 = sshll.u32 %s370_s19, 4  ;;  %s7127_s28 = sshll.u32 %s8123_s16, 4 }
  0x2b   : > { %s379_s5 = scalar_lea.hbm %s8966_s2, %s7127_s28  ;;  %s374_s17 = scalar_lea.vmem [#allocation7], %s5150_s26 }
  0x2c   : > { %s380_s24 = sshll.u32 %s379_s5, 4  ;;  %s382_s30 = sshll.u32 %s374_s17, 4  ;;  %s381_s24 = int_to_ptr.hbm [resolvable:$true] %s380_s24  ;;  %s383_s30 = int_to_ptr.vmem [resolvable:$true] %s382_s30 }
  0x2d   : > { %p8299_p9 = pnand %p7664_p6, %p87_p5  ;;  %s371_s11 = scalar_lea.sflag [#allocation8], %s370_s19 }
  0x2e   : > { %s8015_s4 = sshra.s32 %s381_s24, 4  ;;  %s8022_s26 = scalar_lea.hbm %s8966_s2, 32  ;;  %s8016_s4 = int_to_ptr.hbm [resolvable:$true] %s8015_s4 }
  0x2f   : > { %s8017_s7 = scalar_lea.hbm %s8016_s4, 16  ;;  %p8019_p10 = pneg %p8299_p9 }
  0x30   : > { %p8018_p8 = scmp.ne.s32.totalorder %s8016_s4, %s8017_s7  ;;  %p8023_p6 = scmp.lt.s32.totalorder %s8016_s4, %s8966_s2 }
  0x31   : > { %p8024_p2 = scmp.lt.s32.totalorder %s8022_s26, %s8017_s7 }
  0x32   : > { %p8020_p11 = pnand %p8019_p10, %p8018_p8 }
  0x33   : > { %p8025_p5 = por %p8024_p2, %p8023_p6 }
  0x34   : > { %p8021_p12 = pneg %p8020_p11 }
  0x36   : > { %p8026_p3 = pnand %p8025_p5, %p8021_p12 }
  0x38   : > { %8029 = shalt.err (!%p8026_p3)
}
  0x39   : > { %s8991_s19 = smov 4   ;;  %s8992_s17 = smov 64  }
  0x3a   : > { %7654 = dma.hbm_to_vmem [thread:$0]  (!%p8299_p9), %s381_s24, 256, %s383_s30, %s371_s11, %s8992_s17, %s8992_s17, %s8991_s19  }
  0x3b   : > { %394 = sbr.rel (%p8225_p4) target bundleno = 1919 (0x77f), region = 60  ;;  %s8319_s28 = sand.u32 (!%p8225_p4), 1, %s8115_s14  }
  0x3c   : > { %s5154_s4 = sshll.u32 (!%p8225_p4), %s8319_s28, 4  ;;  %s397_s7 = scalar_lea.sflag (!%p8225_p4), [#allocation8], %s8319_s28 }
  0x3d   : > { %s8323_s29 = scalar_lea.vmem (!%p8225_p4), [#allocation7], %s5154_s4 }
  0x40   : > { %8090 = dma.done.wait (%p8281_p13), %s397_s7, 256  }
  0x41   : > { %8092 = vsyncadd (%p8281_p13), %s397_s7, 4294967040 }
  0x42   : > { %8094 = dma.done.wait (%p92_p1), [#allocation11], 8192  }
  0x43   : > { %8096 = vsyncadd (%p92_p1), [#allocation11], 4294959104 }
  0x44   : > { %8098 = dma.done.wait (%p92_p1), [#allocation14], 12288  }
  0x45   : > { %8100 = vsyncadd (%p92_p1), [#allocation14], 4294955008 }
  0x46   : > { %8102 = dma.done.wait (%p92_p1), [#allocation17], 1024  }
  0x47   : > { %8104 = vsyncadd (%p92_p1), [#allocation17], 4294966272  ;;  %s5160_s21 = sshll.u32 %s8319_s28, 5  ;;  %p8993_p3 = scmp.ne.s32.totalorder %s8219_s20, 0 }
  0x48   : > { %s8342_s30 = scalar_lea.vmem [#allocation18], %s5160_s21 }
  0x49   : > { %469 = sbr.rel (%p8993_p3) target bundleno = 255 (0xff), region = 88 }
  0x4e   : > { %v5276_v0 = vld [vmem:[#allocation10 + $0xe0] sm:$0xf]  ;;  %v7158_v1 = vld [vmem:[#allocation10 + $0xec] sm:$0xf0]  ;;  %v8134_v2 = vmov 0   ;;  %v8135_v6 = vmov 0.0  }
  0x4f   : > { %470 = vst [vmem:[#allocation2] sm:$0xf] %v8134_v2  ;;  %v5277_v3 = vor.u32 %v7158_v1, %v5276_v0  ;;  %v7156_v4 = vld [vmem:[#allocation10 + $0xe4] sm:$0xf]  ;;  %v5278_v5 = vld [vmem:[#allocation10 + $0xf0] sm:$0xf0] }
  0x50   : > { %471 = vst [vmem:[#allocation3] sm:$0xff] %v8135_v6  ;;  %v5281_v7 = vor.u32 %v7156_v4, %v5278_v5  ;;  %v5284_v8 = vld [vmem:[#allocation10 + $0xe8] sm:$0xf]  ;;  %v7159_v9 = vld [vmem:[#allocation10 + $0xf4] sm:$0xf0] }
  0x51   : > { %472 = vst [vmem:[#allocation3 + $0x8] sm:$0xff] %v8135_v6  ;;  %677 = vmatpush.bf16.msra.mxu0 %v5277_v3  ;;  %v5285_v10 = vor.u32 %v7159_v9, %v5284_v8  ;;  %v7157_v11 = vld [vmem:[#allocation10 + $0xec] sm:$0xf]  ;;  %v5286_v12 = vld [vmem:[#allocation10 + $0xf8] sm:$0xf0] }
  0x52   : > { %473 = vst [vmem:[#allocation4] sm:$0xff] %v8134_v2  ;;  %690 = vmatpush.bf16.msra.mxu1 %v5281_v7  ;;  %v5289_v13 = vor.u32 %v7157_v11, %v5286_v12  ;;  %v5260_v14 = vld [vmem:[#allocation10 + $0xc0] sm:$0xf]  ;;  %v7154_v15 = vld [vmem:[#allocation10 + $0xcc] sm:$0xf0] }
  0x53   : > { %703 = vmatpush.bf16.msra.mxu2 %v5285_v10  ;;  %v5261_v16 = vor.u32 %v7154_v15, %v5260_v14  ;;  %v7152_v17 = vld [vmem:[#allocation10 + $0xc4] sm:$0xf]  ;;  %v5262_v18 = vld [vmem:[#allocation10 + $0xd0] sm:$0xf0]  ;;  %v5268_v19 = vld [vmem:[#allocation10 + $0xc8] sm:$0xf] }
  0x54   : > { %716 = vmatpush.bf16.msra.mxu3 %v5289_v13  ;;  %v5265_v20 = vor.u32 %v7152_v17, %v5262_v18  ;;  %v7155_v21 = vld [vmem:[#allocation10 + $0xd4] sm:$0xf0]  ;;  %v7153_v22 = vld [vmem:[#allocation10 + $0xcc] sm:$0xf]  ;;  %v5270_v23 = vld [vmem:[#allocation10 + $0xd8] sm:$0xf0] }
  0x55   : > { %678 = vmatpush.bf16.msra.mxu0 %v5261_v16  ;;  %v5269_v24 = vor.u32 %v7155_v21, %v5268_v19  ;;  %v5273_v25 = vor.u32 %v7153_v22, %v5270_v23  ;;  %v5244_v26 = vld [vmem:[#allocation10 + $0xa0] sm:$0xf]  ;;  %v7150_v27 = vld [vmem:[#allocation10 + $0xac] sm:$0xf0]  ;;  %v7148_v28 = vld [vmem:[#allocation10 + $0xa4] sm:$0xf] }
  0x56   : > { %691 = vmatpush.bf16.msra.mxu1 %v5265_v20  ;;  %v5245_v29 = vor.u32 %v7150_v27, %v5244_v26  ;;  %v5246_v30 = vld [vmem:[#allocation10 + $0xb0] sm:$0xf0]  ;;  %v5252_v31 = vld [vmem:[#allocation10 + $0xa8] sm:$0xf]  ;;  %v7151_v32 = vld [vmem:[#allocation10 + $0xb4] sm:$0xf0] }
  0x57   : > { %704 = vmatpush.bf16.msra.mxu2 %v5269_v24  ;;  %v5249_v33 = vor.u32 %v7148_v28, %v5246_v30  ;;  %v5253_v34 = vor.u32 %v7151_v32, %v5252_v31  ;;  %v7149_v35 = vld [vmem:[#allocation10 + $0xac] sm:$0xf]  ;;  %v5254_v36 = vld [vmem:[#allocation10 + $0xb8] sm:$0xf0]  ;;  %v5228_v37 = vld [vmem:[#allocation10 + $0x80] sm:$0xf] }
  0x58   : > { %717 = vmatpush.bf16.msra.mxu3 %v5273_v25  ;;  %v5257_v38 = vor.u32 %v7149_v35, %v5254_v36  ;;  %v7146_v39 = vld [vmem:[#allocation10 + $0x8c] sm:$0xf0]  ;;  %v7144_v40 = vld [vmem:[#allocation10 + $0x84] sm:$0xf]  ;;  %v5230_v41 = vld [vmem:[#allocation10 + $0x90] sm:$0xf0] }
  0x59   : > { %679 = vmatpush.bf16.msra.mxu0 %v5245_v29  ;;  %v5229_v42 = vor.u32 %v7146_v39, %v5228_v37  ;;  %v5236_v43 = vld [vmem:[#allocation10 + $0x88] sm:$0xf]  ;;  %v7147_v44 = vld [vmem:[#allocation10 + $0x94] sm:$0xf0]  ;;  %v7145_v45 = vld [vmem:[#allocation10 + $0x8c] sm:$0xf]  ;;  %v5233_v46 = vor.u32 %v7144_v40, %v5230_v41 }
  0x5a   : > { %692 = vmatpush.bf16.msra.mxu1 %v5249_v33  ;;  %v5238_v47 = vld [vmem:[#allocation10 + $0x98] sm:$0xf0]  ;;  %v5212_v48 = vld [vmem:[#allocation10 + $0x60] sm:$0xf]  ;;  %v7142_v49 = vld [vmem:[#allocation10 + $0x6c] sm:$0xf0]  ;;  %v5237_v50 = vor.u32 %v7147_v44, %v5236_v43 }
  0x5b   : > { %705 = vmatpush.bf16.msra.mxu2 %v5253_v34  ;;  %v7140_v51 = vld [vmem:[#allocation10 + $0x64] sm:$0xf]  ;;  %v5214_v52 = vld [vmem:[#allocation10 + $0x70] sm:$0xf0]  ;;  %v5241_v53 = vor.u32 %v7145_v45, %v5238_v47  ;;  %v5220_v54 = vld [vmem:[#allocation10 + $0x68] sm:$0xf]  ;;  %v5213_v56 = vor.u32 %v7142_v49, %v5212_v48 }
  0x5c   : > { %718 = vmatpush.bf16.msra.mxu3 %v5257_v38  ;;  %v7143_v55 = vld [vmem:[#allocation10 + $0x74] sm:$0xf0]  ;;  %v7141_v57 = vld [vmem:[#allocation10 + $0x6c] sm:$0xf]  ;;  %v5222_v58 = vld [vmem:[#allocation10 + $0x78] sm:$0xf0]  ;;  %v5217_v59 = vor.u32 %v7140_v51, %v5214_v52 }
  0x5d   : > { %680 = vmatpush.bf16.msra.mxu0 %v5229_v42  ;;  %v5196_v60 = vld [vmem:[#allocation10 + $0x40] sm:$0xf]  ;;  %v7138_v61 = vld [vmem:[#allocation10 + $0x4c] sm:$0xf0]  ;;  %v5221_v62 = vor.u32 %v7143_v55, %v5220_v54  ;;  %v7136_v63 = vld [vmem:[#allocation10 + $0x44] sm:$0xf]  ;;  %v5225_v1 = vor.u32 %v7141_v57, %v5222_v58 }
  0x5e   : > { %693 = vmatpush.bf16.msra.mxu1 %v5233_v46  ;;  %v5198_v0 = vld [vmem:[#allocation10 + $0x50] sm:$0xf0]  ;;  %v5204_v2 = vld [vmem:[#allocation10 + $0x48] sm:$0xf]  ;;  %v7139_v3 = vld [vmem:[#allocation10 + $0x54] sm:$0xf0]  ;;  %v5197_v4 = vor.u32 %v7138_v61, %v5196_v60 }
  0x5f   : > { %706 = vmatpush.bf16.msra.mxu2 %v5237_v50  ;;  %v7137_v5 = vld [vmem:[#allocation10 + $0x4c] sm:$0xf]  ;;  %v5206_v6 = vld [vmem:[#allocation10 + $0x58] sm:$0xf0]  ;;  %v5201_v7 = vor.u32 %v7136_v63, %v5198_v0  ;;  %v5180_v8 = vld [vmem:[#allocation10 + $0x20] sm:$0xf]  ;;  %v5205_v10 = vor.u32 %v7139_v3, %v5204_v2 }
  0x60   : > { %719 = vmatpush.bf16.msra.mxu3 %v5241_v53  ;;  %v7134_v9 = vld [vmem:[#allocation10 + $0x2c] sm:$0xf0]  ;;  %v7132_v11 = vld [vmem:[#allocation10 + $0x24] sm:$0xf]  ;;  %v5182_v12 = vld [vmem:[#allocation10 + $0x30] sm:$0xf0]  ;;  %v5209_v13 = vor.u32 %v7137_v5, %v5206_v6 }
  0x61   : > { %681 = vmatpush.bf16.msra.mxu0 %v5213_v56  ;;  %v5188_v14 = vld [vmem:[#allocation10 + $0x28] sm:$0xf]  ;;  %v7135_v15 = vld [vmem:[#allocation10 + $0x34] sm:$0xf0]  ;;  %v5181_v16 = vor.u32 %v7134_v9, %v5180_v8  ;;  %v7133_v17 = vld [vmem:[#allocation10 + $0x2c] sm:$0xf]  ;;  %v5185_v19 = vor.u32 %v7132_v11, %v5182_v12 }
  0x62   : > { %694 = vmatpush.bf16.msra.mxu1 %v5217_v59  ;;  %v5190_v18 = vld [vmem:[#allocation10 + $0x38] sm:$0xf0]  ;;  %v5164_v20 = vld [vmem:[#allocation10] sm:$0xf]  ;;  %v7130_v21 = vld [vmem:[#allocation10 + $0xc] sm:$0xf0]  ;;  %v5189_v22 = vor.u32 %v7135_v15, %v5188_v14 }
  0x63   : > { %707 = vmatpush.bf16.msra.mxu2 %v5221_v62  ;;  %v7128_v23 = vld [vmem:[#allocation10 + $0x4] sm:$0xf]  ;;  %v5166_v24 = vld [vmem:[#allocation10 + $0x10] sm:$0xf0]  ;;  %v5193_v25 = vor.u32 %v7133_v17, %v5190_v18  ;;  %v5172_v26 = vld [vmem:[#allocation10 + $0x8] sm:$0xf]  ;;  %v5165_v28 = vor.u32 %v7130_v21, %v5164_v20 }
  0x64   : > { %720 = vmatpush.bf16.msra.mxu3 %v5225_v1  ;;  %v7131_v27 = vld [vmem:[#allocation10 + $0x14] sm:$0xf0]  ;;  %v7129_v29 = vld [vmem:[#allocation10 + $0xc] sm:$0xf]  ;;  %v5174_v30 = vld [vmem:[#allocation10 + $0x18] sm:$0xf0]  ;;  %v5169_v31 = vor.u32 %v7128_v23, %v5166_v24 }
  0x65   : > { %682 = vmatpush.bf16.msra.mxu0 %v5197_v4  ;;  %v5173_v32 = vor.u32 %v7131_v27, %v5172_v26  ;;  %v5177_v33 = vor.u32 %v7129_v29, %v5174_v30  ;;  %v474_v34 = vld [vmem:[%s8965_s1] sm:$0xf] }
  0x66   : > { %695 = vmatpush.bf16.msra.mxu1 %v5201_v7  ;;  %v507_v35 = vld [vmem:[%s8970_s6] sm:$0xf] }
  0x67   : > { %708 = vmatpush.bf16.msra.mxu2 %v5205_v10  ;;  %v509_v36 = vperm.slane %v507_v35, 0  ;;  %v510_v37 = vperm.slane %v507_v35, 1  ;;  %v511_v42 = vperm.slane %v507_v35, 2  ;;  %v512_v43 = vperm.slane %v507_v35, 3 }
  0x68   : > { %721 = vmatpush.bf16.msra.mxu3 %v5209_v13 }
  0x69   : > { %683 = vmatpush.bf16.msra.mxu0 %v5181_v16 }
  0x6a   : > { %696 = vmatpush.bf16.msra.mxu1 %v5185_v19 }
  0x6b   : > { %709 = vmatpush.bf16.msra.mxu2 %v5189_v22 }
  0x6c   : > { %722 = vmatpush.bf16.msra.mxu3 %v5193_v25 }
  0x6d   : > { %684 = vmatpush.bf16.msra.mxu0 %v5165_v28 }
  0x6e   : > { %697 = vmatpush.bf16.msra.mxu1 %v5169_v31 }
  0x6f   : > { %710 = vmatpush.bf16.msra.mxu2 %v5173_v32 }
  0x70   : > { %723 = vmatpush.bf16.msra.mxu3 %v5177_v33  ;;  %685 = vmatmul.bf16.vlgmr.msra.gmra.mxu0 %v474_v34 }
  0x71   : > { %698 = vmatmul.bf16.vlgmr.msra.gmra.mxu1 %v474_v34 }
  0x72   : > { %711 = vmatmul.bf16.vlgmr.msra.gmra.mxu2 %v474_v34 }
  0x73   : > { %724 = vmatmul.bf16.vlgmr.msra.gmra.mxu3 %v474_v34 }
  0xed   : > { %v686_v38 = vpop.f32.mrf.mxu0 }
  0xee   : > { %v687_v39 = vadd.f32 %v686_v38, %v509_v36  ;;  %v699_v40 = vpop.f32.mrf.mxu1 }
  0xef   : > { %v700_v41 = vadd.f32 %v699_v40, %v510_v37 }
  0xf0   : > { %729 = vst [vmem:[#allocation5 + $0x8] sm:$0xff] %v687_v39 }
  0xf1   : > { %730 = vst [vmem:[#allocation5 + $0x10] sm:$0xff] %v700_v41 }
  0xf5   : > { %v712_v44 = vpop.f32.mrf.mxu2  ;;  %v688_v45 = vpop.f32.mrf.mxu0 }
  0xf6   : > { %v713_v46 = vadd.f32 %v712_v44, %v511_v42  ;;  %v725_v47 = vpop.f32.mrf.mxu3  ;;  %v701_v48 = vpop.f32.mrf.mxu1 }
  0xf7   : > { %v726_v49 = vadd.f32 %v725_v47, %v512_v43 }
  0xf8   : > { %731 = vst [vmem:[#allocation5] sm:$0xff] %v713_v46 }
  0xf9   : > { %732 = vst [vmem:[#allocation5 + $0x18] sm:$0xff] %v726_v49 }
  0xfd   : > { %v714_v50 = vpop.f32.mrf.mxu2 }
  0xfe   : > { %v727_v51 = vpop.f32.mrf.mxu3 }
  0xff PF: > { %v5412_v52 = vld [vmem:[#allocation12 + $0xe0] sm:$0xf]  ;;  %v7192_v53 = vld [vmem:[#allocation12 + $0xec] sm:$0xf0]  ;;  %v7190_v54 = vld [vmem:[#allocation12 + $0xe4] sm:$0xf] }
 0x100   : > { %v5413_v55 = vor.u32 %v7192_v53, %v5412_v52  ;;  %v5414_v56 = vld [vmem:[#allocation12 + $0xf0] sm:$0xf0]  ;;  %v5420_v57 = vld [vmem:[#allocation12 + $0xe8] sm:$0xf]  ;;  %v7193_v58 = vld [vmem:[#allocation12 + $0xf4] sm:$0xf0] }
 0x101   : > { %v5417_v59 = vor.u32 %v7190_v54, %v5414_v56  ;;  %v5421_v60 = vor.u32 %v7193_v58, %v5420_v57  ;;  %v7191_v61 = vld [vmem:[#allocation12 + $0xec] sm:$0xf]  ;;  %v5422_v62 = vld [vmem:[#allocation12 + $0xf8] sm:$0xf0]  ;;  %v5396_v63 = vld [vmem:[#allocation12 + $0xc0] sm:$0xf] }
 0x102   : > { %941 = vmatpush.bf16.msra.mxu0 %v5413_v55  ;;  %v5425_v0 = vor.u32 %v7191_v61, %v5422_v62  ;;  %v7188_v1 = vld [vmem:[#allocation12 + $0xcc] sm:$0xf0]  ;;  %v7186_v2 = vld [vmem:[#allocation12 + $0xc4] sm:$0xf]  ;;  %v5398_v3 = vld [vmem:[#allocation12 + $0xd0] sm:$0xf0] }
 0x103   : > { %960 = vmatpush.bf16.msra.mxu1 %v5417_v59  ;;  %979 = vmatpush.bf16.msra.mxu2 %v5421_v60  ;;  %v5397_v4 = vor.u32 %v7188_v1, %v5396_v63  ;;  %v5401_v5 = vor.u32 %v7186_v2, %v5398_v3  ;;  %v5404_v6 = vld [vmem:[#allocation12 + $0xc8] sm:$0xf]  ;;  %v7189_v7 = vld [vmem:[#allocation12 + $0xd4] sm:$0xf0]  ;;  %v7187_v8 = vld [vmem:[#allocation12 + $0xcc] sm:$0xf] }
 0x104   : > { %998 = vmatpush.bf16.msra.mxu3 %v5425_v0  ;;  %v5405_v9 = vor.u32 %v7189_v7, %v5404_v6  ;;  %v5406_v10 = vld [vmem:[#allocation12 + $0xd8] sm:$0xf0]  ;;  %v5380_v11 = vld [vmem:[#allocation12 + $0xa0] sm:$0xf]  ;;  %v7184_v12 = vld [vmem:[#allocation12 + $0xac] sm:$0xf0] }
 0x105   : > { %v5409_v13 = vor.u32 %v7187_v8, %v5406_v10  ;;  %v7182_v14 = vld [vmem:[#allocation12 + $0xa4] sm:$0xf]  ;;  %v5382_v15 = vld [vmem:[#allocation12 + $0xb0] sm:$0xf0]  ;;  %v5388_v16 = vld [vmem:[#allocation12 + $0xa8] sm:$0xf]  ;;  %v5381_v17 = vor.u32 %v7184_v12, %v5380_v11 }
 0x106   : > { %942 = vmatpush.bf16.msra.mxu0 %v5397_v4  ;;  %v7185_v18 = vld [vmem:[#allocation12 + $0xb4] sm:$0xf0]  ;;  %v7183_v19 = vld [vmem:[#allocation12 + $0xac] sm:$0xf]  ;;  %v5390_v20 = vld [vmem:[#allocation12 + $0xb8] sm:$0xf0]  ;;  %v5385_v21 = vor.u32 %v7182_v14, %v5382_v15 }
 0x107   : > { %961 = vmatpush.bf16.msra.mxu1 %v5401_v5  ;;  %980 = vmatpush.bf16.msra.mxu2 %v5405_v9  ;;  %v5389_v22 = vor.u32 %v7185_v18, %v5388_v16  ;;  %v5364_v23 = vld [vmem:[#allocation12 + $0x80] sm:$0xf]  ;;  %v7180_v24 = vld [vmem:[#allocation12 + $0x8c] sm:$0xf0]  ;;  %v7178_v25 = vld [vmem:[#allocation12 + $0x84] sm:$0xf]  ;;  %v5393_v26 = vor.u32 %v7183_v19, %v5390_v20 }
 0x108   : > { %999 = vmatpush.bf16.msra.mxu3 %v5409_v13  ;;  %v5366_v27 = vld [vmem:[#allocation12 + $0x90] sm:$0xf0]  ;;  %v5372_v28 = vld [vmem:[#allocation12 + $0x88] sm:$0xf]  ;;  %v7181_v29 = vld [vmem:[#allocation12 + $0x94] sm:$0xf0]  ;;  %v5365_v32 = vor.u32 %v7180_v24, %v5364_v23 }
 0x109   : > { %v7179_v30 = vld [vmem:[#allocation12 + $0x8c] sm:$0xf]  ;;  %v5374_v31 = vld [vmem:[#allocation12 + $0x98] sm:$0xf0]  ;;  %v5369_v33 = vor.u32 %v7178_v25, %v5366_v27  ;;  %v5373_v34 = vor.u32 %v7181_v29, %v5372_v28  ;;  %v5348_v35 = vld [vmem:[#allocation12 + $0x60] sm:$0xf] }
 0x10a   : > { %943 = vmatpush.bf16.msra.mxu0 %v5381_v17  ;;  %v7176_v36 = vld [vmem:[#allocation12 + $0x6c] sm:$0xf0]  ;;  %v7174_v37 = vld [vmem:[#allocation12 + $0x64] sm:$0xf]  ;;  %v5377_v38 = vor.u32 %v7179_v30, %v5374_v31  ;;  %v5350_v39 = vld [vmem:[#allocation12 + $0x70] sm:$0xf0] }
 0x10b   : > { %962 = vmatpush.bf16.msra.mxu1 %v5385_v21  ;;  %981 = vmatpush.bf16.msra.mxu2 %v5389_v22  ;;  %v5356_v40 = vld [vmem:[#allocation12 + $0x68] sm:$0xf]  ;;  %v7177_v41 = vld [vmem:[#allocation12 + $0x74] sm:$0xf0]  ;;  %v7175_v42 = vld [vmem:[#allocation12 + $0x6c] sm:$0xf]  ;;  %v5349_v44 = vor.u32 %v7176_v36, %v5348_v35  ;;  %v5353_v45 = vor.u32 %v7174_v37, %v5350_v39 }
 0x10c   : > { %1000 = vmatpush.bf16.msra.mxu3 %v5393_v26  ;;  %v5358_v43 = vld [vmem:[#allocation12 + $0x78] sm:$0xf0]  ;;  %v5357_v46 = vor.u32 %v7177_v41, %v5356_v40  ;;  %v5332_v47 = vld [vmem:[#allocation12 + $0x40] sm:$0xf]  ;;  %v7172_v48 = vld [vmem:[#allocation12 + $0x4c] sm:$0xf0] }
 0x10d   : > { %v7170_v49 = vld [vmem:[#allocation12 + $0x44] sm:$0xf]  ;;  %v5361_v50 = vor.u32 %v7175_v42, %v5358_v43  ;;  %v5334_v51 = vld [vmem:[#allocation12 + $0x50] sm:$0xf0]  ;;  %v5340_v52 = vld [vmem:[#allocation12 + $0x48] sm:$0xf]  ;;  %v5333_v56 = vor.u32 %v7172_v48, %v5332_v47 }
 0x10e   : > { %944 = vmatpush.bf16.msra.mxu0 %v5365_v32  ;;  %v7173_v53 = vld [vmem:[#allocation12 + $0x54] sm:$0xf0]  ;;  %v7171_v54 = vld [vmem:[#allocation12 + $0x4c] sm:$0xf]  ;;  %v5342_v55 = vld [vmem:[#allocation12 + $0x58] sm:$0xf0]  ;;  %v5337_v57 = vor.u32 %v7170_v49, %v5334_v51 }
 0x10f   : > { %963 = vmatpush.bf16.msra.mxu1 %v5369_v33  ;;  %982 = vmatpush.bf16.msra.mxu2 %v5373_v34  ;;  %v5341_v58 = vor.u32 %v7173_v53, %v5340_v52  ;;  %v5316_v59 = vld [vmem:[#allocation12 + $0x20] sm:$0xf]  ;;  %v7168_v60 = vld [vmem:[#allocation12 + $0x2c] sm:$0xf0]  ;;  %v7166_v61 = vld [vmem:[#allocation12 + $0x24] sm:$0xf]  ;;  %v5345_v62 = vor.u32 %v7171_v54, %v5342_v55 }
 0x110   : > { %1001 = vmatpush.bf16.msra.mxu3 %v5377_v38  ;;  %v5318_v63 = vld [vmem:[#allocation12 + $0x30] sm:$0xf0]  ;;  %v5324_v0 = vld [vmem:[#allocation12 + $0x28] sm:$0xf]  ;;  %v7169_v1 = vld [vmem:[#allocation12 + $0x34] sm:$0xf0]  ;;  %v5317_v4 = vor.u32 %v7168_v60, %v5316_v59 }
 0x111   : > { %v7167_v2 = vld [vmem:[#allocation12 + $0x2c] sm:$0xf]  ;;  %v5326_v3 = vld [vmem:[#allocation12 + $0x38] sm:$0xf0]  ;;  %v5300_v5 = vld [vmem:[#allocation12] sm:$0xf]  ;;  %v5321_v6 = vor.u32 %v7166_v61, %v5318_v63  ;;  %v5325_v7 = vor.u32 %v7169_v1, %v5324_v0 }
 0x112   : > { %945 = vmatpush.bf16.msra.mxu0 %v5349_v44  ;;  %v7164_v8 = vld [vmem:[#allocation12 + $0xc] sm:$0xf0]  ;;  %v7162_v9 = vld [vmem:[#allocation12 + $0x4] sm:$0xf]  ;;  %v5302_v10 = vld [vmem:[#allocation12 + $0x10] sm:$0xf0]  ;;  %v5329_v11 = vor.u32 %v7167_v2, %v5326_v3 }
 0x113   : > { %964 = vmatpush.bf16.msra.mxu1 %v5353_v45  ;;  %983 = vmatpush.bf16.msra.mxu2 %v5357_v46  ;;  %v5308_v12 = vld [vmem:[#allocation12 + $0x8] sm:$0xf]  ;;  %v7165_v13 = vld [vmem:[#allocation12 + $0x14] sm:$0xf0]  ;;  %v7163_v14 = vld [vmem:[#allocation12 + $0xc] sm:$0xf]  ;;  %v5301_v18 = vor.u32 %v7164_v8, %v5300_v5  ;;  %v5305_v21 = vor.u32 %v7162_v9, %v5302_v10 }
 0x114   : > { %1002 = vmatpush.bf16.msra.mxu3 %v5361_v50  ;;  %v5310_v15 = vld [vmem:[#allocation12 + $0x18] sm:$0xf0]  ;;  %v5541_v16 = vld [vmem:[#allocation13 + $0xe0] sm:$0xf]  ;;  %v7224_v17 = vld [vmem:[#allocation13 + $0xec] sm:$0xf0]  ;;  %v5309_v22 = vor.u32 %v7165_v13, %v5308_v12 }
 0x115   : > { %v7222_v19 = vld [vmem:[#allocation13 + $0xe4] sm:$0xf]  ;;  %v5543_v20 = vld [vmem:[#allocation13 + $0xf0] sm:$0xf0]  ;;  %v5313_v24 = vor.u32 %v7163_v14, %v5310_v15  ;;  %v5542_v25 = vor.u32 %v7224_v17, %v5541_v16  ;;  %v5549_v26 = vld [vmem:[#allocation13 + $0xe8] sm:$0xf] }
 0x116   : > { %946 = vmatpush.bf16.msra.mxu0 %v5333_v56  ;;  %v7160_v23 = vld [vmem:[%s8323_s29] sm:$0xff]  ;;  %v7225_v27 = vld [vmem:[#allocation13 + $0xf4] sm:$0xf0]  ;;  %v7223_v28 = vld [vmem:[#allocation13 + $0xec] sm:$0xf]  ;;  %v5546_v29 = vor.u32 %v7222_v19, %v5543_v20  ;;  %s8496_s5 = sshll.u32 %s8219_s20, 2 }
 0x117   : > { %965 = vmatpush.bf16.msra.mxu1 %v5337_v57  ;;  %984 = vmatpush.bf16.msra.mxu2 %v5341_v58  ;;  %v5551_v30 = vld [vmem:[#allocation13 + $0xf8] sm:$0xf0]  ;;  %v5525_v31 = vld [vmem:[#allocation13 + $0xc0] sm:$0xf]  ;;  %v7220_v32 = vld [vmem:[#allocation13 + $0xcc] sm:$0xf0]  ;;  %v5550_v35 = vor.u32 %v7225_v27, %v5549_v26 }
 0x118   : > { %1003 = vmatpush.bf16.msra.mxu3 %v5345_v62  ;;  %v7218_v33 = vld [vmem:[#allocation13 + $0xc4] sm:$0xf]  ;;  %v5527_v34 = vld [vmem:[#allocation13 + $0xd0] sm:$0xf0]  ;;  %v5554_v36 = vor.u32 %v7223_v28, %v5551_v30  ;;  %v5526_v37 = vor.u32 %v7220_v32, %v5525_v31  ;;  %v5533_v38 = vld [vmem:[#allocation13 + $0xc8] sm:$0xf] }
 0x119   : > { %v7221_v39 = vld [vmem:[#allocation13 + $0xd4] sm:$0xf0]  ;;  %v7219_v40 = vld [vmem:[#allocation13 + $0xcc] sm:$0xf]  ;;  %v5530_v41 = vor.u32 %v7218_v33, %v5527_v34  ;;  %v5535_v42 = vld [vmem:[#allocation13 + $0xd8] sm:$0xf0] }
 0x11a   : > { %947 = vmatpush.bf16.msra.mxu0 %v5317_v4  ;;  %v5509_v43 = vld [vmem:[#allocation13 + $0xa0] sm:$0xf]  ;;  %v7216_v44 = vld [vmem:[#allocation13 + $0xac] sm:$0xf0]  ;;  %v7214_v45 = vld [vmem:[#allocation13 + $0xa4] sm:$0xf]  ;;  %v5534_v47 = vor.u32 %v7221_v39, %v5533_v38  ;;  %v5538_v48 = vor.u32 %v7219_v40, %v5535_v42 }
 0x11b   : > { %966 = vmatpush.bf16.msra.mxu1 %v5321_v6  ;;  %985 = vmatpush.bf16.msra.mxu2 %v5325_v7  ;;  %v5511_v46 = vld [vmem:[#allocation13 + $0xb0] sm:$0xf0]  ;;  %v5510_v49 = vor.u32 %v7216_v44, %v5509_v43  ;;  %v5517_v50 = vld [vmem:[#allocation13 + $0xa8] sm:$0xf]  ;;  %v7217_v51 = vld [vmem:[#allocation13 + $0xb4] sm:$0xf0] }
 0x11c   : > { %1004 = vmatpush.bf16.msra.mxu3 %v5329_v11  ;;  %v7215_v52 = vld [vmem:[#allocation13 + $0xac] sm:$0xf]  ;;  %v5514_v53 = vor.u32 %v7214_v45, %v5511_v46  ;;  %v5519_v54 = vld [vmem:[#allocation13 + $0xb8] sm:$0xf0]  ;;  %v5493_v55 = vld [vmem:[#allocation13 + $0x80] sm:$0xf]  ;;  %v5518_v59 = vor.u32 %v7217_v51, %v5517_v50 }
 0x11d   : > { %v7212_v56 = vld [vmem:[#allocation13 + $0x8c] sm:$0xf0]  ;;  %v7210_v57 = vld [vmem:[#allocation13 + $0x84] sm:$0xf]  ;;  %v5495_v58 = vld [vmem:[#allocation13 + $0x90] sm:$0xf0]  ;;  %v5522_v60 = vor.u32 %v7215_v52, %v5519_v54 }
 0x11e   : > { %948 = vmatpush.bf16.msra.mxu0 %v5301_v18  ;;  %v5494_v61 = vor.u32 %v7212_v56, %v5493_v55  ;;  %v5501_v62 = vld [vmem:[#allocation13 + $0x88] sm:$0xf]  ;;  %v7213_v63 = vld [vmem:[#allocation13 + $0x94] sm:$0xf0]  ;;  %v7211_v0 = vld [vmem:[#allocation13 + $0x8c] sm:$0xf]  ;;  %v5498_v1 = vor.u32 %v7210_v57, %v5495_v58 }
 0x11f   : > { %967 = vmatpush.bf16.msra.mxu1 %v5305_v21  ;;  %986 = vmatpush.bf16.msra.mxu2 %v5309_v22  ;;  %v5503_v2 = vld [vmem:[#allocation13 + $0x98] sm:$0xf0]  ;;  %v5477_v3 = vld [vmem:[#allocation13 + $0x60] sm:$0xf]  ;;  %v7208_v4 = vld [vmem:[#allocation13 + $0x6c] sm:$0xf0]  ;;  %v5502_v7 = vor.u32 %v7213_v63, %v5501_v62 }
 0x120   : > { %1005 = vmatpush.bf16.msra.mxu3 %v5313_v24  ;;  %v7206_v5 = vld [vmem:[#allocation13 + $0x64] sm:$0xf]  ;;  %v5479_v6 = vld [vmem:[#allocation13 + $0x70] sm:$0xf0]  ;;  %v7161_v8 = vld [vmem:[%s8323_s29 + $0x8] sm:$0xff]  ;;  %v5506_v9 = vor.u32 %v7211_v0, %v5503_v2  ;;  %v5478_v10 = vor.u32 %v7208_v4, %v5477_v3  ;;  %s2026_s19 = sadd.s32 1, %s8496_s5 }
 0x121   : > { %949 = vmatmul.bf16.vlgmr.msra.gmra.mxu0 %v7160_v23  ;;  %v5485_v11 = vld [vmem:[#allocation13 + $0x68] sm:$0xf]  ;;  %v7209_v12 = vld [vmem:[#allocation13 + $0x74] sm:$0xf0]  ;;  %v7207_v13 = vld [vmem:[#allocation13 + $0x6c] sm:$0xf]  ;;  %v5482_v14 = vor.u32 %v7206_v5, %v5479_v6 }
 0x122   : > { %1240 = vmatpush.bf16.msrb.mxu0 %v5542_v25  ;;  %968 = vmatmul.bf16.vlgmr.msra.gmra.mxu1 %v7160_v23  ;;  %v5487_v15 = vld [vmem:[#allocation13 + $0x78] sm:$0xf0]  ;;  %v5461_v16 = vld [vmem:[#allocation13 + $0x40] sm:$0xf]  ;;  %v7204_v17 = vld [vmem:[#allocation13 + $0x4c] sm:$0xf0]  ;;  %v5486_v20 = vor.u32 %v7209_v12, %v5485_v11 }
 0x123   : > { %1253 = vmatpush.bf16.msrb.mxu1 %v5546_v29  ;;  %987 = vmatmul.bf16.vlgmr.msra.gmra.mxu2 %v7160_v23  ;;  %v7202_v18 = vld [vmem:[#allocation13 + $0x44] sm:$0xf]  ;;  %v5463_v19 = vld [vmem:[#allocation13 + $0x50] sm:$0xf0]  ;;  %v5490_v21 = vor.u32 %v7207_v13, %v5487_v15  ;;  %v5462_v22 = vor.u32 %v7204_v17, %v5461_v16  ;;  %v7205_v24 = vld [vmem:[#allocation13 + $0x54] sm:$0xf0] }
 0x124   : > { %1006 = vmatmul.bf16.vlgmr.msra.gmra.mxu3 %v7160_v23  ;;  %1266 = vmatpush.bf16.msrb.mxu2 %v5550_v35  ;;  %v5469_v23 = vld [vmem:[#allocation13 + $0x48] sm:$0xf]  ;;  %v7203_v25 = vld [vmem:[#allocation13 + $0x4c] sm:$0xf]  ;;  %v5466_v26 = vor.u32 %v7202_v18, %v5463_v19  ;;  %v5471_v27 = vld [vmem:[#allocation13 + $0x58] sm:$0xf0] }
 0x125   : > { %1279 = vmatpush.bf16.msrb.mxu3 %v5554_v36  ;;  %v5445_v28 = vld [vmem:[#allocation13 + $0x20] sm:$0xf]  ;;  %v7200_v29 = vld [vmem:[#allocation13 + $0x2c] sm:$0xf0]  ;;  %v7198_v30 = vld [vmem:[#allocation13 + $0x24] sm:$0xf]  ;;  %v5470_v32 = vor.u32 %v7205_v24, %v5469_v23  ;;  %v5474_v33 = vor.u32 %v7203_v25, %v5471_v27 }
 0x126   : > { %1241 = vmatpush.bf16.msrb.mxu0 %v5526_v37  ;;  %v5447_v31 = vld [vmem:[#allocation13 + $0x30] sm:$0xf0]  ;;  %v5446_v34 = vor.u32 %v7200_v29, %v5445_v28  ;;  %v5453_v35 = vld [vmem:[#allocation13 + $0x28] sm:$0xf]  ;;  %v7201_v36 = vld [vmem:[#allocation13 + $0x34] sm:$0xf0] }
 0x127   : > { %1254 = vmatpush.bf16.msrb.mxu1 %v5530_v41  ;;  %v7199_v37 = vld [vmem:[#allocation13 + $0x2c] sm:$0xf]  ;;  %v5450_v38 = vor.u32 %v7198_v30, %v5447_v31  ;;  %v5455_v39 = vld [vmem:[#allocation13 + $0x38] sm:$0xf0]  ;;  %v5429_v40 = vld [vmem:[#allocation13] sm:$0xf]  ;;  %v5454_v44 = vor.u32 %v7201_v36, %v5453_v35 }
 0x128   : > { %1267 = vmatpush.bf16.msrb.mxu2 %v5534_v47  ;;  %v7196_v41 = vld [vmem:[#allocation13 + $0xc] sm:$0xf0]  ;;  %v7194_v42 = vld [vmem:[#allocation13 + $0x4] sm:$0xf]  ;;  %v5431_v43 = vld [vmem:[#allocation13 + $0x10] sm:$0xf0]  ;;  %v5458_v45 = vor.u32 %v7199_v37, %v5455_v39 }
 0x129   : > { %1280 = vmatpush.bf16.msrb.mxu3 %v5538_v48  ;;  %v5430_v46 = vor.u32 %v7196_v41, %v5429_v40  ;;  %v5437_v47 = vld [vmem:[#allocation13 + $0x8] sm:$0xf]  ;;  %v7197_v48 = vld [vmem:[#allocation13 + $0x14] sm:$0xf0]  ;;  %v7195_v50 = vld [vmem:[#allocation13 + $0xc] sm:$0xf] }
 0x12a   : > { %1242 = vmatpush.bf16.msrb.mxu0 %v5510_v49  ;;  %v5434_v49 = vor.u32 %v7194_v42, %v5431_v43  ;;  %v5439_v51 = vld [vmem:[#allocation13 + $0x18] sm:$0xf0]  ;;  %v5438_v52 = vor.u32 %v7197_v48, %v5437_v47  ;;  %v1047_v54 = vld [vmem:[#allocation2] sm:$0xf]  ;;  %v5800_v56 = vld [vmem:[#allocation15 + $0x1e0] sm:$0xf] }
 0x12b   : > { %1255 = vmatpush.bf16.msrb.mxu1 %v5514_v53  ;;  %v5442_v53 = vor.u32 %v7195_v50, %v5439_v51  ;;  %v7288_v57 = vld [vmem:[#allocation15 + $0x1ec] sm:$0xf0]  ;;  %v7254_v58 = vld [vmem:[#allocation15 + $0xe4] sm:$0xf]  ;;  %v5802_v63 = vld [vmem:[#allocation15 + $0x1f0] sm:$0xf0] }
 0x12c   : > { %1268 = vmatpush.bf16.msrb.mxu2 %v5518_v59  ;;  %v7286_v62 = vld [vmem:[#allocation15 + $0x1e4] sm:$0xf]  ;;  %v5784_v2 = vld [vmem:[#allocation15 + $0x1c0] sm:$0xf]  ;;  %v7284_v3 = vld [vmem:[#allocation15 + $0x1cc] sm:$0xf0] }
 0x12d   : > { %1281 = vmatpush.bf16.msrb.mxu3 %v5522_v60  ;;  %v5801_v60 = vor.u32 %v7288_v57, %v5800_v56  ;;  %v7250_v4 = vld [vmem:[#allocation15 + $0xc4] sm:$0xf]  ;;  %v5785_v5 = vor.u32 %v7284_v3, %v5784_v2  ;;  %v5658_v6 = vld [vmem:[#allocation15 + $0xd0] sm:$0xf0]  ;;  %v7280_v15 = vld [vmem:[#allocation15 + $0x1ac] sm:$0xf0] }
 0x12e   : > { %1243 = vmatpush.bf16.msrb.mxu0 %v5494_v61  ;;  %v5674_v61 = vld [vmem:[#allocation15 + $0xf0] sm:$0xf0]  ;;  %v7246_v16 = vld [vmem:[#allocation15 + $0xa4] sm:$0xf]  ;;  %v5752_v24 = vld [vmem:[#allocation15 + $0x180] sm:$0xf] }
 0x12f   : > { %1256 = vmatpush.bf16.msrb.mxu1 %v5498_v1  ;;  %v5677_v0 = vor.u32 %v7254_v58, %v5674_v61  ;;  %v5805_v1 = vor.u32 %v7286_v62, %v5802_v63  ;;  %v5642_v19 = vld [vmem:[#allocation15 + $0xb0] sm:$0xf0]  ;;  %v7276_v25 = vld [vmem:[#allocation15 + $0x18c] sm:$0xf0]  ;;  %v7274_v29 = vld [vmem:[#allocation15 + $0x184] sm:$0xf] }
 0x130   : > { %1269 = vmatpush.bf16.msrb.mxu2 %v5502_v7  ;;  %v7282_v7 = vld [vmem:[#allocation15 + $0x1c4] sm:$0xf]  ;;  %v5753_v27 = vor.u32 %v7276_v25, %v5752_v24  ;;  %v5626_v28 = vld [vmem:[#allocation15 + $0x90] sm:$0xf0]  ;;  %v8366_v35 = vld [vmem:[#allocation5 + $0x8] sm:$0xff]  ;;  %s3019_s27 = sadd.s32 2, %s8496_s5 }
 0x131   : > { %1282 = vmatpush.bf16.msrb.mxu3 %v5506_v9  ;;  %954 = vmatmul.bf16.gmra.mxu0 %v7161_v8  ;;  %v5661_v9 = vor.u32 %v7250_v4, %v5658_v6  ;;  %v5754_v30 = vld [vmem:[#allocation15 + $0x190] sm:$0xf0]  ;;  %v5736_v41 = vld [vmem:[#allocation15 + $0x160] sm:$0xf]  ;;  %v7272_v42 = vld [vmem:[#allocation15 + $0x16c] sm:$0xf0] }
 0x132   : > { %1244 = vmatpush.bf16.msrb.mxu0 %v5478_v10  ;;  %973 = vmatmul.bf16.gmra.mxu1 %v7161_v8  ;;  %v8368_v36 = vld [vmem:[#allocation5 + $0x10] sm:$0xff]  ;;  %v7238_v43 = vld [vmem:[#allocation15 + $0x64] sm:$0xf]  ;;  %v5720_v57 = vld [vmem:[#allocation15 + $0x140] sm:$0xf]  ;;  %s4012_s24 = sadd.s32 3, %s8496_s5 }
 0x133   : > { %1257 = vmatpush.bf16.msrb.mxu1 %v5482_v14  ;;  %992 = vmatmul.bf16.gmra.mxu2 %v7161_v8  ;;  %v5768_v14 = vld [vmem:[#allocation15 + $0x1a0] sm:$0xf]  ;;  %v5610_v47 = vld [vmem:[#allocation15 + $0x70] sm:$0xf0]  ;;  %v7270_v48 = vld [vmem:[#allocation15 + $0x164] sm:$0xf] }
 0x134   : > { %1011 = vmatmul.bf16.gmra.mxu3 %v7161_v8  ;;  %1270 = vmatpush.bf16.msrb.mxu2 %v5486_v20  ;;  %v5786_v8 = vld [vmem:[#allocation15 + $0x1d0] sm:$0xf0]  ;;  %v5769_v18 = vor.u32 %v7280_v15, %v5768_v14  ;;  %v7278_v20 = vld [vmem:[#allocation15 + $0x1a4] sm:$0xf]  ;;  %v5613_v51 = vor.u32 %v7238_v43, %v5610_v47  ;;  %v7268_v58 = vld [vmem:[#allocation15 + $0x14c] sm:$0xf0] }
 0x135   : > { %1283 = vmatpush.bf16.msrb.mxu3 %v5490_v21  ;;  %v5789_v10 = vor.u32 %v7282_v7, %v5786_v8  ;;  %v5770_v21 = vld [vmem:[#allocation15 + $0x1b0] sm:$0xf0]  ;;  %v5721_v61 = vor.u32 %v7268_v58, %v5720_v57  ;;  %v7266_v63 = vld [vmem:[#allocation15 + $0x144] sm:$0xf]  ;;  %v5640_v3 = vld [vmem:[#allocation15 + $0xa0] sm:$0xf] }
 0x136   : > { %1245 = vmatpush.bf16.msrb.mxu0 %v5462_v22  ;;  %v5645_v22 = vor.u32 %v7246_v16, %v5642_v19  ;;  %v5773_v23 = vor.u32 %v7278_v20, %v5770_v21  ;;  %v5594_v62 = vld [vmem:[#allocation15 + $0x50] sm:$0xf0]  ;;  %v7248_v4 = vld [vmem:[#allocation15 + $0xac] sm:$0xf0]  ;;  %v8382_v6 = vld [vmem:[#allocation5 + $0x18] sm:$0xff]  ;;  %s5018_s29 = sshll.u32 %s8342_s30, 4  ;;  %s5019_s29 = int_to_ptr.vmem [resolvable:$true] %s5018_s29 }
 0x137   : > { %1258 = vmatpush.bf16.msrb.mxu1 %v5466_v26  ;;  %v7242_v26 = vld [vmem:[#allocation15 + $0x84] sm:$0xf]  ;;  %v5641_v8 = vor.u32 %v7248_v4, %v5640_v3  ;;  %v5704_v15 = vld [vmem:[#allocation15 + $0x120] sm:$0xf]  ;;  %v7264_v16 = vld [vmem:[#allocation15 + $0x12c] sm:$0xf0] }
 0x138   : > { %1271 = vmatpush.bf16.msrb.mxu2 %v5470_v32  ;;  %v5629_v31 = vor.u32 %v7242_v26, %v5626_v28  ;;  %v5757_v32 = vor.u32 %v7274_v29, %v5754_v30  ;;  %v5705_v21 = vor.u32 %v7264_v16, %v5704_v15  ;;  %v5706_v24 = vld [vmem:[#allocation15 + $0x130] sm:$0xf0]  ;;  %v7244_v28 = vld [vmem:[#allocation15 + $0x8c] sm:$0xf0]  ;;  %v5688_v30 = vld [vmem:[#allocation15 + $0x100] sm:$0xf] }
 0x139   : > { %1284 = vmatpush.bf16.msrb.mxu3 %v5474_v33  ;;  %v5672_v33 = vld [vmem:[#allocation15 + $0xe0] sm:$0xf]  ;;  %v5792_v3 = vld [vmem:[#allocation15 + $0x1c8] sm:$0xf]  ;;  %s5006_s11 = scalar_lea.sflag [#allocation9], %s8319_s28  ;;  %s8065_s26 = scalar_lea.hbm %s8974_s10, 64 }
 0x13a   : > { %1246 = vmatpush.bf16.msrb.mxu0 %v5446_v34  ;;  %v7256_v34 = vld [vmem:[#allocation15 + $0xec] sm:$0xf0]  ;;  %v5608_v43 = vld [vmem:[#allocation15 + $0x60] sm:$0xf] }
 0x13b   : > { %1259 = vmatpush.bf16.msrb.mxu1 %v5450_v38  ;;  %v5673_v38 = vor.u32 %v7256_v34, %v5672_v33  ;;  %v5562_v34 = vld [vmem:[#allocation15 + $0x10] sm:$0xf0] }
 0x13c   : > { %1272 = vmatpush.bf16.msrb.mxu2 %v5454_v44 }
 0x13d   : > { %1285 = vmatpush.bf16.msrb.mxu3 %v5458_v45 }
 0x13e   : > { %1247 = vmatpush.bf16.msrb.mxu0 %v5430_v46  ;;  %v5737_v46 = vor.u32 %v7272_v42, %v5736_v41 }
 0x13f   : > { %1260 = vmatpush.bf16.msrb.mxu1 %v5434_v49  ;;  %v5738_v49 = vld [vmem:[#allocation15 + $0x170] sm:$0xf0] }
 0x140   : > { %1273 = vmatpush.bf16.msrb.mxu2 %v5438_v52  ;;  %v5741_v52 = vor.u32 %v7270_v48, %v5738_v49 }
 0x141   : > { %1286 = vmatpush.bf16.msrb.mxu3 %v5442_v53  ;;  %1248 = vmatmul.bf16.vlgmr.msrb.gmra.mxu0 %v1047_v54  ;;  %v5656_v53 = vld [vmem:[#allocation15 + $0xc0] sm:$0xf] }
 0x142   : > { %1261 = vmatmul.bf16.vlgmr.msrb.gmra.mxu1 %v1047_v54  ;;  %1766 = vmatpush.bf16.msra.mxu0 %v5673_v38  ;;  %v7258_v38 = vld [vmem:[#allocation15 + $0x104] sm:$0xf] }
 0x143   : > { %1274 = vmatmul.bf16.vlgmr.msrb.gmra.mxu2 %v1047_v54  ;;  %1779 = vmatpush.bf16.msra.mxu1 %v5801_v60  ;;  %v7234_v60 = vld [vmem:[#allocation15 + $0x44] sm:$0xf] }
 0x144   : > { %1287 = vmatmul.bf16.vlgmr.msrb.gmra.mxu3 %v1047_v54  ;;  %1792 = vmatpush.bf16.msra.mxu2 %v5677_v0  ;;  %v7252_v54 = vld [vmem:[#allocation15 + $0xcc] sm:$0xf0]  ;;  %v5722_v0 = vld [vmem:[#allocation15 + $0x150] sm:$0xf0] }
 0x145   : > { %1805 = vmatpush.bf16.msra.mxu3 %v5805_v1  ;;  %v5657_v56 = vor.u32 %v7252_v54, %v5656_v53  ;;  %v5597_v1 = vor.u32 %v7234_v60, %v5594_v62  ;;  %v5725_v2 = vor.u32 %v7266_v63, %v5722_v0  ;;  %v5682_v53 = vld [vmem:[#allocation15 + $0xf8] sm:$0xf0] }
 0x146   : > { %v5810_v62 = vld [vmem:[#allocation15 + $0x1f8] sm:$0xf0] }
 0x147   : > { %1780 = vmatpush.bf16.msra.mxu1 %v5785_v5  ;;  %1767 = vmatpush.bf16.msra.mxu0 %v5657_v56  ;;  %v8380_v5 = vld [vmem:[#allocation5] sm:$0xff] }
 0x148   : > { %1793 = vmatpush.bf16.msra.mxu2 %v5661_v9 }
 0x149   : > { %1806 = vmatpush.bf16.msra.mxu3 %v5789_v10 }
 0x14b   : > { %1781 = vmatpush.bf16.msra.mxu1 %v5769_v18  ;;  %v7230_v18 = vld [vmem:[#allocation15 + $0x24] sm:$0xf]  ;;  %1768 = vmatpush.bf16.msra.mxu0 %v5641_v8  ;;  %v5666_v8 = vld [vmem:[#allocation15 + $0xd8] sm:$0xf0] }
 0x14c   : > { %1794 = vmatpush.bf16.msra.mxu2 %v5645_v22  ;;  %v5578_v22 = vld [vmem:[#allocation15 + $0x30] sm:$0xf0] }
 0x14d   : > { %1807 = vmatpush.bf16.msra.mxu3 %v5773_v23  ;;  %v7262_v23 = vld [vmem:[#allocation15 + $0x124] sm:$0xf]  ;;  %v5581_v25 = vor.u32 %v7230_v18, %v5578_v22  ;;  %v7283_v18 = vld [vmem:[#allocation15 + $0x1cc] sm:$0xf] }
 0x14e   : > { %v5709_v26 = vor.u32 %v7262_v23, %v5706_v24  ;;  %v5576_v24 = vld [vmem:[#allocation15 + $0x20] sm:$0xf] }
 0x14f   : > { %1782 = vmatpush.bf16.msra.mxu1 %v5753_v27  ;;  %v5624_v27 = vld [vmem:[#allocation15 + $0x80] sm:$0xf] }
 0x150   : > { %1795 = vmatpush.bf16.msra.mxu2 %v5629_v31  ;;  %v5625_v29 = vor.u32 %v7244_v28, %v5624_v27  ;;  %v7260_v31 = vld [vmem:[#allocation15 + $0x10c] sm:$0xf0] }
 0x151   : > { %1808 = vmatpush.bf16.msra.mxu3 %v5757_v32  ;;  %v7226_v32 = vld [vmem:[#allocation15 + $0x4] sm:$0xf]  ;;  %v5689_v33 = vor.u32 %v7260_v31, %v5688_v30  ;;  %v7247_v30 = vld [vmem:[#allocation15 + $0xac] sm:$0xf]  ;;  %v5650_v31 = vld [vmem:[#allocation15 + $0xb8] sm:$0xf0] }
 0x152   : > { %1769 = vmatpush.bf16.msra.mxu0 %v5625_v29  ;;  %v5565_v41 = vor.u32 %v7226_v32, %v5562_v34  ;;  %v7281_v29 = vld [vmem:[#allocation15 + $0x1b4] sm:$0xf0]  ;;  %v5653_v34 = vor.u32 %v7247_v30, %v5650_v31  ;;  %v5728_v31 = vld [vmem:[#allocation15 + $0x148] sm:$0xf] }
 0x153   : > { %1783 = vmatpush.bf16.msra.mxu1 %v5737_v46  ;;  %v5808_v46 = vld [vmem:[#allocation15 + $0x1e8] sm:$0xf] }
 0x154   : > { %1796 = vmatpush.bf16.msra.mxu2 %v5613_v51  ;;  %v7289_v51 = vld [vmem:[#allocation15 + $0x1f4] sm:$0xf0] }
 0x155   : > { %1809 = vmatpush.bf16.msra.mxu3 %v5741_v52  ;;  %v7255_v52 = vld [vmem:[#allocation15 + $0xec] sm:$0xf]  ;;  %v5809_v58 = vor.u32 %v7289_v51, %v5808_v46 }
 0x156   : > { %v5685_v60 = vor.u32 %v7255_v52, %v5682_v53  ;;  %v7277_v52 = vld [vmem:[#allocation15 + $0x194] sm:$0xf0]  ;;  %v7243_v53 = vld [vmem:[#allocation15 + $0x8c] sm:$0xf] }
 0x157   : > { %1784 = vmatpush.bf16.msra.mxu1 %v5721_v61  ;;  %v7287_v61 = vld [vmem:[#allocation15 + $0x1ec] sm:$0xf] }
 0x158   : > { %1797 = vmatpush.bf16.msra.mxu2 %v5597_v1  ;;  %v5813_v0 = vor.u32 %v7287_v61, %v5810_v62  ;;  %v5592_v1 = vld [vmem:[#allocation15 + $0x40] sm:$0xf]  ;;  %v5762_v61 = vld [vmem:[#allocation15 + $0x198] sm:$0xf0] }
 0x159   : > { %1810 = vmatpush.bf16.msra.mxu3 %v5725_v2  ;;  %v7236_v2 = vld [vmem:[#allocation15 + $0x4c] sm:$0xf0] }
 0x15b   : > { %1785 = vmatpush.bf16.msra.mxu1 %v5705_v21  ;;  %v5794_v21 = vld [vmem:[#allocation15 + $0x1d8] sm:$0xf0] }
 0x15c   : > { %1798 = vmatpush.bf16.msra.mxu2 %v5581_v25  ;;  %v5797_v23 = vor.u32 %v7283_v18, %v5794_v21  ;;  %v7232_v25 = vld [vmem:[#allocation15 + $0x2c] sm:$0xf0] }
 0x15d   : > { %1811 = vmatpush.bf16.msra.mxu3 %v5709_v26  ;;  %v5776_v26 = vld [vmem:[#allocation15 + $0x1a8] sm:$0xf]  ;;  %v5577_v28 = vor.u32 %v7232_v25, %v5576_v24 }
 0x15f   : > { %1786 = vmatpush.bf16.msra.mxu1 %v5689_v33  ;;  %v5777_v33 = vor.u32 %v7281_v29, %v5776_v26  ;;  %v5664_v26 = vld [vmem:[#allocation15 + $0xc8] sm:$0xf] }
 0x160   : > { %1799 = vmatpush.bf16.msra.mxu2 %v5565_v41 }
 0x163   : > { %1831 = vmatpush.bf16.msrb.mxu1 %v5809_v58  ;;  %v5634_v58 = vld [vmem:[#allocation15 + $0x98] sm:$0xf0] }
 0x164   : > { %1844 = vmatpush.bf16.msrb.mxu2 %v5685_v60  ;;  %v7275_v60 = vld [vmem:[#allocation15 + $0x18c] sm:$0xf] }
 0x19e   : > { %v8354_v55 = vpop.f32.mrf.mxu0 }
 0x19f   : > { %v8356_v59 = vpop.f32.mrf.mxu1  ;;  %v1043_v47 = vadd.f32 %v8366_v35, %v8354_v55 }
 0x1a0   : > { %v1044_v54 = vadd.f32 %v8368_v36, %v8356_v59  ;;  %v5593_v59 = vor.u32 %v7236_v2, %v5592_v1  ;;  %v5680_v1 = vld [vmem:[#allocation15 + $0xe8] sm:$0xf]  ;;  %v7257_v2 = vld [vmem:[#allocation15 + $0xf4] sm:$0xf0] }
 0x1a6   : > { %v8358_v11 = vpop.f32.mrf.mxu2  ;;  %v8362_v13 = vpop.f32.mrf.mxu0 }
 0x1a7   : > { %v8360_v12 = vpop.f32.mrf.mxu3  ;;  %v8364_v17 = vpop.f32.mrf.mxu1  ;;  %v1045_v27 = vadd.f32 %v8380_v5, %v8358_v11  ;;  %v5560_v11 = vld [vmem:[#allocation15] sm:$0xf] }
 0x1ae   : > { %v8370_v37 = vpop.f32.mrf.mxu2  ;;  %v955_v40 = vpop.f32.mrf.mxu0 }
 0x1af   : > { %v8372_v39 = vpop.f32.mrf.mxu3  ;;  %v8375_v44 = vadd.f32 %v8366_v35, %v955_v40  ;;  %v974_v45 = vpop.f32.mrf.mxu1  ;;  %v5690_v40 = vld [vmem:[#allocation15 + $0x110] sm:$0xf0] }
 0x1b0   : > { %v8378_v50 = vadd.f32 %v8368_v36, %v974_v45  ;;  %v5693_v42 = vor.u32 %v7258_v38, %v5690_v40  ;;  %v7240_v45 = vld [vmem:[#allocation15 + $0x6c] sm:$0xf0]  ;;  %v7285_v36 = vld [vmem:[#allocation15 + $0x1d4] sm:$0xf0]  ;;  %v7279_v38 = vld [vmem:[#allocation15 + $0x1ac] sm:$0xf] }
 0x1b1   : > { %v5609_v49 = vor.u32 %v7240_v45, %v5608_v43  ;;  %v5793_v15 = vor.u32 %v7285_v36, %v5792_v3  ;;  %v5778_v40 = vld [vmem:[#allocation15 + $0x1b8] sm:$0xf0]  ;;  %v7273_v36 = vld [vmem:[#allocation15 + $0x174] sm:$0xf0] }
 0x1b2   : > { %1812 = vmatpush.bf16.msra.mxu3 %v5693_v42  ;;  %v5781_v45 = vor.u32 %v7279_v38, %v5778_v40  ;;  %v7267_v38 = vld [vmem:[#allocation15 + $0x14c] sm:$0xf] }
 0x1b3   : > { %1770 = vmatpush.bf16.msra.mxu0 %v5609_v49  ;;  %1832 = vmatpush.bf16.msrb.mxu1 %v5793_v15  ;;  %v1046_v15 = vadd.f32 %v8382_v6, %v8360_v12 }
 0x1b6   : > { %v993_v7 = vpop.f32.mrf.mxu2  ;;  %v8387_v14 = vpop.f32.mrf.mxu0  ;;  %1857 = vmatpush.bf16.msrb.mxu3 %v5813_v0  ;;  %v5765_v0 = vor.u32 %v7275_v60, %v5762_v61 }
 0x1b7   : > { %v8385_v9 = vadd.f32 %v8380_v5, %v993_v7  ;;  %v1012_v10 = vpop.f32.mrf.mxu3  ;;  %v8392_v20 = vpop.f32.mrf.mxu1  ;;  %v7251_v7 = vld [vmem:[#allocation15 + $0xcc] sm:$0xf]  ;;  %1771 = vmatpush.bf16.msra.mxu0 %v5593_v59  ;;  %v7228_v5 = vld [vmem:[#allocation15 + $0xc] sm:$0xf0]  ;;  %1833 = vmatpush.bf16.msrb.mxu1 %v5777_v33  ;;  %v5744_v59 = vld [vmem:[#allocation15 + $0x168] sm:$0xf] }
 0x1b8   : > { %v8390_v19 = vadd.f32 %v8382_v6, %v1012_v10  ;;  %v5669_v16 = vor.u32 %v7251_v7, %v5666_v8  ;;  %v5561_v51 = vor.u32 %v7228_v5, %v5560_v11  ;;  %v7239_v7 = vld [vmem:[#allocation15 + $0x6c] sm:$0xf]  ;;  %v5745_v18 = vor.u32 %v7273_v36, %v5744_v59  ;;  %v5602_v6 = vld [vmem:[#allocation15 + $0x58] sm:$0xf0]  ;;  %v5632_v59 = vld [vmem:[#allocation15 + $0x88] sm:$0xf] }
 0x1b9   : > { %v7235_v33 = vld [vmem:[#allocation15 + $0x4c] sm:$0xf]  ;;  %v7245_v36 = vld [vmem:[#allocation15 + $0x94] sm:$0xf0] }
 0x1ba   : > { %1845 = vmatpush.bf16.msrb.mxu2 %v5669_v16  ;;  %1858 = vmatpush.bf16.msrb.mxu3 %v5797_v23  ;;  %v5746_v23 = vld [vmem:[#allocation15 + $0x178] sm:$0xf0] }
 0x1bb   : > { %1772 = vmatpush.bf16.msra.mxu0 %v5577_v28 }
 0x1be   : > { %v8396_v48 = vpop.f32.mrf.mxu2  ;;  %v1249_v57 = vpop.f32.mrf.mxu0  ;;  %1846 = vmatpush.bf16.msrb.mxu2 %v5653_v34  ;;  %1859 = vmatpush.bf16.msrb.mxu3 %v5781_v45  ;;  %v5648_v45 = vld [vmem:[#allocation15 + $0xa8] sm:$0xf] }
 0x1bf   : > { %v8400_v56 = vpop.f32.mrf.mxu3  ;;  %v1292_v55 = vadd.f32 %v1249_v57, %v1043_v47  ;;  %v1262_v63 = vpop.f32.mrf.mxu1  ;;  %v5760_v47 = vld [vmem:[#allocation15 + $0x188] sm:$0xf]  ;;  %1773 = vmatpush.bf16.msra.mxu0 %v5561_v51 }
 0x1c0   : > { %v1293_v4 = vadd.f32 %v1262_v63, %v1044_v54  ;;  %v5761_v57 = vor.u32 %v7277_v52, %v5760_v47  ;;  %v5637_v63 = vor.u32 %v7243_v53, %v5634_v58  ;;  %v5712_v47 = vld [vmem:[#allocation15 + $0x128] sm:$0xf]  ;;  %v7231_v53 = vld [vmem:[#allocation15 + $0x2c] sm:$0xf] }
 0x1c1   : > { %v5555_v10 = vmul.f32 -1.442695, %v1292_v55 }
 0x1c2   : > { %v5556_v22 = vmul.f32 -1.442695, %v1293_v4  ;;  %v5681_v4 = vor.u32 %v7257_v2, %v5680_v1  ;;  %1834 = vmatpush.bf16.msrb.mxu1 %v5761_v57  ;;  %1847 = vmatpush.bf16.msrb.mxu2 %v5637_v63  ;;  %v5714_v63 = vld [vmem:[#allocation15 + $0x138] sm:$0xf0]  ;;  %v7229_v1 = vld [vmem:[#allocation15 + $0x14] sm:$0xf0] }
 0x1c3   : > { %7729 = vpow2.f32 %v5555_v10  ;;  %1860 = vmatpush.bf16.msrb.mxu3 %v5765_v0  ;;  %v5618_v10 = vld [vmem:[#allocation15 + $0x78] sm:$0xf0] }
 0x1c4   : > { %7731 = vpow2.f32 %v5556_v22  ;;  %1818 = vmatpush.bf16.msrb.mxu0 %v5681_v4  ;;  %v5621_v21 = vor.u32 %v7239_v7, %v5618_v10  ;;  %v7271_v22 = vld [vmem:[#allocation15 + $0x16c] sm:$0xf]  ;;  %v5633_v10 = vor.u32 %v7245_v36, %v5632_v59 }
 0x1c5   : > { %v5749_v25 = vor.u32 %v7271_v22, %v5746_v23 }
 0x1c6   : > { %v1275_v32 = vpop.f32.mrf.mxu2  ;;  %v1251_v43 = vpop.f32.mrf.mxu0  ;;  %1835 = vmatpush.bf16.msrb.mxu1 %v5745_v18  ;;  %1848 = vmatpush.bf16.msrb.mxu2 %v5621_v21  ;;  %v7261_v18 = vld [vmem:[#allocation15 + $0x114] sm:$0xf0]  ;;  %v7227_v21 = vld [vmem:[#allocation15 + $0xc] sm:$0xf] }
 0x1c7   : > { %v1294_v41 = vadd.f32 %v1275_v32, %v1045_v27  ;;  %v1288_v42 = vpop.f32.mrf.mxu3  ;;  %v1264_v46 = vpop.f32.mrf.mxu1  ;;  %v7253_v27 = vld [vmem:[#allocation15 + $0xd4] sm:$0xf0]  ;;  %1861 = vmatpush.bf16.msrb.mxu3 %v5749_v25  ;;  %v5730_v43 = vld [vmem:[#allocation15 + $0x158] sm:$0xf0] }
 0x1c8   : > { %v1295_v29 = vadd.f32 %v1288_v42, %v1046_v15  ;;  %v5665_v30 = vor.u32 %v7253_v27, %v5664_v26  ;;  %v7269_v32 = vld [vmem:[#allocation15 + $0x154] sm:$0xf0]  ;;  %v5733_v60 = vor.u32 %v7267_v38, %v5730_v43  ;;  %v5570_v25 = vld [vmem:[#allocation15 + $0x18] sm:$0xf0]  ;;  %v7259_v26 = vld [vmem:[#allocation15 + $0x10c] sm:$0xf] }
 0x1c9   : > { %v5557_v49 = vmul.f32 -1.442695, %v1294_v41  ;;  %v7730_v54 = vpop.eup %7729  ;;  %v5729_v12 = vor.u32 %v7269_v32, %v5728_v31  ;;  %v5605_v41 = vor.u32 %v7235_v33, %v5602_v6  ;;  %v7249_v46 = vld [vmem:[#allocation15 + $0xb4] sm:$0xf0]  ;;  %v5698_v27 = vld [vmem:[#allocation15 + $0x118] sm:$0xf0]  ;;  %v5573_v33 = vor.u32 %v7227_v21, %v5570_v25 }
 0x1ca   : > { %v7732_v62 = vpop.eup %7731  ;;  %v8404_v55 = vadd.f32 1.0, %v7730_v54  ;;  %1819 = vmatpush.bf16.msrb.mxu0 %v5665_v30  ;;  %v5586_v54 = vld [vmem:[#allocation15 + $0x38] sm:$0xf0]  ;;  %v5649_v61 = vor.u32 %v7249_v46, %v5648_v45  ;;  %v7241_v6 = vld [vmem:[#allocation15 + $0x74] sm:$0xf0]  ;;  %v1296_v38 = vld [vmem:[#allocation3] sm:$0xff]  ;;  %v5701_v43 = vor.u32 %v7259_v26, %v5698_v27 }
 0x1cb   : > { %7733 = vpow2.f32 %v5557_v49  ;;  %v8406_v3 = vadd.f32 1.0, %v7732_v62  ;;  %v7265_v49 = vld [vmem:[#allocation15 + $0x134] sm:$0xf0]  ;;  %1836 = vmatpush.bf16.msrb.mxu1 %v5729_v12  ;;  %1849 = vmatpush.bf16.msrb.mxu2 %v5605_v41  ;;  %v7263_v62 = vld [vmem:[#allocation15 + $0x12c] sm:$0xf]  ;;  %v5589_v4 = vor.u32 %v7231_v53, %v5586_v54 }
 0x1cc   : > { %7735 = vrcp.f32 %v8404_v55  ;;  %v1318_v24 = vand.u32 2147483647, %v8404_v55  ;;  %v1320_v5 = vand.u32 2147483648, %v8404_v55  ;;  %v5713_v2 = vor.u32 %v7265_v49, %v5712_v47  ;;  %1862 = vmatpush.bf16.msrb.mxu3 %v5733_v60  ;;  %v5616_v12 = vld [vmem:[#allocation15 + $0x68] sm:$0xf] }
 0x1cd   : > { %7737 = vrcp.f32 %v8406_v3  ;;  %v1333_v52 = vand.u32 2147483647, %v8406_v3  ;;  %v1335_v58 = vand.u32 2147483648, %v8406_v3  ;;  %vm1329_vm3 = vweird.f32 %v8406_v3  ;;  %v5600_v49 = vld [vmem:[#allocation15 + $0x48] sm:$0xf] }
 0x1ce   : > { %v1277_v8 = vpop.f32.mrf.mxu2  ;;  %vm8427_vm0 = vcmp.eq.f32.partialorder %v1318_v24, 8.507059e+37  ;;  %1820 = vmatpush.bf16.msrb.mxu0 %v5649_v61  ;;  %vm1314_vm4 = vweird.f32 %v8404_v55  ;;  %v1321_v31 = vor.u32 1.1754944e-38, %v1320_v5  ;;  %v5617_v45 = vor.u32 %v7241_v6, %v5616_v12  ;;  %v5584_v60 = vld [vmem:[#allocation15 + $0x28] sm:$0xf]  ;;  %v7233_v61 = vld [vmem:[#allocation15 + $0x34] sm:$0xf0] }
 0x1cf   : > { %v1290_v16 = vpop.f32.mrf.mxu3  ;;  %v5717_v8 = vor.u32 %v7263_v62, %v5714_v63  ;;  %1837 = vmatpush.bf16.msrb.mxu1 %v5713_v2  ;;  %1850 = vmatpush.bf16.msrb.mxu2 %v5589_v4  ;;  %vm1334_vm7 = vcmp.eq.f32.partialorder %v1333_v52, 8.507059e+37  ;;  %v5585_v52 = vor.u32 %v7233_v61, %v5584_v60  ;;  %v5956_v12 = vld [vmem:[#allocation13 + $0xc8] sm:$0xf]  ;;  %v7325_v6 = vld [vmem:[#allocation13 + $0xd4] sm:$0xf0] }
 0x1d0   : > { %v5696_v16 = vld [vmem:[#allocation15 + $0x108] sm:$0xf]  ;;  %v7317_v60 = vld [vmem:[#allocation13 + $0x94] sm:$0xf0] }
 0x1d1   : > { %v7734_v28 = vpop.eup %7733  ;;  %v5697_v24 = vor.u32 %v7261_v18, %v5696_v16  ;;  %1863 = vmatpush.bf16.msrb.mxu3 %v5717_v8  ;;  %v7326_v16 = vld [vmem:[#allocation13 + $0xe4] sm:$0xf]  ;;  %v5966_v18 = vld [vmem:[#allocation13 + $0xf0] sm:$0xf0] }
 0x1d2   : > { %v8413_v34 = vadd.f32 1.0, %v7734_v28  ;;  %v8415_v40 = vpop.eup %7735  ;;  %1821 = vmatpush.bf16.msrb.mxu0 %v5633_v10  ;;  %v5964_v10 = vld [vmem:[#allocation13 + $0xe0] sm:$0xf] }
 0x1d3   : > { %v8417_v42 = vpop.eup %7737  ;;  %v1310_v11 = vmul.f32 %v8415_v40, %v8404_v55  ;;  %vm1315_vm1 = vweird.f32 %v8415_v40  ;;  %v1336_v55 = vor.u32 1.1754944e-38, %v1335_v58  ;;  %1838 = vmatpush.bf16.msrb.mxu1 %v5697_v24  ;;  %1851 = vmatpush.bf16.msrb.mxu2 %v5573_v33  ;;  %v7329_v24 = vld [vmem:[#allocation13 + $0xf4] sm:$0xf0]  ;;  %v5950_v33 = vld [vmem:[#allocation13 + $0xd0] sm:$0xf0] }
 0x1d4   : > { %7739 = vrcp.f32 %v8413_v34  ;;  %v1325_v51 = vmul.f32 %v8417_v42, %v8406_v3  ;;  %vm1330_vm2 = vweird.f32 %v8417_v42  ;;  %vm8441_vm5 = vmor %vm1314_vm4, %vm1315_vm1  ;;  %v1350_v62 = vand.u32 2147483648, %v8413_v34 }
 0x1d5   : > { %7741 = vtanh.f32 %v1295_v29  ;;  %v1311_v57 = vsub.f32 1.0, %v1310_v11  ;;  %vm1331_vm6 = vmor %vm1329_vm3, %vm1330_vm2  ;;  %1864 = vmatpush.bf16.msrb.mxu3 %v5701_v43  ;;  %vm1344_vm9 = vweird.f32 %v8413_v34  ;;  %v5957_v43 = vor.u32 %v7325_v6, %v5956_v12  ;;  %v5852_v12 = vld [vmem:[#allocation13] sm:$0xf]  ;;  %v7298_v6 = vld [vmem:[#allocation13 + $0x4] sm:$0xf] }
 0x1d6   : > { %v1326_v0 = vsub.f32 1.0, %v1325_v51  ;;  %v7237_v51 = vld [vmem:[#allocation15 + $0x54] sm:$0xf0]  ;;  %1822 = vmatpush.bf16.msrb.mxu0 %v5617_v45  ;;  %v1351_v2 = vor.u32 1.1754944e-38, %v1350_v62  ;;  %v7320_v45 = vld [vmem:[#allocation13 + $0xac] sm:$0xf0] }
 0x1d7   : > { %v1312_v7 = vmul.f32 %v8415_v40, %v1311_v57 }
 0x1d8   : > { %v1327_v15 = vmul.f32 %v8417_v42, %v1326_v0  ;;  %v5568_v0 = vld [vmem:[#allocation15 + $0x8] sm:$0xf] }
 0x1d9   : > { %v1313_v23 = vadd.f32 %v8415_v40, %v1312_v7  ;;  %v5569_v4 = vor.u32 %v7229_v1, %v5568_v0  ;;  %v7310_v0 = vld [vmem:[#allocation13 + $0x64] sm:$0xf]  ;;  %v5902_v1 = vld [vmem:[#allocation13 + $0x70] sm:$0xf0] }
 0x1da   : > { %v7740_v22 = vpop.eup %7739  ;;  %v1328_v32 = vadd.f32 %v8417_v42, %v1327_v15  ;;  %v7328_v15 = vld [vmem:[#allocation13 + $0xec] sm:$0xf0] }
 0x1db   : > { %v7742_v28 = vpop.eup %7741  ;;  %v1340_v29 = vmul.f32 %v7740_v22, %v8413_v34  ;;  %v1317_v41 = vsel %vm8441_vm5, %v8415_v40, %v1313_v23  ;;  %v5601_v40 = vor.u32 %v7237_v51, %v5600_v49  ;;  %vm1345_vm8 = vweird.f32 %v7740_v22  ;;  %v5972_v23 = vld [vmem:[#allocation13 + $0xe8] sm:$0xf]  ;;  %v5916_v51 = vld [vmem:[#allocation13 + $0x80] sm:$0xf] }
 0x1dc   : > { %v1322_v11 = vsel %vm8427_vm0, %v1321_v31, %v1317_v41  ;;  %v1332_v5 = vsel %vm1331_vm6, %v8417_v42, %v1328_v32  ;;  %v1348_v42 = vand.u32 2147483647, %v8413_v34  ;;  %vm1346_vm10 = vmor %vm1344_vm9, %vm1345_vm8  ;;  %v5965_v27 = vor.u32 %v7328_v15, %v5964_v10  ;;  %v7324_v31 = vld [vmem:[#allocation13 + $0xcc] sm:$0xf0]  ;;  %v7322_v32 = vld [vmem:[#allocation13 + $0xc4] sm:$0xf] }
 0x1dd   : > { %v1341_v46 = vsub.f32 1.0, %v1340_v29  ;;  %v1337_v3 = vsel %vm1334_vm7, %v1336_v55, %v1332_v5  ;;  %v1356_v47 = vmul.f32 %v7742_v28, %v1322_v11  ;;  %1823 = vmatpush.bf16.msrb.mxu0 %v5601_v40  ;;  %v5969_v28 = vor.u32 %v7326_v16, %v5966_v18  ;;  %v5948_v29 = vld [vmem:[#allocation13 + $0xc0] sm:$0xf]  ;;  %v5934_v11 = vld [vmem:[#allocation13 + $0xb0] sm:$0xf0] }
 0x1de   : > { %v1355_v54 = vmul.f32 %v1337_v3, %v1296_v38  ;;  %vm1349_vm11 = vcmp.eq.f32.partialorder %v1348_v42, 8.507059e+37  ;;  %v5973_v30 = vor.u32 %v7329_v24, %v5972_v23  ;;  %v5949_v55 = vor.u32 %v7324_v31, %v5948_v29  ;;  %v5932_v41 = vld [vmem:[#allocation13 + $0xa0] sm:$0xf]  ;;  %v5940_v5 = vld [vmem:[#allocation13 + $0xa8] sm:$0xf] }
 0x1df   : > { %v1342_v53 = vmul.f32 %v7740_v22, %v1341_v46  ;;  %v5953_v38 = vor.u32 %v7322_v32, %v5950_v33  ;;  %v7318_v46 = vld [vmem:[#allocation13 + $0xa4] sm:$0xf]  ;;  %v7321_v3 = vld [vmem:[#allocation13 + $0xb4] sm:$0xf0]  ;;  %v5900_v42 = vld [vmem:[#allocation13 + $0x60] sm:$0xf] }
 0x1e0   : > { %v1357_v57 = vadd.f32 %v1356_v47, %v1355_v54  ;;  %v5933_v47 = vor.u32 %v7320_v45, %v5932_v41  ;;  %v5937_v49 = vor.u32 %v7318_v46, %v5934_v11  ;;  %v7316_v54 = vld [vmem:[#allocation13 + $0x8c] sm:$0xf0]  ;;  %v7314_v40 = vld [vmem:[#allocation13 + $0x84] sm:$0xf]  ;;  %v5892_v16 = vld [vmem:[#allocation13 + $0x48] sm:$0xf] }
 0x1e1   : > { %v1343_v58 = vadd.f32 %v7740_v22, %v1342_v53  ;;  %1824 = vmatpush.bf16.msrb.mxu0 %v5585_v52  ;;  %v5941_v53 = vor.u32 %v7321_v3, %v5940_v5  ;;  %v5917_v61 = vor.u32 %v7316_v54, %v5916_v51  ;;  %v7308_v10 = vld [vmem:[#allocation13 + $0x4c] sm:$0xf0]  ;;  %v7306_v15 = vld [vmem:[#allocation13 + $0x44] sm:$0xf]  ;;  %v7309_v18 = vld [vmem:[#allocation13 + $0x54] sm:$0xf0] }
 0x1e2   : > { %7743 = vtanh.f32 %v1357_v57  ;;  %1360 = vst [vmem:[#allocation3] sm:$0xff] %v1357_v57  ;;  %v5918_v57 = vld [vmem:[#allocation13 + $0x90] sm:$0xf0]  ;;  %v5868_v23 = vld [vmem:[#allocation13 + $0x20] sm:$0xf]  ;;  %v5893_v24 = vor.u32 %v7309_v18, %v5892_v16  ;;  %v7297_v5 = vld [vmem:[#allocation16 + $0x38] sm:$0xff] }
 0x1e3   : > { %v1347_v63 = vsel %vm1346_vm10, %v7740_v22, %v1343_v58  ;;  %v5924_v58 = vld [vmem:[#allocation13 + $0x88] sm:$0xf]  ;;  %v5921_v62 = vor.u32 %v7314_v40, %v5918_v57  ;;  %v5870_v29 = vld [vmem:[#allocation13 + $0x30] sm:$0xf0]  ;;  %v7305_v31 = vld [vmem:[#allocation13 + $0x34] sm:$0xf0] }
 0x1e4   : > { %v1352_v36 = vsel %vm1349_vm11, %v1351_v2, %v1347_v63  ;;  %v5925_v52 = vor.u32 %v7317_v60, %v5924_v58  ;;  %v7312_v63 = vld [vmem:[#allocation13 + $0x6c] sm:$0xf0]  ;;  %v5908_v2 = vld [vmem:[#allocation13 + $0x68] sm:$0xf]  ;;  %v7301_v41 = vld [vmem:[#allocation13 + $0x14] sm:$0xf0] }
 0x1e5   : > { %1825 = vmatpush.bf16.msrb.mxu0 %v5569_v4  ;;  %v7313_v4 = vld [vmem:[#allocation13 + $0x74] sm:$0xf0]  ;;  %v7296_v3 = vld [vmem:[#allocation16 + $0x30] sm:$0xff]  ;;  %v8479_v51 = vld [vmem:[%s8972_s8] sm:$0xf] }
 0x1e6   : > { %v1431_v54 = vperm.slane %v8479_v51, 0  ;;  %v7292_v40 = vld [vmem:[#allocation16 + $0x10] sm:$0xff] }
 0x1e8   : > { %v7744_v59 = vpop.eup %7743 }
 0x1e9   : > { %v1359_v7 = vmul.f32 %v7744_v59, %v1352_v36  ;;  %v5901_v59 = vor.u32 %v7312_v63, %v5900_v42  ;;  %v5905_v36 = vor.u32 %v7310_v0, %v5902_v1  ;;  %v1432_v42 = vperm.slane %v8479_v51, 1  ;;  %v7290_v63 = vld [vmem:[#allocation16] sm:$0xff] }
 0x1eb   : > { %v1361_v8 = vpack.c.bf16 %v1359_v7, %v1359_v7  ;;  %v5884_v7 = vld [vmem:[#allocation13 + $0x40] sm:$0xf] }
 0x1ed   : > { %1362 = vst [vmem:[#allocation2] sm:$0xf] %v1361_v8 }
 0x1ee   : > { %1363 = vst [vmem:[#allocation4] sm:$0xf] %v1361_v8  ;;  %v5909_v8 = vor.u32 %v7313_v4, %v5908_v2  ;;  %v7327_v2 = vld [vmem:[#allocation13 + $0xec] sm:$0xf]  ;;  %v5974_v4 = vld [vmem:[#allocation13 + $0xf8] sm:$0xf0] }
 0x1f4   : > { %v8471_v11 = vld [vmem:[#allocation2] sm:$0xf] }
 0x1f5   : > { %v1364_v34 = vld [vmem:[#allocation4] sm:$0xff] }
 0x1f6   : > { %v1440_v21 = vunpack.c.l.b16 %v1364_v34  ;;  %v1441_v22 = vunpack.c.h.b16 %v1364_v34  ;;  %v5886_v34 = vld [vmem:[#allocation13 + $0x50] sm:$0xf0] }
 0x1f8   : > { %v8459_v25 = vpack.c.b16 %v1440_v21, %v1440_v21  ;;  %v8461_v26 = vpack.c.b16 %v1441_v22, %v1441_v22  ;;  %v5885_v21 = vor.u32 %v7308_v10, %v5884_v7  ;;  %v5889_v22 = vor.u32 %v7306_v15, %v5886_v34  ;;  %v7323_v15 = vld [vmem:[#allocation13 + $0xcc] sm:$0xf]  ;;  %v5958_v34 = vld [vmem:[#allocation13 + $0xd8] sm:$0xf0] }
 0x1f9   : > { %v5961_v18 = vor.u32 %v7323_v15, %v5958_v34  ;;  %v8136_v15 = vmov 0.0  }
 0x1fa   : > { %1774 = vmatmul.bf16.vlgmr.msra.gmra.mxu0 %v8459_v25  ;;  %1787 = vmatmul.bf16.vlgmr.msra.gmra.mxu1 %v8461_v26 }
 0x1fb   : > { %1800 = vmatmul.bf16.vlgmr.msra.gmra.mxu2 %v8459_v25  ;;  %1813 = vmatmul.bf16.vlgmr.msra.gmra.mxu3 %v8461_v26 }
 0x1fc   : > { %2233 = vmatpush.bf16.msra.mxu1 %v5965_v27  ;;  %2246 = vmatpush.bf16.msra.mxu2 %v5969_v28  ;;  %v7304_v27 = vld [vmem:[#allocation13 + $0x2c] sm:$0xf0]  ;;  %v7302_v28 = vld [vmem:[#allocation13 + $0x24] sm:$0xf] }
 0x1fd   : > { %2259 = vmatpush.bf16.msra.mxu3 %v5973_v30  ;;  %v5876_v30 = vld [vmem:[#allocation13 + $0x28] sm:$0xf]  ;;  %v5869_v32 = vor.u32 %v7304_v27, %v5868_v23  ;;  %v5873_v33 = vor.u32 %v7302_v28, %v5870_v29  ;;  %2002 = vmatpush.bf16.msra.mxu0 %v7297_v5  ;;  %v7319_v28 = vld [vmem:[#allocation13 + $0xac] sm:$0xf]  ;;  %v5942_v29 = vld [vmem:[#allocation13 + $0xb8] sm:$0xf0] }
 0x200   : > { %2234 = vmatpush.bf16.msra.mxu1 %v5949_v55  ;;  %2247 = vmatpush.bf16.msra.mxu2 %v5953_v38  ;;  %v5854_v55 = vld [vmem:[#allocation13 + $0x10] sm:$0xf0]  ;;  %v5860_v38 = vld [vmem:[#allocation13 + $0x8] sm:$0xf] }
 0x201   : > { %2260 = vmatpush.bf16.msra.mxu3 %v5957_v43  ;;  %v5857_v45 = vor.u32 %v7298_v6, %v5854_v55  ;;  %v5861_v46 = vor.u32 %v7301_v41, %v5860_v38  ;;  %2003 = vmatpush.bf16.msra.mxu0 %v7296_v3  ;;  %v1434_v55 = vperm.slane %v8479_v51, 3 }
 0x204   : > { %2235 = vmatpush.bf16.msra.mxu1 %v5933_v47  ;;  %2248 = vmatpush.bf16.msra.mxu2 %v5937_v49  ;;  %v7295_v47 = vld [vmem:[#allocation16 + $0x28] sm:$0xff]  ;;  %v7294_v49 = vld [vmem:[#allocation16 + $0x20] sm:$0xff] }
 0x205   : > { %2261 = vmatpush.bf16.msra.mxu3 %v5941_v53  ;;  %2004 = vmatpush.bf16.msra.mxu0 %v7295_v47  ;;  %v7293_v53 = vld [vmem:[#allocation16 + $0x18] sm:$0xff]  ;;  %v7311_v47 = vld [vmem:[#allocation13 + $0x6c] sm:$0xf] }
 0x208   : > { %2236 = vmatpush.bf16.msra.mxu1 %v5917_v61  ;;  %2249 = vmatpush.bf16.msra.mxu2 %v5921_v62  ;;  %v7291_v61 = vld [vmem:[#allocation16 + $0x8] sm:$0xff] }
 0x209   : > { %2262 = vmatpush.bf16.msra.mxu3 %v5925_v52  ;;  %2005 = vmatpush.bf16.msra.mxu0 %v7294_v49  ;;  %v5910_v49 = vld [vmem:[#allocation13 + $0x78] sm:$0xf0] }
 0x20a   : > { %1826 = vmatmul.bf16.vlgmr.msrb.gmra.mxu0 %v8459_v25  ;;  %1839 = vmatmul.bf16.vlgmr.msrb.gmra.mxu1 %v8461_v26 }
 0x20b   : > { %1852 = vmatmul.bf16.vlgmr.msrb.gmra.mxu2 %v8459_v25  ;;  %1865 = vmatmul.bf16.vlgmr.msrb.gmra.mxu3 %v8461_v26  ;;  %v5877_v25 = vor.u32 %v7305_v31, %v5876_v30  ;;  %v7300_v26 = vld [vmem:[#allocation13 + $0xc] sm:$0xf0] }
 0x20c   : > { %2237 = vmatpush.bf16.msra.mxu1 %v5901_v59  ;;  %2250 = vmatpush.bf16.msra.mxu2 %v5905_v36  ;;  %v5853_v43 = vor.u32 %v7300_v26, %v5852_v12  ;;  %v5926_v26 = vld [vmem:[#allocation13 + $0x98] sm:$0xf0] }
 0x20d   : > { %2263 = vmatpush.bf16.msra.mxu3 %v5909_v8  ;;  %2006 = vmatpush.bf16.msra.mxu0 %v7293_v53  ;;  %v5977_v8 = vor.u32 %v7327_v2, %v5974_v4  ;;  %v1033_v2 = vld [vmem:[%s8964_s0] sm:$0xff]  ;;  %v2015_v4 = vstv %s8496_s5 }
 0x20e   : > { %vm2016_vm14 = vcmp.gt.s32.totalorder %v1033_v2, %v2015_v4 }
 0x20f   : > { %v5849_v34 = vsel %vm2016_vm14, 1.0, %v8136_v15 }
 0x210   : > { %2238 = vmatpush.bf16.msra.mxu1 %v5885_v21  ;;  %2251 = vmatpush.bf16.msra.mxu2 %v5889_v22  ;;  %v1433_v22 = vperm.slane %v8479_v51, 2 }
 0x211   : > { %2264 = vmatpush.bf16.msra.mxu3 %v5893_v24  ;;  %2007 = vmatpush.bf16.msra.mxu0 %v7292_v40 }
 0x214   : > { %2239 = vmatpush.bf16.msra.mxu1 %v5869_v32  ;;  %2252 = vmatpush.bf16.msra.mxu2 %v5873_v33  ;;  %v5945_v33 = vor.u32 %v7319_v28, %v5942_v29 }
 0x215   : > { %2265 = vmatpush.bf16.msra.mxu3 %v5877_v25  ;;  %2008 = vmatpush.bf16.msra.mxu0 %v7291_v61  ;;  %v7315_v25 = vld [vmem:[#allocation13 + $0x8c] sm:$0xf] }
 0x216   : > { %v5929_v38 = vor.u32 %v7315_v25, %v5926_v26  ;;  %v7307_v61 = vld [vmem:[#allocation13 + $0x4c] sm:$0xf] }
 0x217   : > { %v7299_v26 = vld [vmem:[#allocation13 + $0xc] sm:$0xf] }
 0x218   : > { %2240 = vmatpush.bf16.msra.mxu1 %v5853_v43  ;;  %2253 = vmatpush.bf16.msra.mxu2 %v5857_v45 }
 0x219   : > { %2266 = vmatpush.bf16.msra.mxu3 %v5861_v46  ;;  %2009 = vmatpush.bf16.msra.mxu0 %v7290_v63 }
 0x21b   : > { %2241 = vmatmul.bf16.vlgmr.msra.gmra.mxu1 %v8471_v11  ;;  %2254 = vmatmul.bf16.vlgmr.msra.gmra.mxu2 %v8471_v11 }
 0x21c   : > { %2267 = vmatmul.bf16.vlgmr.msra.gmra.mxu3 %v8471_v11 }
 0x21d   : > { %2272 = vmatpush.bf16.msrb.mxu0 %v5977_v8 }
 0x221   : > { %2273 = vmatpush.bf16.msrb.mxu0 %v5961_v18  ;;  %v5878_v18 = vld [vmem:[#allocation13 + $0x38] sm:$0xf0] }
 0x225   : > { %2274 = vmatpush.bf16.msrb.mxu0 %v5945_v33 }
 0x229   : > { %2275 = vmatpush.bf16.msrb.mxu0 %v5929_v38 }
 0x277   : > { %v1775_v57 = vpop.f32.mrf.mxu0  ;;  %v1788_v58 = vpop.f32.mrf.mxu1 }
 0x278   : > { %v1776_v60 = vadd.f32 %v1775_v57, %v1431_v54  ;;  %v5913_v57 = vor.u32 %v7311_v47, %v5910_v49 }
 0x27a   : > { %v1789_v62 = vadd.f32 %v1788_v58, %v1776_v60  ;;  %2276 = vmatpush.bf16.msrb.mxu0 %v5913_v57  ;;  %v6223_v57 = vld [vmem:[#allocation15 + $0x1e0] sm:$0xf] }
 0x27c   : > { %v5814_v52 = vmul.f32 -1.442695, %v1789_v62  ;;  %v5894_v62 = vld [vmem:[#allocation13 + $0x58] sm:$0xf0] }
 0x27d   : > { %v5897_v63 = vor.u32 %v7307_v61, %v5894_v62 }
 0x27e   : > { %7745 = vpow2.f32 %v5814_v52  ;;  %v1801_v0 = vpop.f32.mrf.mxu2  ;;  %v1814_v1 = vpop.f32.mrf.mxu3 }
 0x27f   : > { %v1802_v59 = vadd.f32 %v1801_v0, %v1432_v42  ;;  %v1777_v36 = vpop.f32.mrf.mxu0  ;;  %v1790_v7 = vpop.f32.mrf.mxu1  ;;  %v2036_v42 = vadd.f32 %v8366_v35, %v8362_v13  ;;  %2277 = vmatpush.bf16.msrb.mxu0 %v5897_v63 }
 0x281   : > { %v1815_v10 = vadd.f32 %v1814_v1, %v1802_v59  ;;  %v3007_v59 = vstv %s2026_s19  ;;  %s7610_s19 = sshll.u32 %s8219_s20, 5 }
 0x282   : > { %vm3008_vm15 = vcmp.gt.s32.totalorder %v1033_v2, %v3007_v59  ;;  %s5017_s7 = scalar_lea.hbm %s8974_s10, %s7610_s19 }
 0x283   : > { %v5815_v16 = vmul.f32 -1.442695, %v1815_v10  ;;  %s5020_s21 = sshll.u32 %s5017_s7, 4  ;;  %s5021_s21 = int_to_ptr.hbm [resolvable:$true] %s5020_s21 }
 0x284   : > { %v7746_v21 = vpop.eup %7745 }
 0x285   : > { %v8484_v23 = vadd.f32 1.0, %v7746_v21  ;;  %7747 = vpow2.f32 %v5815_v16  ;;  %v7303_v16 = vld [vmem:[#allocation13 + $0x2c] sm:$0xf] }
 0x286   : > { %v1803_v24 = vpop.f32.mrf.mxu2  ;;  %v1816_v27 = vpop.f32.mrf.mxu3 }
 0x287   : > { %7749 = vrcp.f32 %v8484_v23  ;;  %v1827_v30 = vpop.f32.mrf.mxu0  ;;  %v1840_v31 = vpop.f32.mrf.mxu1  ;;  %vm1889_vm12 = vweird.f32 %v8484_v23  ;;  %v1893_v52 = vand.u32 2147483647, %v8484_v23  ;;  %v1895_v13 = vand.u32 2147483648, %v8484_v23  ;;  %v6225_v24 = vld [vmem:[#allocation15 + $0x1f0] sm:$0xf0] }
 0x288   : > { %v1828_v32 = vadd.f32 %v1827_v30, %v1433_v22  ;;  %v6272_v27 = vsel %vm3008_vm15, 1.0, %v8136_v15 }
 0x289   : > { %v7719_v33 = vpack.i.bf16 %v6272_v27, %v5849_v34  ;;  %v1896_v25 = vor.u32 1.1754944e-38, %v1895_v13  ;;  %vm1894_vm3 = vcmp.eq.f32.partialorder %v1893_v52, 8.507059e+37 }
 0x28a   : > { %v1841_v12 = vadd.f32 %v1840_v31, %v1828_v32  ;;  %v8137_v31 = vmov 0  }
 0x28b   : > { %v7748_v6 = vpop.eup %7747  ;;  %7718 = vset.pattern.permute.xlu0 %v8137_v31  ;;  %v6207_v31 = vld [vmem:[#allocation15 + $0x1c0] sm:$0xf] }
 0x28c   : > { %v8488_v41 = vadd.f32 1.0, %v7748_v6  ;;  %v5816_v43 = vmul.f32 -1.442695, %v1841_v12  ;;  %v5881_v12 = vor.u32 %v7303_v16, %v5878_v18  ;;  %v5862_v6 = vld [vmem:[#allocation13 + $0x18] sm:$0xf0]  ;;  %7720 = vperm.xlu0 %7718, %v7719_v33  }
 0x28d   : > { %v8490_v45 = vpop.eup %7749  ;;  %v5865_v38 = vor.u32 %v7299_v26, %v5862_v6  ;;  %v6209_v26 = vld [vmem:[#allocation15 + $0x1d0] sm:$0xf0] }
 0x28e   : > { %v1885_v46 = vmul.f32 %v8490_v45, %v8484_v23  ;;  %7751 = vrcp.f32 %v8488_v41  ;;  %v1853_v5 = vpop.f32.mrf.mxu2  ;;  %v1866_v3 = vpop.f32.mrf.mxu3  ;;  %vm1890_vm13 = vweird.f32 %v8490_v45  ;;  %v1910_v22 = vand.u32 2147483648, %v8488_v41  ;;  %2278 = vmatpush.bf16.msrb.mxu0 %v5881_v12  ;;  %v6081_v12 = vld [vmem:[#allocation15 + $0xd0] sm:$0xf0] }
 0x28f   : > { %7753 = vpow2.f32 %v5816_v43  ;;  %v1854_v51 = vadd.f32 %v1853_v5, %v1434_v55  ;;  %v1829_v53 = vpop.f32.mrf.mxu0  ;;  %v1842_v54 = vpop.f32.mrf.mxu1  ;;  %vm8520_vm0 = vmor %vm1889_vm12, %vm1890_vm13  ;;  %v1908_v29 = vand.u32 2147483647, %v8488_v41  ;;  %vm1904_vm2 = vweird.f32 %v8488_v41 }
 0x290   : > { %v1886_v40 = vsub.f32 1.0, %v1885_v46  ;;  %v1871_v46 = vld [vmem:[#allocation3 + $0x8] sm:$0xff]  ;;  %v7858_v53 = vld [vmem:[#allocation5] sm:$0xff] }
 0x291   : > { %v1867_v58 = vadd.f32 %v1866_v3, %v1854_v51  ;;  %v7857_v3 = vld [vmem:[#allocation5 + $0x10] sm:$0xff]  ;;  %vm1909_vm5 = vcmp.eq.f32.partialorder %v1908_v29, 8.507059e+37 }
 0x292   : > { %v1887_v60 = vmul.f32 %v8490_v45, %v1886_v40  ;;  %v2037_v47 = vadd.f32 %v7857_v3, %v8364_v17  ;;  %2279 = vmatpush.bf16.msrb.mxu0 %v5865_v38  ;;  %v6191_v38 = vld [vmem:[#allocation15 + $0x1a0] sm:$0xf]  ;;  %v7382_v3 = vld [vmem:[#allocation15 + $0x1a4] sm:$0xf] }
 0x293   : > { %7755 = vtanh.f32 %v1867_v58  ;;  %v7392_v58 = vld [vmem:[#allocation15 + $0x1ec] sm:$0xf0] }
 0x294   : > { %v7752_v0 = vpop.eup %7751  ;;  %v1888_v1 = vadd.f32 %v8490_v45, %v1887_v60  ;;  %v7358_v60 = vld [vmem:[#allocation15 + $0xe4] sm:$0xf]  ;;  %v6224_v2 = vor.u32 %v7392_v58, %v6223_v57  ;;  %v6049_v58 = vld [vmem:[#allocation15 + $0x90] sm:$0xf0] }
 0x295   : > { %v7754_v36 = vpop.eup %7753  ;;  %v1900_v7 = vmul.f32 %v7752_v0, %v8488_v41  ;;  %vm1905_vm1 = vweird.f32 %v7752_v0  ;;  %v2038_v41 = vadd.f32 %v7858_v53, %v8370_v37 }
 0x296   : > { %v8512_v35 = vadd.f32 1.0, %v7754_v36  ;;  %v1855_v8 = vpop.f32.mrf.mxu2  ;;  %v1868_v10 = vpop.f32.mrf.mxu3  ;;  %v1892_v28 = vsel %vm8520_vm0, %v8490_v45, %v1888_v1  ;;  %vm1906_vm4 = vmor %vm1904_vm2, %vm1905_vm1  ;;  %v1911_v45 = vor.u32 1.1754944e-38, %v1910_v22  ;;  %v6097_v1 = vld [vmem:[#allocation15 + $0xf0] sm:$0xf0]  ;;  %2772 = vmatpush.bf16.msrb.mxu2 %v6224_v2  ;;  %v7390_v22 = vld [vmem:[#allocation15 + $0x1e4] sm:$0xf] }
 0x297   : > { %v1901_v21 = vsub.f32 1.0, %v1900_v7  ;;  %v1897_v5 = vsel %vm1894_vm3, %v1896_v25, %v1892_v28  ;;  %v6100_v4 = vor.u32 %v7358_v60, %v6097_v1  ;;  %v6228_v29 = vor.u32 %v7390_v22, %v6225_v24  ;;  %v7386_v25 = vld [vmem:[#allocation15 + $0x1c4] sm:$0xf]  ;;  %v7360_v1 = vld [vmem:[#allocation15 + $0xec] sm:$0xf0] }
 0x298   : > { %7757 = vrcp.f32 %v8512_v35  ;;  %v2242_v30 = vpop.f32.mrf.mxu1  ;;  %v1925_v36 = vand.u32 2147483648, %v8512_v35  ;;  %v1923_v13 = vand.u32 2147483647, %v8512_v35  ;;  %vm1919_vm7 = vweird.f32 %v8512_v35  ;;  %v7378_v60 = vld [vmem:[#allocation15 + $0x184] sm:$0xf] }
 0x299   : > { %v1902_v32 = vmul.f32 %v7752_v0, %v1901_v21  ;;  %v8530_v23 = vadd.f32 %v2242_v30, %v2036_v42  ;;  %v7756_v43 = vpop.eup %7755  ;;  %2785 = vmatpush.bf16.msrb.mxu3 %v6100_v4  ;;  %v7376_v4 = vld [vmem:[#allocation15 + $0x16c] sm:$0xf0]  ;;  %v6017_v24 = vld [vmem:[#allocation15 + $0x50] sm:$0xf0] }
 0x29a   : > { %v1931_v42 = vmul.f32 %v7756_v43, %v1897_v5  ;;  %v1926_v34 = vor.u32 1.1754944e-38, %v1925_v36  ;;  %vm1924_vm9 = vcmp.eq.f32.partialorder %v1923_v13, 8.507059e+37  ;;  %v7384_v43 = vld [vmem:[#allocation15 + $0x1ac] sm:$0xf0]  ;;  %v6065_v5 = vld [vmem:[#allocation15 + $0xb0] sm:$0xf0] }
 0x29b   : > { %v1903_v55 = vadd.f32 %v7752_v0, %v1902_v32  ;;  %v7354_v32 = vld [vmem:[#allocation15 + $0xc4] sm:$0xf]  ;;  %v6079_v13 = vld [vmem:[#allocation15 + $0xc0] sm:$0xf] }
 0x29c   : > { %v6084_v6 = vor.u32 %v7354_v32, %v6081_v12  ;;  %v7374_v36 = vld [vmem:[#allocation15 + $0x164] sm:$0xf] }
 0x29d   : > { %v1907_v49 = vsel %vm1906_vm4, %v7752_v0, %v1903_v55  ;;  %v6212_v55 = vor.u32 %v7386_v25, %v6209_v26  ;;  %v6127_v26 = vld [vmem:[#allocation15 + $0x120] sm:$0xf] }
 0x29e   : > { %v7758_v51 = vpop.eup %7757  ;;  %v1912_v54 = vsel %vm1909_vm5, %v1911_v45, %v1907_v49  ;;  %v2255_v40 = vpop.f32.mrf.mxu2  ;;  %2786 = vmatpush.bf16.msrb.mxu3 %v6084_v6  ;;  %v7350_v45 = vld [vmem:[#allocation15 + $0xa4] sm:$0xf]  ;;  %v7368_v6 = vld [vmem:[#allocation15 + $0x12c] sm:$0xf0] }
 0x29f   : > { %v1915_v61 = vmul.f32 %v7758_v51, %v8512_v35  ;;  %v1930_v62 = vmul.f32 %v1912_v54, %v1871_v46  ;;  %v2286_v52 = vadd.f32 %v2255_v40, %v2037_v47  ;;  %v2268_v63 = vpop.f32.mrf.mxu3  ;;  %vm1920_vm6 = vweird.f32 %v7758_v51  ;;  %v7388_v35 = vld [vmem:[#allocation15 + $0x1cc] sm:$0xf0]  ;;  %v6193_v47 = vld [vmem:[#allocation15 + $0x1b0] sm:$0xf0]  ;;  %v7346_v40 = vld [vmem:[#allocation15 + $0x84] sm:$0xf] }
 0x2a0   : > { %v8537_v17 = vadd.f32 %v2268_v63, %v2038_v41  ;;  %v2244_v0 = vpop.f32.mrf.mxu1  ;;  %vm1921_vm8 = vmor %vm1919_vm7, %vm1920_vm6  ;;  %v6208_v33 = vor.u32 %v7388_v35, %v6207_v31  ;;  %v6192_v46 = vor.u32 %v7384_v43, %v6191_v38  ;;  %v6196_v49 = vor.u32 %v7382_v3, %v6193_v47  ;;  %v6175_v41 = vld [vmem:[#allocation15 + $0x180] sm:$0xf]  ;;  %v7380_v54 = vld [vmem:[#allocation15 + $0x18c] sm:$0xf0] }
 0x2a1   : > { %v1916_v59 = vsub.f32 1.0, %v1915_v61  ;;  %v1932_v37 = vadd.f32 %v1931_v42, %v1930_v62  ;;  %v5979_v53 = vmul.f32 -1.442695, %v2286_v52  ;;  %v6176_v57 = vor.u32 %v7380_v54, %v6175_v41  ;;  %v6177_v61 = vld [vmem:[#allocation15 + $0x190] sm:$0xf0] }
 0x2a2   : > { %2773 = vmatpush.bf16.msrb.mxu2 %v6208_v33  ;;  %v6052_v62 = vor.u32 %v7346_v40, %v6049_v58  ;;  %v6180_v42 = vor.u32 %v7378_v60, %v6177_v61  ;;  %v6095_v63 = vld [vmem:[#allocation15 + $0xe0] sm:$0xf]  ;;  %v6033_v52 = vld [vmem:[#allocation15 + $0x70] sm:$0xf0]  ;;  %v7352_v35 = vld [vmem:[#allocation15 + $0xac] sm:$0xf0]  ;;  %v6128_v38 = vor.u32 %v7368_v6, %v6127_v26 }
 0x2a3   : > { %7759 = vtanh.f32 %v1932_v37  ;;  %1935 = vst [vmem:[#allocation3 + $0x8] sm:$0xff] %v1932_v37  ;;  %v1917_v7 = vmul.f32 %v7758_v51, %v1916_v59  ;;  %v6159_v0 = vld [vmem:[#allocation15 + $0x160] sm:$0xf]  ;;  %v6096_v2 = vor.u32 %v7360_v1, %v6095_v63  ;;  %v5980_v33 = vmul.f32 -1.442695, %v8537_v17 }
 0x2a4   : > { %v6160_v59 = vor.u32 %v7376_v4, %v6159_v0  ;;  %v6063_v31 = vld [vmem:[#allocation15 + $0xa0] sm:$0xf]  ;;  %v6001_v43 = vld [vmem:[#allocation15 + $0x30] sm:$0xf0]  ;;  %v7364_v41 = vld [vmem:[#allocation15 + $0x10c] sm:$0xf0] }
 0x2a5   : > { %v1918_v8 = vadd.f32 %v7758_v51, %v1917_v7  ;;  %v6161_v7 = vld [vmem:[#allocation15 + $0x170] sm:$0xf0]  ;;  %2759 = vmatpush.bf16.msrb.mxu1 %v6096_v2  ;;  %v6064_v12 = vor.u32 %v7352_v35, %v6063_v31  ;;  %v7330_v54 = vld [vmem:[#allocation15 + $0x4] sm:$0xf]  ;;  %v6031_v63 = vld [vmem:[#allocation15 + $0x60] sm:$0xf] }
 0x2a6   : > { %v2257_v10 = vpop.f32.mrf.mxu2  ;;  %2774 = vmatpush.bf16.msrb.mxu2 %v6192_v46  ;;  %v6129_v46 = vld [vmem:[#allocation15 + $0x130] sm:$0xf0]  ;;  %v7362_v58 = vld [vmem:[#allocation15 + $0x104] sm:$0xf]  ;;  %v7344_v1 = vld [vmem:[#allocation15 + $0x6c] sm:$0xf0] }
 0x2a7   : > { %v2270_v16 = vpop.f32.mrf.mxu3  ;;  %v1922_v18 = vsel %vm1921_vm8, %v7758_v51, %v1918_v8  ;;  %v5978_v51 = vmul.f32 -1.442695, %v8530_v23  ;;  %v7342_v23 = vld [vmem:[#allocation15 + $0x64] sm:$0xf]  ;;  %v6164_v8 = vor.u32 %v7374_v36, %v6161_v7  ;;  %v7356_v10 = vld [vmem:[#allocation15 + $0xcc] sm:$0xf0]  ;;  %v6032_v2 = vor.u32 %v7344_v1, %v6031_v63 }
 0x2a8   : > { %v1927_v21 = vsel %vm1924_vm9, %v1926_v34, %v1922_v18  ;;  %v6036_v37 = vor.u32 %v7342_v23, %v6033_v52  ;;  %v6080_v34 = vor.u32 %v7356_v10, %v6079_v13  ;;  %v6143_v16 = vld [vmem:[#allocation15 + $0x140] sm:$0xf]  ;;  %v7372_v18 = vld [vmem:[#allocation15 + $0x14c] sm:$0xf0]  ;;  %v6113_v60 = vld [vmem:[#allocation15 + $0x110] sm:$0xf0] }
 0x2a9   : > { %v7760_v27 = vpop.eup %7759  ;;  %7761 = vpow2.f32 %v5978_v51  ;;  %v6144_v22 = vor.u32 %v7372_v18, %v6143_v16  ;;  %v6231_v0 = vld [vmem:[#allocation15 + $0x1e8] sm:$0xf]  ;;  %v7393_v4 = vld [vmem:[#allocation15 + $0x1f4] sm:$0xf0]  ;;  %v7359_v23 = vld [vmem:[#allocation15 + $0xec] sm:$0xf] }
 0x2aa   : > { %v1934_v28 = vmul.f32 %v7760_v27, %v1927_v21  ;;  %2775 = vmatpush.bf16.msrb.mxu2 %v6176_v57  ;;  %7763 = vpow2.f32 %v5979_v53  ;;  %2760 = vmatpush.bf16.msrb.mxu1 %v6080_v34  ;;  %v7338_v21 = vld [vmem:[#allocation15 + $0x44] sm:$0xf]  ;;  %v6111_v53 = vld [vmem:[#allocation15 + $0x100] sm:$0xf]  ;;  %v5985_v57 = vld [vmem:[#allocation15 + $0x10] sm:$0xf0] }
 0x2ab   : > { %v7370_v27 = vld [vmem:[#allocation15 + $0x144] sm:$0xf]  ;;  %7765 = vpow2.f32 %v5980_v33  ;;  %v6112_v40 = vor.u32 %v7364_v41, %v6111_v53  ;;  %v6105_v52 = vld [vmem:[#allocation15 + $0xf8] sm:$0xf0]  ;;  %v7391_v36 = vld [vmem:[#allocation15 + $0x1ec] sm:$0xf] }
 0x2ac   : > { %v1936_v30 = vpack.c.bf16 %v1934_v28, %v1934_v28  ;;  %v6145_v28 = vld [vmem:[#allocation15 + $0x150] sm:$0xf0]  ;;  %v6233_v7 = vld [vmem:[#allocation15 + $0x1f8] sm:$0xf0]  ;;  %v6015_v10 = vld [vmem:[#allocation15 + $0x40] sm:$0xf] }
 0x2ad   : > { %v7340_v34 = vld [vmem:[#allocation15 + $0x4c] sm:$0xf0]  ;;  %v6215_v16 = vld [vmem:[#allocation15 + $0x1c8] sm:$0xf]  ;;  %v6217_v31 = vld [vmem:[#allocation15 + $0x1d8] sm:$0xf0] }
 0x2ae   : > { %1937 = vst [vmem:[#allocation4 + $0x4] sm:$0xf] %v1936_v30  ;;  %2010 = vmatmul.bf16.vlgmr.msra.gmra.mxu0 %v1936_v30  ;;  %2776 = vmatpush.bf16.msrb.mxu2 %v6160_v59  ;;  %v6148_v30 = vor.u32 %v7370_v27, %v6145_v28  ;;  %v6232_v59 = vor.u32 %v7393_v4, %v6231_v0  ;;  %v5999_v26 = vld [vmem:[#allocation15 + $0x20] sm:$0xf]  ;;  %v7336_v6 = vld [vmem:[#allocation15 + $0x2c] sm:$0xf0] }
 0x2af   : > { %2798 = vmatpush.bf16.msra.mxu0 %v6228_v29  ;;  %v6020_v29 = vor.u32 %v7338_v21, %v6017_v24  ;;  %v7762_v32 = vpop.eup %7761  ;;  %2761 = vmatpush.bf16.msrb.mxu1 %v6064_v12  ;;  %v6016_v18 = vor.u32 %v7340_v34, %v6015_v10  ;;  %v7389_v21 = vld [vmem:[#allocation15 + $0x1d4] sm:$0xf0]  ;;  %v6089_v24 = vld [vmem:[#allocation15 + $0xd8] sm:$0xf0]  ;;  %v7347_v63 = vld [vmem:[#allocation15 + $0x8c] sm:$0xf] }
 0x2b0   : > { %v7764_v25 = vpop.eup %7763  ;;  %v6216_v28 = vor.u32 %v7389_v21, %v6215_v16  ;;  %v6057_v1 = vld [vmem:[#allocation15 + $0x98] sm:$0xf0]  ;;  %v7379_v4 = vld [vmem:[#allocation15 + $0x18c] sm:$0xf]  ;;  %v6167_v34 = vld [vmem:[#allocation15 + $0x168] sm:$0xf] }
 0x2b1   : > { %v8547_v17 = vadd.f32 1.0, %v7764_v25  ;;  %v7766_v27 = vpop.eup %7765  ;;  %v7377_v16 = vld [vmem:[#allocation15 + $0x174] sm:$0xf0] }
 0x2b2   : > { %2777 = vmatpush.bf16.msrb.mxu2 %v6144_v22  ;;  %v7355_v22 = vld [vmem:[#allocation15 + $0xcc] sm:$0xf]  ;;  %v6168_v21 = vor.u32 %v7377_v16, %v6167_v34 }
 0x2b3   : > { %2799 = vmatpush.bf16.msra.mxu0 %v6212_v55  ;;  %v7334_v55 = vld [vmem:[#allocation15 + $0x24] sm:$0xf]  ;;  %vm2322_vm13 = vweird.f32 %v8547_v17 }
 0x2b4   : > { %v6004_v3 = vor.u32 %v7334_v55, %v6001_v43  ;;  %v6199_v55 = vld [vmem:[#allocation15 + $0x1a8] sm:$0xf]  ;;  %v7385_v43 = vld [vmem:[#allocation15 + $0x1b4] sm:$0xf0] }
 0x2b6   : > { %2778 = vmatpush.bf16.msrb.mxu2 %v6128_v38  ;;  %v6000_v38 = vor.u32 %v7336_v6, %v5999_v26  ;;  %v7373_v26 = vld [vmem:[#allocation15 + $0x154] sm:$0xf0]  ;;  %v7339_v6 = vld [vmem:[#allocation15 + $0x4c] sm:$0xf] }
 0x2b7   : > { %2800 = vmatpush.bf16.msra.mxu0 %v6196_v49  ;;  %v7348_v49 = vld [vmem:[#allocation15 + $0x8c] sm:$0xf0] }
 0x2ba   : > { %2779 = vmatpush.bf16.msrb.mxu2 %v6112_v40 }
 0x2bb   : > { %2801 = vmatpush.bf16.msra.mxu0 %v6180_v42  ;;  %v6116_v42 = vor.u32 %v7362_v58, %v6113_v60  ;;  %v7332_v58 = vld [vmem:[#allocation15 + $0xc] sm:$0xf0]  ;;  %v6183_v60 = vld [vmem:[#allocation15 + $0x188] sm:$0xf] }
 0x2be   : > { %2280 = vmatmul.bf16.vlgmr.msrb.gmra.mxu0 %v8471_v11  ;;  %v6068_v11 = vor.u32 %v7350_v45, %v6065_v5  ;;  %v7366_v45 = vld [vmem:[#allocation15 + $0x124] sm:$0xf]  ;;  %v8545_v5 = vadd.f32 1.0, %v7762_v32  ;;  %2824 = vmatpush.bf16.msra.mxu2 %v6232_v59 }
 0x2bf   : > { %2802 = vmatpush.bf16.msra.mxu0 %v6164_v8  ;;  %v6132_v47 = vor.u32 %v7366_v45, %v6129_v46  ;;  %v6236_v8 = vor.u32 %v7391_v36, %v6233_v7  ;;  %v7351_v45 = vld [vmem:[#allocation15 + $0xac] sm:$0xf]  ;;  %v6073_v46 = vld [vmem:[#allocation15 + $0xb8] sm:$0xf0]  ;;  %v2326_v7 = vand.u32 2147483647, %v8547_v17 }
 0x2c0   : > { %2787 = vmatpush.bf16.msrb.mxu3 %v6068_v11  ;;  %v6047_v11 = vld [vmem:[#allocation15 + $0x80] sm:$0xf]  ;;  %7767 = vrcp.f32 %v8545_v5  ;;  %vm2307_vm11 = vweird.f32 %v8545_v5 }
 0x2c1   : > { %v6048_v51 = vor.u32 %v7348_v49, %v6047_v11  ;;  %7769 = vrcp.f32 %v8547_v17  ;;  %v6076_v11 = vor.u32 %v7351_v45, %v6073_v46  ;;  %v7383_v49 = vld [vmem:[#allocation15 + $0x1ac] sm:$0xf]  ;;  %v6153_v45 = vld [vmem:[#allocation15 + $0x158] sm:$0xf0]  ;;  %v6071_v46 = vld [vmem:[#allocation15 + $0xa8] sm:$0xf] }
 0x2c2   : > { %2825 = vmatpush.bf16.msra.mxu2 %v6216_v28  ;;  %vm2327_vm0 = vcmp.eq.f32.partialorder %v2326_v7, 8.507059e+37  ;;  %v6039_v7 = vld [vmem:[#allocation15 + $0x68] sm:$0xf] }
 0x2c3   : > { %2803 = vmatpush.bf16.msra.mxu0 %v6148_v30  ;;  %2762 = vmatpush.bf16.msrb.mxu1 %v6048_v51  ;;  %v7387_v30 = vld [vmem:[#allocation15 + $0x1cc] sm:$0xf]  ;;  %v6201_v51 = vld [vmem:[#allocation15 + $0x1b8] sm:$0xf0] }
 0x2c4   : > { %2788 = vmatpush.bf16.msrb.mxu3 %v6052_v62  ;;  %v5988_v62 = vor.u32 %v7330_v54, %v5985_v57  ;;  %v6220_v33 = vor.u32 %v7387_v30, %v6217_v31  ;;  %v2328_v54 = vand.u32 2147483648, %v8547_v17  ;;  %v6204_v40 = vor.u32 %v7383_v49, %v6201_v51  ;;  %v5983_v57 = vld [vmem:[#allocation15] sm:$0xf]  ;;  %v6087_v30 = vld [vmem:[#allocation15 + $0xc8] sm:$0xf] }
 0x2c5   : > { %v7357_v31 = vld [vmem:[#allocation15 + $0xd4] sm:$0xf0] }
 0x2c6   : > { %v8554_v35 = vpop.eup %7767  ;;  %v7353_v51 = vld [vmem:[#allocation15 + $0xb4] sm:$0xf0] }
 0x2c7   : > { %2804 = vmatpush.bf16.msra.mxu0 %v6132_v47  ;;  %2763 = vmatpush.bf16.msrb.mxu1 %v6032_v2  ;;  %v8556_v12 = vpop.eup %7769  ;;  %v6200_v47 = vor.u32 %v7385_v43, %v6199_v55  ;;  %v2303_v53 = vmul.f32 %v8554_v35, %v8545_v5  ;;  %v6060_v2 = vor.u32 %v7347_v63, %v6057_v1  ;;  %v6025_v55 = vld [vmem:[#allocation15 + $0x58] sm:$0xf0]  ;;  %v7371_v43 = vld [vmem:[#allocation15 + $0x14c] sm:$0xf]  ;;  %vm2308_vm12 = vweird.f32 %v8554_v35 }
 0x2c8   : > { %2789 = vmatpush.bf16.msrb.mxu3 %v6036_v37  ;;  %v6108_v37 = vor.u32 %v7359_v23, %v6105_v52  ;;  %v2318_v41 = vmul.f32 %v8556_v12, %v8547_v17  ;;  %v6185_v23 = vld [vmem:[#allocation15 + $0x198] sm:$0xf0]  ;;  %v6103_v52 = vld [vmem:[#allocation15 + $0xe8] sm:$0xf]  ;;  %v6028_v49 = vor.u32 %v7339_v6, %v6025_v55  ;;  %v7367_v63 = vld [vmem:[#allocation15 + $0x12c] sm:$0xf]  ;;  %vm2323_vm10 = vweird.f32 %v8556_v12 }
 0x2c9   : > { %2826 = vmatpush.bf16.msra.mxu2 %v6200_v47  ;;  %v2304_v59 = vsub.f32 1.0, %v2303_v53  ;;  %v6135_v53 = vld [vmem:[#allocation15 + $0x128] sm:$0xf]  ;;  %vm8584_vm14 = vmor %vm2322_vm13, %vm2323_vm10 }
 0x2ca   : > { %vm8595_vm15 = vmor %vm2307_vm11, %vm2308_vm12 }
 0x2cb   : > { %2805 = vmatpush.bf16.msra.mxu0 %v6116_v42  ;;  %2764 = vmatpush.bf16.msrb.mxu1 %v6016_v18  ;;  %v7381_v42 = vld [vmem:[#allocation15 + $0x194] sm:$0xf0]  ;;  %v7343_v18 = vld [vmem:[#allocation15 + $0x6c] sm:$0xf]  ;;  %v2305_v47 = vmul.f32 %v8554_v35, %v2304_v59 }
 0x2cc   : > { %2790 = vmatpush.bf16.msrb.mxu3 %v6020_v29  ;;  %v6092_v29 = vor.u32 %v7355_v22, %v6089_v24  ;;  %v6184_v0 = vor.u32 %v7381_v42, %v6183_v60  ;;  %v6041_v22 = vld [vmem:[#allocation15 + $0x78] sm:$0xf0]  ;;  %v7375_v24 = vld [vmem:[#allocation15 + $0x16c] sm:$0xf]  ;;  %v6072_v60 = vor.u32 %v7353_v51, %v6071_v46  ;;  %v7341_v51 = vld [vmem:[#allocation15 + $0x54] sm:$0xf0] }
 0x2cd   : > { %v6044_v28 = vor.u32 %v7343_v18, %v6041_v22  ;;  %v6009_v42 = vld [vmem:[#allocation15 + $0x38] sm:$0xf0]  ;;  %v2329_v18 = vor.u32 1.1754944e-38, %v2328_v54 }
 0x2ce   : > { %2827 = vmatpush.bf16.msra.mxu2 %v6184_v0 }
 0x2cf   : > { %2850 = vmatpush.bf16.msrb.mxu0 %v6236_v8  ;;  %2765 = vmatpush.bf16.msrb.mxu1 %v6000_v38  ;;  %v7361_v8 = vld [vmem:[#allocation15 + $0xf4] sm:$0xf0] }
 0x2d0   : > { %2791 = vmatpush.bf16.msrb.mxu3 %v6004_v3  ;;  %v8558_v3 = vadd.f32 1.0, %v7766_v27  ;;  %v6104_v10 = vor.u32 %v7361_v8, %v6103_v52  ;;  %v6169_v27 = vld [vmem:[#allocation15 + $0x178] sm:$0xf0]  ;;  %v7349_v52 = vld [vmem:[#allocation15 + $0x94] sm:$0xf0] }
 0x2d1   : > { %v6390_v8 = vld [vmem:[#allocation13 + $0xf0] sm:$0xf0] }
 0x2d2   : > { %7771 = vrcp.f32 %v8558_v3  ;;  %2828 = vmatpush.bf16.msra.mxu2 %v6168_v21  ;;  %vm2337_vm3 = vweird.f32 %v8558_v3 }
 0x2d3   : > { %2851 = vmatpush.bf16.msrb.mxu0 %v6220_v33 }
 0x2d4   : > { %2792 = vmatpush.bf16.msrb.mxu3 %v5988_v62  ;;  %v5984_v62 = vor.u32 %v7332_v58, %v5983_v57  ;;  %v6156_v58 = vor.u32 %v7371_v43, %v6153_v45  ;;  %v2289_v45 = vld [vmem:[#allocation3] sm:$0xff] }
 0x2d6   : > { %2766 = vmatpush.bf16.msrb.mxu1 %v5984_v62  ;;  %v7335_v62 = vld [vmem:[#allocation15 + $0x2c] sm:$0xf] }
 0x2d7   : > { %2852 = vmatpush.bf16.msrb.mxu0 %v6204_v40  ;;  %v7859_v40 = vld [vmem:[#allocation5 + $0x18] sm:$0xff] }
 0x2d8   : > { %2837 = vmatpush.bf16.msra.mxu3 %v6108_v37  ;;  %v2319_v37 = vsub.f32 1.0, %v2318_v41  ;;  %v8569_v38 = vpop.eup %7771  ;;  %v7369_v41 = vld [vmem:[#allocation15 + $0x134] sm:$0xf0]  ;;  %v2039_v57 = vadd.f32 %v7859_v40, %v8372_v39  ;;  %v2311_v39 = vand.u32 2147483647, %v8545_v5 }
 0x2d9   : > { %v2333_v1 = vmul.f32 %v8569_v38, %v8558_v3  ;;  %vm2338_vm2 = vweird.f32 %v8569_v38 }
 0x2da   : > { %2811 = vmatpush.bf16.msra.mxu1 %v6104_v10  ;;  %v2320_v33 = vmul.f32 %v8556_v12, %v2319_v37  ;;  %v2306_v37 = vadd.f32 %v8554_v35, %v2305_v47  ;;  %v2313_v10 = vand.u32 2147483648, %v8545_v5  ;;  %vm2312_vm1 = vcmp.eq.f32.partialorder %v2311_v39, 8.507059e+37  ;;  %v6023_v47 = vld [vmem:[#allocation15 + $0x48] sm:$0xf]  ;;  %vm2339_vm4 = vmor %vm2337_vm3, %vm2338_vm2 }
 0x2db   : > { %v2334_v21 = vsub.f32 1.0, %v2333_v1  ;;  %v5991_v1 = vld [vmem:[#allocation15 + $0x8] sm:$0xf] }
 0x2dc   : > { %2838 = vmatpush.bf16.msra.mxu3 %v6092_v29  ;;  %v6172_v29 = vor.u32 %v7375_v24, %v6169_v27  ;;  %v6119_v27 = vld [vmem:[#allocation15 + $0x108] sm:$0xf]  ;;  %v2310_v54 = vsel %vm8595_vm15, %v8554_v35, %v2306_v37  ;;  %v6388_v37 = vld [vmem:[#allocation13 + $0xe0] sm:$0xf] }
 0x2dd   : > { %v2335_v35 = vmul.f32 %v8569_v38, %v2334_v21 }
 0x2df   : > { %v2336_v40 = vadd.f32 %v8569_v38, %v2335_v35 }
 0x2e0   : > { %2839 = vmatpush.bf16.msra.mxu3 %v6076_v11 }
 0x2e4   : > { %2840 = vmatpush.bf16.msra.mxu3 %v6060_v2  ;;  %v2321_v2 = vadd.f32 %v8556_v12, %v2320_v33  ;;  %v2314_v33 = vor.u32 1.1754944e-38, %v2313_v10 }
 0x2e6   : > { %v2325_v24 = vsel %vm8584_vm14, %v8556_v12, %v2321_v2  ;;  %v2315_v46 = vsel %vm2312_vm1, %v2314_v33, %v2310_v54  ;;  %v7426_v54 = vld [vmem:[#allocation13 + $0xc4] sm:$0xf] }
 0x2e8   : > { %2841 = vmatpush.bf16.msra.mxu3 %v6044_v28  ;;  %v7365_v28 = vld [vmem:[#allocation15 + $0x114] sm:$0xf0] }
 0x2e9   : > { %v6120_v5 = vor.u32 %v7365_v28, %v6119_v27  ;;  %v6372_v27 = vld [vmem:[#allocation13 + $0xc0] sm:$0xf] }
 0x2ec   : > { %2842 = vmatpush.bf16.msra.mxu3 %v6028_v49 }
 0x2fe   : > { %v8550_v61 = vpop.permute.xlu0 %7720 }
 0x2ff   : > { %v7722_v13 = vunpack.i.l.bf16 %v8550_v61 }
 0x32b   : > { %v2011_v32 = vpop.f32.mrf.mxu0 }
 0x32c   : > { %v2024_v25 = vmul.f32 %v7722_v13, %v2011_v32  ;;  %v6188_v13 = vor.u32 %v7379_v4, %v6185_v23  ;;  %v6151_v32 = vld [vmem:[#allocation15 + $0x148] sm:$0xf]  ;;  %v6137_v4 = vld [vmem:[#allocation15 + $0x138] sm:$0xf0] }
 0x32d   : > { %v6152_v11 = vor.u32 %v7373_v26, %v6151_v32  ;;  %v6055_v23 = vld [vmem:[#allocation15 + $0x88] sm:$0xf]  ;;  %v6140_v34 = vor.u32 %v7367_v63, %v6137_v4  ;;  %v6121_v32 = vld [vmem:[#allocation15 + $0x118] sm:$0xf0]  ;;  %v7345_v26 = vld [vmem:[#allocation15 + $0x74] sm:$0xf0]  ;;  %v2340_v63 = vsel %vm2339_vm4, %v8569_v38, %v2336_v40 }
 0x32e   : > { %2025 = vst [vmem:[%s8342_s30] sm:$0xff] %v2024_v25  ;;  %2853 = vmatpush.bf16.msrb.mxu0 %v6188_v13  ;;  %v6088_v25 = vor.u32 %v7357_v31, %v6087_v30  ;;  %v6012_v13 = vor.u32 %v7335_v62, %v6009_v42  ;;  %v6056_v16 = vor.u32 %v7349_v52, %v6055_v23  ;;  %v5993_v30 = vld [vmem:[#allocation15 + $0x18] sm:$0xf0]  ;;  %v7363_v31 = vld [vmem:[#allocation15 + $0x10c] sm:$0xf]  ;;  %v2341_v62 = vand.u32 2147483647, %v8558_v3 }
 0x32f   : > { %2829 = vmatpush.bf16.msra.mxu2 %v6152_v11  ;;  %v6124_v17 = vor.u32 %v7363_v31, %v6121_v32  ;;  %v6040_v55 = vor.u32 %v7345_v26, %v6039_v7  ;;  %v7429_v31 = vld [vmem:[#allocation13 + $0xd4] sm:$0xf0]  ;;  %v7422_v7 = vld [vmem:[#allocation13 + $0xa4] sm:$0xf]  ;;  %v6358_v26 = vld [vmem:[#allocation13 + $0xb0] sm:$0xf0] }
 0x330   : > { %2812 = vmatpush.bf16.msra.mxu1 %v6088_v25  ;;  %2843 = vmatpush.bf16.msra.mxu3 %v6012_v13  ;;  %v2330_v25 = vsel %vm2327_vm0, %v2329_v18, %v2325_v24  ;;  %vm2342_vm5 = vcmp.eq.f32.partialorder %v2341_v62, 8.507059e+37  ;;  %v7430_v13 = vld [vmem:[#allocation13 + $0xe4] sm:$0xf]  ;;  %v6361_v35 = vor.u32 %v7422_v7, %v6358_v26  ;;  %v7400_v7 = vld [vmem:[#allocation16 + $0x30] sm:$0xff]  ;;  %v7399_v26 = vld [vmem:[#allocation16 + $0x28] sm:$0xff] }
 0x331   : > { %v2348_v11 = vmul.f32 %v2330_v25, %v2289_v45  ;;  %v6393_v24 = vor.u32 %v7430_v13, %v6390_v8  ;;  %v6356_v25 = vld [vmem:[#allocation13 + $0xa0] sm:$0xf]  ;;  %v7414_v62 = vld [vmem:[#allocation13 + $0x64] sm:$0xf] }
 0x332   : > { %2854 = vmatpush.bf16.msrb.mxu0 %v6172_v29  ;;  %v7331_v29 = vld [vmem:[#allocation15 + $0xc] sm:$0xf]  ;;  %v6340_v45 = vld [vmem:[#allocation13 + $0x80] sm:$0xf] }
 0x333   : > { %v2013_v36 = vpop.f32.mrf.mxu0  ;;  %v5996_v12 = vor.u32 %v7331_v29, %v5993_v30  ;;  %v7428_v29 = vld [vmem:[#allocation13 + $0xcc] sm:$0xf0]  ;;  %v6380_v30 = vld [vmem:[#allocation13 + $0xc8] sm:$0xf]  ;;  %v6292_v8 = vld [vmem:[#allocation13 + $0x20] sm:$0xf] }
 0x334   : > { %v6136_v36 = vor.u32 %v7369_v41, %v6135_v53  ;;  %2813 = vmatpush.bf16.msra.mxu1 %v6072_v60  ;;  %v6024_v53 = vor.u32 %v7341_v51, %v6023_v47  ;;  %v2343_v60 = vand.u32 2147483648, %v8558_v3  ;;  %v7432_v3 = vld [vmem:[#allocation13 + $0xec] sm:$0xf0]  ;;  %v6373_v32 = vor.u32 %v7428_v29, %v6372_v27  ;;  %v6348_v51 = vld [vmem:[#allocation13 + $0x88] sm:$0xf] }
 0x335   : > { %2844 = vmatpush.bf16.msra.mxu3 %v5996_v12  ;;  %v6389_v22 = vor.u32 %v7432_v3, %v6388_v37  ;;  %v6381_v12 = vor.u32 %v7429_v31, %v6380_v30  ;;  %v7420_v47 = vld [vmem:[#allocation13 + $0x8c] sm:$0xf0]  ;;  %v6316_v37 = vld [vmem:[#allocation13 + $0x48] sm:$0xf]  ;;  %v7413_v3 = vld [vmem:[#allocation13 + $0x54] sm:$0xf0] }
 0x336   : > { %2855 = vmatpush.bf16.msrb.mxu0 %v6156_v58  ;;  %2830 = vmatpush.bf16.msra.mxu2 %v6136_v36  ;;  %v7337_v58 = vld [vmem:[#allocation15 + $0x34] sm:$0xf0]  ;;  %v2344_v2 = vor.u32 1.1754944e-38, %v2343_v60  ;;  %v7416_v60 = vld [vmem:[#allocation13 + $0x6c] sm:$0xf0] }
 0x337   : > { %v6276_v29 = vld [vmem:[#allocation13] sm:$0xf]  ;;  %v6284_v30 = vld [vmem:[#allocation13 + $0x8] sm:$0xf]  ;;  %v7405_v31 = vld [vmem:[#allocation13 + $0x14] sm:$0xf0] }
 0x338   : > { %2814 = vmatpush.bf16.msra.mxu1 %v6056_v16  ;;  %v2345_v52 = vsel %vm2342_vm5, %v2344_v2, %v2340_v63  ;;  %v7433_v16 = vld [vmem:[#allocation13 + $0xf4] sm:$0xf0]  ;;  %v6332_v63 = vld [vmem:[#allocation13 + $0x68] sm:$0xf] }
 0x33a   : > { %2856 = vmatpush.bf16.msrb.mxu0 %v6140_v34  ;;  %2831 = vmatpush.bf16.msra.mxu2 %v6120_v5  ;;  %v6396_v34 = vld [vmem:[#allocation13 + $0xe8] sm:$0xf]  ;;  %v6374_v5 = vld [vmem:[#allocation13 + $0xd0] sm:$0xf0] }
 0x33b   : > { %v2281_v0 = vpop.f32.mrf.mxu0  ;;  %v6397_v28 = vor.u32 %v7433_v16, %v6396_v34  ;;  %v6377_v33 = vor.u32 %v7426_v54, %v6374_v5  ;;  %v7406_v34 = vld [vmem:[#allocation13 + $0x24] sm:$0xf]  ;;  %v6294_v16 = vld [vmem:[#allocation13 + $0x30] sm:$0xf0] }
 0x33c   : > { %v2288_v59 = vadd.f32 %v2281_v0, %v2039_v57  ;;  %2815 = vmatpush.bf16.msra.mxu1 %v6040_v55  ;;  %v6007_v57 = vld [vmem:[#allocation15 + $0x28] sm:$0xf]  ;;  %v7333_v0 = vld [vmem:[#allocation15 + $0x14] sm:$0xf0]  ;;  %v7402_v54 = vld [vmem:[#allocation13 + $0x4] sm:$0xf] }
 0x33d   : > { %v6008_v42 = vor.u32 %v7337_v58, %v6007_v57  ;;  %v5992_v4 = vor.u32 %v7333_v0, %v5991_v1  ;;  %v7425_v55 = vld [vmem:[#allocation13 + $0xb4] sm:$0xf0]  ;;  %v6324_v57 = vld [vmem:[#allocation13 + $0x60] sm:$0xf]  ;;  %v6278_v5 = vld [vmem:[#allocation13 + $0x10] sm:$0xf0] }
 0x33e   : > { %7773 = vtanh.f32 %v2288_v59  ;;  %2857 = vmatpush.bf16.msrb.mxu0 %v6124_v17  ;;  %v7424_v17 = vld [vmem:[#allocation13 + $0xac] sm:$0xf0]  ;;  %v7417_v1 = vld [vmem:[#allocation13 + $0x74] sm:$0xf0]  ;;  %v6325_v0 = vor.u32 %v7416_v60, %v6324_v57 }
 0x340   : > { %2816 = vmatpush.bf16.msra.mxu1 %v6024_v53  ;;  %v7421_v53 = vld [vmem:[#allocation13 + $0x94] sm:$0xf0] }
 0x341   : > { %v6349_v58 = vor.u32 %v7421_v53, %v6348_v51  ;;  %v7395_v51 = vld [vmem:[#allocation16 + $0x8] sm:$0xff] }
 0x343   : > { %v2283_v6 = vpop.f32.mrf.mxu0 }
 0x344   : > { %v7774_v43 = vpop.eup %7773  ;;  %2817 = vmatpush.bf16.msra.mxu1 %v6008_v42  ;;  %v6364_v6 = vld [vmem:[#allocation13 + $0xa8] sm:$0xf]  ;;  %v6326_v42 = vld [vmem:[#allocation13 + $0x70] sm:$0xf0] }
 0x345   : > { %v2349_v49 = vmul.f32 %v7774_v43, %v2315_v46  ;;  %v6357_v43 = vor.u32 %v7424_v17, %v6356_v25  ;;  %v6365_v46 = vor.u32 %v7425_v55, %v6364_v6  ;;  %v6329_v2 = vor.u32 %v7414_v62, %v6326_v42  ;;  %v7401_v17 = vld [vmem:[#allocation16 + $0x38] sm:$0xff]  ;;  %v7398_v6 = vld [vmem:[#allocation16 + $0x20] sm:$0xff] }
 0x346   : > { %v6285_v25 = vor.u32 %v7405_v31, %v6284_v30  ;;  %v7397_v55 = vld [vmem:[#allocation16 + $0x18] sm:$0xff] }
 0x347   : > { %v2350_v41 = vadd.f32 %v2349_v49, %v2348_v11  ;;  %v7418_v11 = vld [vmem:[#allocation13 + $0x84] sm:$0xf]  ;;  %v6342_v49 = vld [vmem:[#allocation13 + $0x90] sm:$0xf0] }
 0x348   : > { %2818 = vmatpush.bf16.msra.mxu1 %v5992_v4  ;;  %v6345_v40 = vor.u32 %v7418_v11, %v6342_v49  ;;  %v6308_v4 = vld [vmem:[#allocation13 + $0x40] sm:$0xf] }
 0x349   : > { %7775 = vtanh.f32 %v2350_v41  ;;  %2353 = vst [vmem:[#allocation3] sm:$0xff] %v2350_v41  ;;  %v6341_v41 = vor.u32 %v7420_v47, %v6340_v45  ;;  %v7396_v47 = vld [vmem:[#allocation16 + $0x10] sm:$0xff] }
 0x34f   : > { %v7776_v23 = vpop.eup %7775 }
 0x350   : > { %v2352_v59 = vmul.f32 %v7776_v23, %v2345_v52  ;;  %v6333_v23 = vor.u32 %v7417_v1, %v6332_v63  ;;  %v7412_v52 = vld [vmem:[#allocation13 + $0x4c] sm:$0xf0]  ;;  %v7394_v63 = vld [vmem:[#allocation16] sm:$0xff]  ;;  %v7431_v1 = vld [vmem:[#allocation13 + $0xec] sm:$0xf] }
 0x352   : > { %v2354_v39 = vpack.c.bf16 %v2352_v59, %v2352_v59  ;;  %v7410_v59 = vld [vmem:[#allocation13 + $0x44] sm:$0xf] }
 0x354   : > { %2355 = vst [vmem:[#allocation2] sm:$0xf] %v2354_v39 }
 0x355   : > { %2356 = vst [vmem:[#allocation4] sm:$0xf] %v2354_v39  ;;  %v6310_v39 = vld [vmem:[#allocation13 + $0x50] sm:$0xf0] }
 0x356   : > { %v6313_v13 = vor.u32 %v7410_v59, %v6310_v39  ;;  %v7427_v59 = vld [vmem:[#allocation13 + $0xcc] sm:$0xf]  ;;  %v6382_v39 = vld [vmem:[#allocation13 + $0xd8] sm:$0xf0] }
 0x35c   : > { %v2357_v36 = vld [vmem:[#allocation4] sm:$0xff] }
 0x35d   : > { %v2433_v10 = vunpack.c.l.b16 %v2357_v36  ;;  %v2434_v38 = vunpack.c.h.b16 %v2357_v36  ;;  %v6309_v36 = vor.u32 %v7412_v52, %v6308_v4 }
 0x35f   : > { %v8614_v18 = vpack.c.b16 %v2433_v10, %v2433_v10  ;;  %v8616_v21 = vpack.c.b16 %v2434_v38, %v2434_v38  ;;  %v6317_v10 = vor.u32 %v7413_v3, %v6316_v37  ;;  %v7408_v38 = vld [vmem:[#allocation13 + $0x2c] sm:$0xf0]  ;;  %v6385_v3 = vor.u32 %v7427_v59, %v6382_v39 }
 0x360   : > { %v6293_v27 = vor.u32 %v7408_v38, %v6292_v8  ;;  %v7423_v38 = vld [vmem:[#allocation13 + $0xac] sm:$0xf] }
 0x361   : > { %2767 = vmatmul.bf16.vlgmr.msrb.gmra.mxu1 %v8614_v18  ;;  %2780 = vmatmul.bf16.vlgmr.msrb.gmra.mxu2 %v8616_v21 }
 0x362   : > { %2793 = vmatmul.bf16.vlgmr.msrb.gmra.mxu3 %v8614_v18  ;;  %2806 = vmatmul.bf16.vlgmr.msra.gmra.mxu0 %v8616_v21 }
 0x363   : > { %3226 = vmatpush.bf16.msrb.mxu2 %v6389_v22  ;;  %3239 = vmatpush.bf16.msrb.mxu3 %v6393_v24  ;;  %v6300_v22 = vld [vmem:[#allocation13 + $0x28] sm:$0xf]  ;;  %v7409_v24 = vld [vmem:[#allocation13 + $0x34] sm:$0xf0] }
 0x364   : > { %3252 = vmatpush.bf16.msra.mxu0 %v6397_v28  ;;  %v6297_v28 = vor.u32 %v7406_v34, %v6294_v16  ;;  %2994 = vmatpush.bf16.msrb.mxu1 %v7401_v17  ;;  %v6366_v34 = vld [vmem:[#allocation13 + $0xb8] sm:$0xf0] }
 0x367   : > { %3227 = vmatpush.bf16.msrb.mxu2 %v6373_v32  ;;  %3240 = vmatpush.bf16.msrb.mxu3 %v6377_v33  ;;  %v6281_v33 = vor.u32 %v7402_v54, %v6278_v5  ;;  %v7419_v54 = vld [vmem:[#allocation13 + $0x8c] sm:$0xf]  ;;  %v6350_v5 = vld [vmem:[#allocation13 + $0x98] sm:$0xf0] }
 0x368   : > { %3253 = vmatpush.bf16.msra.mxu0 %v6381_v12  ;;  %v8626_v12 = vld [vmem:[#allocation2] sm:$0xf]  ;;  %2995 = vmatpush.bf16.msrb.mxu1 %v7400_v7  ;;  %v6353_v31 = vor.u32 %v7419_v54, %v6350_v5 }
 0x36b   : > { %3228 = vmatpush.bf16.msrb.mxu2 %v6357_v43  ;;  %3241 = vmatpush.bf16.msrb.mxu3 %v6361_v35  ;;  %v2422_v43 = vld [vmem:[%s8972_s8] sm:$0xf] }
 0x36c   : > { %3254 = vmatpush.bf16.msra.mxu0 %v6365_v46  ;;  %2996 = vmatpush.bf16.msrb.mxu1 %v7399_v26  ;;  %v2424_v45 = vperm.slane %v2422_v43, 0  ;;  %v2425_v11 = vperm.slane %v2422_v43, 1  ;;  %v7415_v26 = vld [vmem:[#allocation13 + $0x6c] sm:$0xf] }
 0x36f   : > { %3229 = vmatpush.bf16.msrb.mxu2 %v6341_v41  ;;  %3242 = vmatpush.bf16.msrb.mxu3 %v6345_v40 }
 0x370   : > { %3255 = vmatpush.bf16.msra.mxu0 %v6349_v58  ;;  %2997 = vmatpush.bf16.msrb.mxu1 %v7398_v6  ;;  %v6334_v6 = vld [vmem:[#allocation13 + $0x78] sm:$0xf0] }
 0x371   : > { %2819 = vmatmul.bf16.vlgmr.msra.gmra.mxu1 %v8614_v18  ;;  %2832 = vmatmul.bf16.vlgmr.msra.gmra.mxu2 %v8616_v21 }
 0x372   : > { %2845 = vmatmul.bf16.vlgmr.msra.gmra.mxu3 %v8614_v18  ;;  %2858 = vmatmul.bf16.vlgmr.msrb.gmra.mxu0 %v8616_v21  ;;  %v6301_v18 = vor.u32 %v7409_v24, %v6300_v22  ;;  %v7404_v21 = vld [vmem:[#allocation13 + $0xc] sm:$0xf0] }
 0x373   : > { %3230 = vmatpush.bf16.msrb.mxu2 %v6325_v0  ;;  %3243 = vmatpush.bf16.msrb.mxu3 %v6329_v2  ;;  %v6277_v32 = vor.u32 %v7404_v21, %v6276_v29  ;;  %v6398_v0 = vld [vmem:[#allocation13 + $0xf8] sm:$0xf0] }
 0x374   : > { %3256 = vmatpush.bf16.msra.mxu0 %v6333_v23  ;;  %2998 = vmatpush.bf16.msrb.mxu1 %v7397_v55  ;;  %v6401_v4 = vor.u32 %v7431_v1, %v6398_v0  ;;  %v6337_v55 = vor.u32 %v7415_v26, %v6334_v6 }
 0x377   : > { %3231 = vmatpush.bf16.msrb.mxu2 %v6309_v36  ;;  %3244 = vmatpush.bf16.msrb.mxu3 %v6313_v13  ;;  %v2426_v13 = vperm.slane %v2422_v43, 2 }
 0x378   : > { %3257 = vmatpush.bf16.msra.mxu0 %v6317_v10  ;;  %2999 = vmatpush.bf16.msrb.mxu1 %v7396_v47 }
 0x37b   : > { %3232 = vmatpush.bf16.msrb.mxu2 %v6293_v27  ;;  %3245 = vmatpush.bf16.msrb.mxu3 %v6297_v28  ;;  %v2427_v27 = vperm.slane %v2422_v43, 3  ;;  %v6369_v28 = vor.u32 %v7423_v38, %v6366_v34 }
 0x37c   : > { %3258 = vmatpush.bf16.msra.mxu0 %v6301_v18  ;;  %3000 = vmatpush.bf16.msrb.mxu1 %v7395_v51 }
 0x37f   : > { %3233 = vmatpush.bf16.msrb.mxu2 %v6277_v32  ;;  %3246 = vmatpush.bf16.msrb.mxu3 %v6281_v33 }
 0x380   : > { %3259 = vmatpush.bf16.msra.mxu0 %v6285_v25  ;;  %3001 = vmatpush.bf16.msrb.mxu1 %v7394_v63 }
 0x382   : > { %3234 = vmatmul.bf16.vlgmr.msrb.gmra.mxu2 %v8626_v12  ;;  %3247 = vmatmul.bf16.vlgmr.msrb.gmra.mxu3 %v8626_v12 }
 0x383   : > { %3260 = vmatmul.bf16.vlgmr.msra.gmra.mxu0 %v8626_v12 }
 0x384   : > { %3265 = vmatpush.bf16.msra.mxu1 %v6401_v4 }
 0x388   : > { %3266 = vmatpush.bf16.msra.mxu1 %v6385_v3 }
 0x38c   : > { %3267 = vmatpush.bf16.msra.mxu1 %v6369_v28 }
 0x390   : > { %3268 = vmatpush.bf16.msra.mxu1 %v6353_v31 }
 0x394   : > { %3269 = vmatpush.bf16.msra.mxu1 %v6337_v55 }
 0x3de   : > { %v2768_v35 = vpop.f32.mrf.mxu1 }
 0x3df   : > { %v2807_v46 = vpop.f32.mrf.mxu0  ;;  %v2769_v49 = vadd.f32 %v2768_v35, %v2424_v45 }
 0x3e4   : > { %v2781_v53 = vpop.f32.mrf.mxu2 }
 0x3e5   : > { %v2782_v41 = vadd.f32 %v2781_v53, %v2769_v49  ;;  %v2794_v40 = vpop.f32.mrf.mxu3  ;;  %v7411_v53 = vld [vmem:[#allocation13 + $0x4c] sm:$0xf] }
 0x3e6   : > { %v2795_v57 = vadd.f32 %v2794_v40, %v2425_v11  ;;  %v2770_v58 = vpop.f32.mrf.mxu1 }
 0x3e7   : > { %v6237_v60 = vmul.f32 -1.442695, %v2782_v41  ;;  %v2809_v62 = vpop.f32.mrf.mxu0  ;;  %v6318_v41 = vld [vmem:[#allocation13 + $0x58] sm:$0xf0] }
 0x3e8   : > { %v2808_v42 = vadd.f32 %v2807_v46, %v2795_v57  ;;  %v6321_v58 = vor.u32 %v7411_v53, %v6318_v41  ;;  %v7494_v53 = vld [vmem:[#allocation15 + $0x1e4] sm:$0xf]  ;;  %v6649_v41 = vld [vmem:[#allocation15 + $0x1f0] sm:$0xf0] }
 0x3e9   : > { %7777 = vpow2.f32 %v6237_v60 }
 0x3ea   : > { %v6238_v2 = vmul.f32 -1.442695, %v2808_v42  ;;  %3270 = vmatpush.bf16.msra.mxu1 %v6321_v58 }
 0x3ec   : > { %7779 = vpow2.f32 %v6238_v2  ;;  %v2783_v23 = vpop.f32.mrf.mxu2  ;;  %v6633_v2 = vld [vmem:[#allocation15 + $0x1d0] sm:$0xf0] }
 0x3ed   : > { %v2796_v52 = vpop.f32.mrf.mxu3  ;;  %v7407_v23 = vld [vmem:[#allocation13 + $0x2c] sm:$0xf] }
 0x3ee   : > { %v2820_v37 = vpop.f32.mrf.mxu1  ;;  %v6302_v52 = vld [vmem:[#allocation13 + $0x38] sm:$0xf0] }
 0x3ef   : > { %v7778_v36 = vpop.eup %7777  ;;  %v2859_v8 = vpop.f32.mrf.mxu0  ;;  %v2821_v24 = vadd.f32 %v2820_v37, %v2426_v13  ;;  %v6305_v3 = vor.u32 %v7407_v23, %v6302_v52  ;;  %v7403_v13 = vld [vmem:[#allocation13 + $0xc] sm:$0xf]  ;;  %v6615_v52 = vld [vmem:[#allocation15 + $0x1a0] sm:$0xf] }
 0x3f0   : > { %v8634_v10 = vadd.f32 1.0, %v7778_v36 }
 0x3f1   : > { %3271 = vmatpush.bf16.msra.mxu1 %v6305_v3 }
 0x3f2   : > { %v7780_v16 = vpop.eup %7779  ;;  %7781 = vrcp.f32 %v8634_v10  ;;  %v2887_v49 = vand.u32 2147483648, %v8634_v10  ;;  %vm2881_vm7 = vweird.f32 %v8634_v10  ;;  %v2885_v57 = vand.u32 2147483647, %v8634_v10 }
 0x3f3   : > { %v8637_v22 = vadd.f32 1.0, %v7780_v16 }
 0x3f4   : > { %v2833_v29 = vpop.f32.mrf.mxu2  ;;  %v2888_v39 = vor.u32 1.1754944e-38, %v2887_v49  ;;  %vm2886_vm11 = vcmp.eq.f32.partialorder %v2885_v57, 8.507059e+37  ;;  %v6652_v57 = vor.u32 %v7494_v53, %v6649_v41  ;;  %v6569_v53 = vld [vmem:[#allocation15 + $0x150] sm:$0xf0] }
 0x3f5   : > { %7783 = vrcp.f32 %v8637_v22  ;;  %v2834_v18 = vadd.f32 %v2833_v29, %v2821_v24  ;;  %v2846_v21 = vpop.f32.mrf.mxu3  ;;  %v2902_v62 = vand.u32 2147483648, %v8637_v22  ;;  %v2900_v63 = vand.u32 2147483647, %v8637_v22  ;;  %v2863_v24 = vld [vmem:[#allocation3 + $0x8] sm:$0xff] }
 0x3f6   : > { %v2822_v30 = vpop.f32.mrf.mxu1  ;;  %v2847_v33 = vadd.f32 %v2846_v21, %v2427_v27  ;;  %vm2896_vm10 = vweird.f32 %v8637_v22 }
 0x3f7   : > { %v6239_v32 = vmul.f32 -1.442695, %v2834_v18  ;;  %v2861_v25 = vpop.f32.mrf.mxu0  ;;  %vm2901_vm13 = vcmp.eq.f32.partialorder %v2900_v63, 8.507059e+37 }
 0x3f8   : > { %v7782_v17 = vpop.eup %7781  ;;  %v2860_v45 = vadd.f32 %v2859_v8, %v2847_v33  ;;  %v6286_v8 = vld [vmem:[#allocation13 + $0x18] sm:$0xf0]  ;;  %v7496_v25 = vld [vmem:[#allocation15 + $0x1ec] sm:$0xf0] }
 0x3f9   : > { %v2877_v7 = vmul.f32 %v7782_v17, %v8634_v10  ;;  %7785 = vpow2.f32 %v6239_v32  ;;  %vm2882_vm6 = vweird.f32 %v7782_v17  ;;  %v2903_v10 = vor.u32 1.1754944e-38, %v2902_v62  ;;  %v6647_v32 = vld [vmem:[#allocation15 + $0x1e0] sm:$0xf]  ;;  %v7492_v62 = vld [vmem:[#allocation15 + $0x1cc] sm:$0xf0] }
 0x3fa   : > { %7787 = vtanh.f32 %v2860_v45  ;;  %vm8648_vm9 = vmor %vm2881_vm7, %vm2882_vm6  ;;  %v6289_v29 = vor.u32 %v7403_v13, %v6286_v8  ;;  %v6648_v26 = vor.u32 %v7496_v25, %v6647_v32  ;;  %v7486_v13 = vld [vmem:[#allocation15 + $0x1a4] sm:$0xf]  ;;  %v6617_v8 = vld [vmem:[#allocation15 + $0x1b0] sm:$0xf0] }
 0x3fb   : > { %v7784_v43 = vpop.eup %7783  ;;  %v2878_v35 = vsub.f32 1.0, %v2877_v7  ;;  %v6521_v7 = vld [vmem:[#allocation15 + $0xf0] sm:$0xf0]  ;;  %v6583_v32 = vld [vmem:[#allocation15 + $0x160] sm:$0xf] }
 0x3fc   : > { %v2892_v46 = vmul.f32 %v7784_v43, %v8637_v22  ;;  %v2835_v47 = vpop.f32.mrf.mxu2  ;;  %vm2897_vm8 = vweird.f32 %v7784_v43  ;;  %3272 = vmatpush.bf16.msra.mxu1 %v6289_v29  ;;  %3765 = vmatpush.bf16.msra.mxu3 %v6648_v26  ;;  %v7482_v29 = vld [vmem:[#allocation15 + $0x184] sm:$0xf]  ;;  %v6457_v25 = vld [vmem:[#allocation15 + $0x70] sm:$0xf0] }
 0x3fd   : > { %v2879_v11 = vmul.f32 %v7782_v17, %v2878_v35  ;;  %v2848_v51 = vpop.f32.mrf.mxu3  ;;  %vm2898_vm12 = vmor %vm2896_vm10, %vm2897_vm8  ;;  %v7478_v26 = vld [vmem:[#allocation15 + $0x164] sm:$0xf] }
 0x3fe   : > { %v2893_v40 = vsub.f32 1.0, %v2892_v46 }
 0x3ff   : > { %v7786_v60 = vpop.eup %7785  ;;  %v2880_v42 = vadd.f32 %v7782_v17, %v2879_v11 }
 0x400   : > { %v2894_v1 = vmul.f32 %v7784_v43, %v2893_v40  ;;  %v2875_v0 = vadd.f32 1.0, %v7786_v60  ;;  %v3261_v4 = vpop.f32.mrf.mxu0  ;;  %v7788_v16 = vpop.eup %7787  ;;  %v6631_v60 = vld [vmem:[#allocation15 + $0x1c0] sm:$0xf] }
 0x401   : > { %v2884_v59 = vsel %vm8648_vm9, %v7782_v17, %v2880_v42  ;;  %v8655_v37 = vadd.f32 %v3261_v4, %v8385_v9  ;;  %v7462_v17 = vld [vmem:[#allocation15 + $0xe4] sm:$0xf]  ;;  %v6632_v63 = vor.u32 %v7492_v62, %v6631_v60  ;;  %v7456_v60 = vld [vmem:[#allocation15 + $0xac] sm:$0xf0] }
 0x402   : > { %7789 = vrcp.f32 %v2875_v0  ;;  %v2895_v36 = vadd.f32 %v7784_v43, %v2894_v1  ;;  %v2889_v38 = vsel %vm2886_vm11, %v2888_v39, %v2884_v59  ;;  %v6524_v6 = vor.u32 %v7462_v17, %v6521_v7  ;;  %v7458_v42 = vld [vmem:[#allocation15 + $0xc4] sm:$0xf]  ;;  %v6505_v1 = vld [vmem:[#allocation15 + $0xd0] sm:$0xf0]  ;;  %v7488_v59 = vld [vmem:[#allocation15 + $0x1ac] sm:$0xf0] }
 0x403   : > { %v2923_v22 = vmul.f32 %v7788_v16, %v2889_v38  ;;  %v2915_v45 = vand.u32 2147483647, %v2875_v0  ;;  %vm2911_vm15 = vweird.f32 %v2875_v0  ;;  %v6508_v4 = vor.u32 %v7458_v42, %v6505_v1  ;;  %3766 = vmatpush.bf16.msra.mxu3 %v6632_v63  ;;  %v7454_v39 = vld [vmem:[#allocation15 + $0xa4] sm:$0xf]  ;;  %v6599_v16 = vld [vmem:[#allocation15 + $0x180] sm:$0xf] }
 0x404   : > { %v2899_v34 = vsel %vm2898_vm12, %v7784_v43, %v2895_v36  ;;  %v2917_v43 = vand.u32 2147483648, %v2875_v0  ;;  %3778 = vmatpush.bf16.msrb.mxu0 %v6524_v6  ;;  %v6616_v3 = vor.u32 %v7488_v59, %v6615_v52  ;;  %v6489_v36 = vld [vmem:[#allocation15 + $0xb0] sm:$0xf0]  ;;  %v6404_v41 = vmul.f32 -1.442695, %v8655_v37 }
 0x405   : > { %v2904_v27 = vsel %vm2901_vm13, %v2903_v10, %v2899_v34  ;;  %v3235_v9 = vpop.f32.mrf.mxu2  ;;  %v3248_v28 = vpop.f32.mrf.mxu3  ;;  %vm2916_vm1 = vcmp.eq.f32.partialorder %v2915_v45, 8.507059e+37  ;;  %v6620_v10 = vor.u32 %v7486_v13, %v6617_v8  ;;  %v6585_v6 = vld [vmem:[#allocation15 + $0x170] sm:$0xf0]  ;;  %v6567_v45 = vld [vmem:[#allocation15 + $0x140] sm:$0xf] }
 0x406   : > { %v2922_v18 = vmul.f32 %v2904_v27, %v2863_v24  ;;  %v3278_v21 = vadd.f32 %v3235_v9, %v8375_v44  ;;  %v3279_v54 = vadd.f32 %v3248_v28, %v8378_v50  ;;  %v2918_v47 = vor.u32 1.1754944e-38, %v2917_v43  ;;  %v7484_v24 = vld [vmem:[#allocation15 + $0x18c] sm:$0xf0]  ;;  %v7450_v27 = vld [vmem:[#allocation15 + $0x84] sm:$0xf] }
 0x407   : > { %3767 = vmatpush.bf16.msra.mxu3 %v6616_v3  ;;  %v6600_v9 = vor.u32 %v7484_v24, %v6599_v16  ;;  %v6473_v28 = vld [vmem:[#allocation15 + $0x90] sm:$0xf0]  ;;  %v6588_v43 = vor.u32 %v7478_v26, %v6585_v6  ;;  %v6551_v1 = vld [vmem:[#allocation15 + $0x120] sm:$0xf]  ;;  %v7470_v52 = vld [vmem:[#allocation15 + $0x124] sm:$0xf] }
 0x408   : > { %v7790_v5 = vpop.eup %7789  ;;  %v2924_v30 = vadd.f32 %v2923_v22, %v2922_v18  ;;  %v3263_v31 = vpop.f32.mrf.mxu0  ;;  %3779 = vmatpush.bf16.msrb.mxu0 %v6508_v4  ;;  %v6402_v38 = vmul.f32 -1.442695, %v3278_v21  ;;  %v6403_v34 = vmul.f32 -1.442695, %v3279_v54  ;;  %v6601_v18 = vld [vmem:[#allocation15 + $0x190] sm:$0xf0]  ;;  %v6476_v22 = vor.u32 %v7450_v27, %v6473_v28 }
 0x409   : > { %v2907_v33 = vmul.f32 %v7790_v5, %v2875_v0  ;;  %vm2912_vm14 = vweird.f32 %v7790_v5  ;;  %v7490_v0 = vld [vmem:[#allocation15 + $0x1c4] sm:$0xf]  ;;  %v7464_v31 = vld [vmem:[#allocation15 + $0xec] sm:$0xf0]  ;;  %v6553_v59 = vld [vmem:[#allocation15 + $0x130] sm:$0xf0] }
 0x40a   : > { %2927 = vst [vmem:[#allocation3 + $0x8] sm:$0xff] %v2924_v30  ;;  %7791 = vtanh.f32 %v2924_v30  ;;  %vm2913_vm0 = vmor %vm2911_vm15, %vm2912_vm14  ;;  %v6636_v23 = vor.u32 %v7490_v0, %v6633_v2  ;;  %v6519_v30 = vld [vmem:[#allocation15 + $0xe0] sm:$0xf]  ;;  %v7480_v21 = vld [vmem:[#allocation15 + $0x16c] sm:$0xf0] }
 0x40b   : > { %v2908_v55 = vsub.f32 1.0, %v2907_v33  ;;  %7793 = vpow2.f32 %v6403_v34  ;;  %3768 = vmatpush.bf16.msra.mxu3 %v6600_v9  ;;  %v6520_v33 = vor.u32 %v7464_v31, %v6519_v30  ;;  %v7446_v54 = vld [vmem:[#allocation15 + $0x64] sm:$0xf]  ;;  %v6584_v17 = vor.u32 %v7480_v21, %v6583_v32  ;;  %v7472_v0 = vld [vmem:[#allocation15 + $0x12c] sm:$0xf0] }
 0x40c   : > { %v6460_v7 = vor.u32 %v7446_v54, %v6457_v25  ;;  %7795 = vpow2.f32 %v6402_v38  ;;  %v7438_v2 = vld [vmem:[#allocation15 + $0x24] sm:$0xf]  ;;  %v6552_v4 = vor.u32 %v7472_v0, %v6551_v1  ;;  %v6471_v3 = vld [vmem:[#allocation15 + $0x80] sm:$0xf]  ;;  %v6409_v16 = vld [vmem:[#allocation15 + $0x10] sm:$0xf0]  ;;  %v7723_v21 = vunpack.i.h.bf16 %v8550_v61 }
 0x40d   : > { %v3237_v44 = vpop.f32.mrf.mxu2  ;;  %v3250_v35 = vpop.f32.mrf.mxu3  ;;  %v2909_v50 = vmul.f32 %v7790_v5, %v2908_v55  ;;  %v6503_v55 = vld [vmem:[#allocation15 + $0xc0] sm:$0xf]  ;;  %3752 = vmatpush.bf16.msra.mxu2 %v6520_v33  ;;  %7797 = vpow2.f32 %v6404_v41  ;;  %v7434_v38 = vld [vmem:[#allocation15 + $0x4] sm:$0xf]  ;;  %v6537_v27 = vld [vmem:[#allocation15 + $0x110] sm:$0xf0] }
 0x40e   : > { %v7460_v44 = vld [vmem:[#allocation15 + $0xcc] sm:$0xf0]  ;;  %v7466_v24 = vld [vmem:[#allocation15 + $0x104] sm:$0xf]  ;;  %v6412_v9 = vor.u32 %v7434_v38, %v6409_v16  ;;  %v7497_v30 = vld [vmem:[#allocation15 + $0x1f4] sm:$0xf0] }
 0x40f   : > { %v2910_v46 = vadd.f32 %v7790_v5, %v2909_v50  ;;  %v6504_v35 = vor.u32 %v7460_v44, %v6503_v55  ;;  %3769 = vmatpush.bf16.msra.mxu3 %v6584_v17  ;;  %v6540_v28 = vor.u32 %v7466_v24, %v6537_v27  ;;  %v7463_v31 = vld [vmem:[#allocation15 + $0xec] sm:$0xf]  ;;  %v6529_v32 = vld [vmem:[#allocation15 + $0xf8] sm:$0xf0]  ;;  %v6439_v55 = vld [vmem:[#allocation15 + $0x40] sm:$0xf] }
 0x410   : > { %v7792_v49 = vpop.eup %7791  ;;  %v6532_v25 = vor.u32 %v7463_v31, %v6529_v32  ;;  %v7495_v17 = vld [vmem:[#allocation15 + $0x1ec] sm:$0xf]  ;;  %v6639_v44 = vld [vmem:[#allocation15 + $0x1c8] sm:$0xf]  ;;  %v7485_v16 = vld [vmem:[#allocation15 + $0x194] sm:$0xf0] }
 0x411   : > { %v2914_v11 = vsel %vm2913_vm0, %v7790_v5, %v2910_v46  ;;  %v6604_v5 = vor.u32 %v7482_v29, %v6601_v18  ;;  %v7794_v50 = vpop.eup %7793  ;;  %3753 = vmatpush.bf16.msra.mxu2 %v6504_v35  ;;  %v7476_v46 = vld [vmem:[#allocation15 + $0x14c] sm:$0xf0]  ;;  %v6455_v29 = vld [vmem:[#allocation15 + $0x60] sm:$0xf]  ;;  %v6607_v38 = vld [vmem:[#allocation15 + $0x188] sm:$0xf] }
 0x412   : > { %v2919_v51 = vsel %vm2916_vm1, %v2918_v47, %v2914_v11  ;;  %v7442_v47 = vld [vmem:[#allocation15 + $0x44] sm:$0xf]  ;;  %v6568_v11 = vor.u32 %v7476_v46, %v6567_v45  ;;  %v8663_v62 = vadd.f32 1.0, %v7794_v50  ;;  %v7796_v63 = vpop.eup %7795  ;;  %v7448_v18 = vld [vmem:[#allocation15 + $0x6c] sm:$0xf0] }
 0x413   : > { %v2926_v40 = vmul.f32 %v7792_v49, %v2919_v51  ;;  %v6441_v49 = vld [vmem:[#allocation15 + $0x50] sm:$0xf0]  ;;  %v7474_v51 = vld [vmem:[#allocation15 + $0x144] sm:$0xf]  ;;  %v8665_v13 = vadd.f32 1.0, %v7796_v63  ;;  %v7798_v33 = vpop.eup %7797 }
 0x414   : > { %3770 = vmatpush.bf16.msra.mxu3 %v6568_v11  ;;  %7799 = vrcp.f32 %v8663_v62  ;;  %v7493_v50 = vld [vmem:[#allocation15 + $0x1d4] sm:$0xf0]  ;;  %v7459_v45 = vld [vmem:[#allocation15 + $0xcc] sm:$0xf]  ;;  %v6513_v46 = vld [vmem:[#allocation15 + $0xd8] sm:$0xf0]  ;;  %vm3315_vm3 = vweird.f32 %v8663_v62 }
 0x415   : > { %v2928_v58 = vpack.c.bf16 %v2926_v40, %v2926_v40  ;;  %v6444_v40 = vor.u32 %v7442_v47, %v6441_v49  ;;  %7801 = vrcp.f32 %v8665_v13  ;;  %v6640_v47 = vor.u32 %v7493_v50, %v6639_v44  ;;  %v7491_v49 = vld [vmem:[#allocation15 + $0x1cc] sm:$0xf]  ;;  %v6623_v63 = vld [vmem:[#allocation15 + $0x1a8] sm:$0xf]  ;;  %v6481_v27 = vld [vmem:[#allocation15 + $0x98] sm:$0xf0] }
 0x416   : > { %v6516_v11 = vor.u32 %v7459_v45, %v6513_v46  ;;  %v3306_v1 = vand.u32 2147483648, %v8665_v13  ;;  %v7451_v24 = vld [vmem:[#allocation15 + $0x8c] sm:$0xf]  ;;  %v3321_v31 = vand.u32 2147483648, %v8663_v62  ;;  %v3319_v32 = vand.u32 2147483647, %v8663_v62 }
 0x417   : > { %2929 = vst [vmem:[#allocation4 + $0x4] sm:$0xf] %v2928_v58  ;;  %3002 = vmatmul.bf16.vlgmr.msrb.gmra.mxu1 %v2928_v58  ;;  %v6487_v58 = vld [vmem:[#allocation15 + $0xa0] sm:$0xf]  ;;  %v6593_v44 = vld [vmem:[#allocation15 + $0x178] sm:$0xf0]  ;;  %vm3300_vm6 = vweird.f32 %v8665_v13 }
 0x418   : > { %3791 = vmatpush.bf16.msrb.mxu1 %v6652_v57  ;;  %v6572_v57 = vor.u32 %v7474_v51, %v6569_v53  ;;  %v6488_v42 = vor.u32 %v7456_v60, %v6487_v58  ;;  %3771 = vmatpush.bf16.msra.mxu3 %v6552_v4  ;;  %v6641_v51 = vld [vmem:[#allocation15 + $0x1d8] sm:$0xf0]  ;;  %v8672_v53 = vadd.f32 1.0, %v7798_v33  ;;  %v6423_v60 = vld [vmem:[#allocation15 + $0x20] sm:$0xf]  ;;  %vm3320_vm8 = vcmp.eq.f32.partialorder %v3319_v32, 8.507059e+37 }
 0x419   : > { %v7455_v4 = vld [vmem:[#allocation15 + $0xac] sm:$0xf]  ;;  %v6511_v46 = vld [vmem:[#allocation15 + $0xc8] sm:$0xf] }
 0x41a   : > { %3754 = vmatpush.bf16.msra.mxu2 %v6488_v42  ;;  %v8670_v26 = vpop.eup %7799  ;;  %v7440_v42 = vld [vmem:[#allocation15 + $0x2c] sm:$0xf0]  ;;  %7803 = vrcp.f32 %v8672_v53  ;;  %v6463_v32 = vld [vmem:[#allocation15 + $0x68] sm:$0xf]  ;;  %vm3330_vm11 = vweird.f32 %v8672_v53 }
 0x41b   : > { %v3311_v41 = vmul.f32 %v8670_v26, %v8663_v62  ;;  %v8676_v58 = vpop.eup %7801  ;;  %v6424_v0 = vor.u32 %v7440_v42, %v6423_v60  ;;  %v7475_v60 = vld [vmem:[#allocation15 + $0x14c] sm:$0xf]  ;;  %v6577_v42 = vld [vmem:[#allocation15 + $0x158] sm:$0xf0]  ;;  %vm3316_vm2 = vweird.f32 %v8670_v26 }
 0x41c   : > { %3792 = vmatpush.bf16.msrb.mxu1 %v6636_v23  ;;  %v6425_v23 = vld [vmem:[#allocation15 + $0x30] sm:$0xf0]  ;;  %vm3301_vm4 = vweird.f32 %v8676_v58  ;;  %vm8699_vm5 = vmor %vm3315_vm3, %vm3316_vm2 }
 0x41d   : > { %v6428_v37 = vor.u32 %v7438_v2, %v6425_v23  ;;  %v7489_v2 = vld [vmem:[#allocation15 + $0x1b4] sm:$0xf0]  ;;  %vm8712_vm7 = vmor %vm3300_vm6, %vm3301_vm4 }
 0x41e   : > { %v6624_v23 = vor.u32 %v7489_v2, %v6623_v63  ;;  %v6495_v63 = vld [vmem:[#allocation15 + $0xa8] sm:$0xf] }
 0x420   : > { %3793 = vmatpush.bf16.msrb.mxu1 %v6620_v10  ;;  %v7468_v10 = vld [vmem:[#allocation15 + $0x10c] sm:$0xf0] }
 0x424   : > { %3794 = vmatpush.bf16.msrb.mxu1 %v6604_v5  ;;  %v6456_v5 = vor.u32 %v7448_v18, %v6455_v29  ;;  %v6484_v29 = vor.u32 %v7451_v24, %v6481_v27  ;;  %v7483_v18 = vld [vmem:[#allocation15 + $0x18c] sm:$0xf]  ;;  %v7453_v24 = vld [vmem:[#allocation15 + $0x94] sm:$0xf0] }
 0x427   : > { %3273 = vmatmul.bf16.vlgmr.msra.gmra.mxu1 %v8626_v12  ;;  %v6492_v12 = vor.u32 %v7454_v39, %v6489_v36  ;;  %v6556_v39 = vor.u32 %v7470_v52, %v6553_v59  ;;  %v7452_v36 = vld [vmem:[#allocation15 + $0x8c] sm:$0xf0]  ;;  %v6497_v52 = vld [vmem:[#allocation15 + $0xb8] sm:$0xf0]  ;;  %v7487_v59 = vld [vmem:[#allocation15 + $0x1ac] sm:$0xf] }
 0x428   : > { %3795 = vmatpush.bf16.msrb.mxu1 %v6588_v43  ;;  %v6472_v8 = vor.u32 %v7452_v36, %v6471_v3  ;;  %v7444_v43 = vld [vmem:[#allocation15 + $0x4c] sm:$0xf0]  ;;  %v3312_v3 = vsub.f32 1.0, %v3311_v41  ;;  %v6500_v36 = vor.u32 %v7455_v4, %v6497_v52  ;;  %v6449_v41 = vld [vmem:[#allocation15 + $0x58] sm:$0xf0] }
 0x429   : > { %3780 = vmatpush.bf16.msrb.mxu0 %v6492_v12  ;;  %v6535_v12 = vld [vmem:[#allocation15 + $0x100] sm:$0xf]  ;;  %v6440_v35 = vor.u32 %v7444_v43, %v6439_v55  ;;  %v6465_v55 = vld [vmem:[#allocation15 + $0x78] sm:$0xf0]  ;;  %v7479_v43 = vld [vmem:[#allocation15 + $0x16c] sm:$0xf] }
 0x42a   : > { %3755 = vmatpush.bf16.msra.mxu2 %v6472_v8  ;;  %v6536_v34 = vor.u32 %v7468_v10, %v6535_v12  ;;  %v6407_v12 = vld [vmem:[#allocation15] sm:$0xf]  ;;  %v7436_v10 = vld [vmem:[#allocation15 + $0xc] sm:$0xf0]  ;;  %v6596_v45 = vor.u32 %v7479_v43, %v6593_v44  ;;  %v7457_v4 = vld [vmem:[#allocation15 + $0xb4] sm:$0xf0] }
 0x42b   : > { %v7473_v52 = vld [vmem:[#allocation15 + $0x134] sm:$0xf0]  ;;  %v7467_v43 = vld [vmem:[#allocation15 + $0x10c] sm:$0xf]  ;;  %v6545_v44 = vld [vmem:[#allocation15 + $0x118] sm:$0xf0] }
 0x42c   : > { %3796 = vmatpush.bf16.msrb.mxu1 %v6572_v57  ;;  %3772 = vmatpush.bf16.msra.mxu3 %v6536_v34  ;;  %v6644_v57 = vor.u32 %v7491_v49, %v6641_v51  ;;  %v6408_v34 = vor.u32 %v7436_v10, %v6407_v12  ;;  %v7477_v49 = vld [vmem:[#allocation15 + $0x154] sm:$0xf0]  ;;  %v7443_v51 = vld [vmem:[#allocation15 + $0x4c] sm:$0xf] }
 0x42d   : > { %3781 = vmatpush.bf16.msrb.mxu0 %v6476_v22  ;;  %v6655_v22 = vld [vmem:[#allocation15 + $0x1e8] sm:$0xf]  ;;  %v6452_v2 = vor.u32 %v7443_v51, %v6449_v41  ;;  %v7471_v12 = vld [vmem:[#allocation15 + $0x12c] sm:$0xf]  ;;  %v7445_v51 = vld [vmem:[#allocation15 + $0x54] sm:$0xf0] }
 0x42e   : > { %v6656_v54 = vor.u32 %v7497_v30, %v6655_v22  ;;  %3756 = vmatpush.bf16.msra.mxu2 %v6456_v5  ;;  %v6609_v22 = vld [vmem:[#allocation15 + $0x198] sm:$0xf0]  ;;  %v6527_v5 = vld [vmem:[#allocation15 + $0xe8] sm:$0xf] }
 0x42f   : > { %v6612_v33 = vor.u32 %v7483_v18, %v6609_v22 }
 0x430   : > { %3797 = vmatpush.bf16.msrb.mxu1 %v6556_v39  ;;  %3817 = vmatpush.bf16.msrb.mxu3 %v6656_v54  ;;  %v3296_v39 = vmul.f32 %v8676_v58, %v8665_v13 }
 0x431   : > { %3782 = vmatpush.bf16.msrb.mxu0 %v6460_v7  ;;  %v6657_v7 = vld [vmem:[#allocation15 + $0x1f8] sm:$0xf0] }
 0x432   : > { %v6660_v6 = vor.u32 %v7495_v17, %v6657_v7  ;;  %3757 = vmatpush.bf16.msra.mxu2 %v6440_v35  ;;  %v3297_v30 = vsub.f32 1.0, %v3296_v39  ;;  %v7481_v17 = vld [vmem:[#allocation15 + $0x174] sm:$0xf0]  ;;  %v7447_v7 = vld [vmem:[#allocation15 + $0x6c] sm:$0xf]  ;;  %v3313_v35 = vmul.f32 %v8670_v26, %v3312_v3  ;;  %v6580_v39 = vor.u32 %v7475_v60, %v6577_v42 }
 0x433   : > { %v6468_v50 = vor.u32 %v7447_v7, %v6465_v55  ;;  %v6496_v3 = vor.u32 %v7457_v4, %v6495_v63  ;;  %v7435_v7 = vld [vmem:[#allocation15 + $0xc] sm:$0xf]  ;;  %v6417_v55 = vld [vmem:[#allocation15 + $0x18] sm:$0xf0]  ;;  %v6431_v42 = vld [vmem:[#allocation15 + $0x28] sm:$0xf] }
 0x434   : > { %3798 = vmatpush.bf16.msrb.mxu1 %v6540_v28  ;;  %3818 = vmatpush.bf16.msrb.mxu3 %v6640_v47  ;;  %v6608_v28 = vor.u32 %v7485_v16, %v6607_v38  ;;  %v6575_v47 = vld [vmem:[#allocation15 + $0x148] sm:$0xf]  ;;  %v6420_v62 = vor.u32 %v7435_v7, %v6417_v55  ;;  %v7441_v63 = vld [vmem:[#allocation15 + $0x34] sm:$0xf0]  ;;  %v6780_v7 = vld [vmem:[#allocation13 + $0xa0] sm:$0xf] }
 0x435   : > { %3783 = vmatpush.bf16.msrb.mxu0 %v6444_v40  ;;  %v6479_v16 = vld [vmem:[#allocation15 + $0x88] sm:$0xf]  ;;  %v6432_v4 = vor.u32 %v7441_v63, %v6431_v42  ;;  %v7526_v55 = vld [vmem:[#allocation13 + $0xa4] sm:$0xf]  ;;  %v7521_v63 = vld [vmem:[#allocation13 + $0x74] sm:$0xf0] }
 0x436   : > { %3758 = vmatpush.bf16.msra.mxu2 %v6424_v0  ;;  %v6576_v0 = vor.u32 %v7477_v49, %v6575_v47  ;;  %v6447_v49 = vld [vmem:[#allocation15 + $0x48] sm:$0xf] }
 0x437   : > { %v6756_v42 = vld [vmem:[#allocation13 + $0x68] sm:$0xf] }
 0x438   : > { %3843 = vmatpush.bf16.msra.mxu1 %v6660_v6  ;;  %3819 = vmatpush.bf16.msrb.mxu3 %v6624_v23  ;;  %v6559_v23 = vld [vmem:[#allocation15 + $0x128] sm:$0xf] }
 0x439   : > { %3784 = vmatpush.bf16.msrb.mxu0 %v6428_v37  ;;  %v6625_v37 = vld [vmem:[#allocation15 + $0x1b8] sm:$0xf0] }
 0x43a   : > { %v6628_v8 = vor.u32 %v7487_v59, %v6625_v37  ;;  %3759 = vmatpush.bf16.msra.mxu2 %v6408_v34  ;;  %v3314_v37 = vadd.f32 %v8670_v26, %v3313_v35  ;;  %v6561_v34 = vld [vmem:[#allocation15 + $0x138] sm:$0xf0]  ;;  %v7449_v35 = vld [vmem:[#allocation15 + $0x74] sm:$0xf0] }
 0x43b   : > { %v6564_v22 = vor.u32 %v7471_v12, %v6561_v34  ;;  %v7534_v34 = vld [vmem:[#allocation13 + $0xe4] sm:$0xf] }
 0x43c   : > { %3844 = vmatpush.bf16.msra.mxu1 %v6644_v57  ;;  %3820 = vmatpush.bf16.msrb.mxu3 %v6608_v28  ;;  %v3298_v57 = vmul.f32 %v8676_v58, %v3297_v30  ;;  %v3318_v18 = vsel %vm8699_vm5, %v8670_v26, %v3314_v37 }
 0x43d   : > { %3785 = vmatpush.bf16.msrb.mxu0 %v6412_v9 }
 0x43e   : > { %v3299_v27 = vadd.f32 %v8676_v58, %v3298_v57  ;;  %v6448_v57 = vor.u32 %v7445_v51, %v6447_v49  ;;  %v6748_v49 = vld [vmem:[#allocation13 + $0x60] sm:$0xf] }
 0x440   : > { %3845 = vmatpush.bf16.msra.mxu1 %v6628_v8  ;;  %v6433_v8 = vld [vmem:[#allocation15 + $0x38] sm:$0xf0]  ;;  %v3303_v26 = vsel %vm8712_vm7, %v8676_v58, %v3299_v27  ;;  %v6820_v27 = vld [vmem:[#allocation13 + $0xe8] sm:$0xf] }
 0x441   : > { %3830 = vmatpush.bf16.msra.mxu0 %v6532_v25  ;;  %v6591_v25 = vld [vmem:[#allocation15 + $0x168] sm:$0xf] }
 0x442   : > { %v6592_v6 = vor.u32 %v7481_v17, %v6591_v25  ;;  %v6543_v25 = vld [vmem:[#allocation15 + $0x108] sm:$0xf]  ;;  %v7469_v17 = vld [vmem:[#allocation15 + $0x114] sm:$0xf0] }
 0x444   : > { %3846 = vmatpush.bf16.msra.mxu1 %v6612_v33  ;;  %3821 = vmatpush.bf16.msrb.mxu3 %v6592_v6  ;;  %v3322_v33 = vor.u32 1.1754944e-38, %v3321_v31  ;;  %v6544_v6 = vor.u32 %v7469_v17, %v6543_v25 }
 0x445   : > { %3831 = vmatpush.bf16.msra.mxu0 %v6516_v11 }
 0x446   : > { %v3323_v31 = vsel %vm3320_vm8, %v3322_v33, %v3318_v18  ;;  %v7530_v33 = vld [vmem:[#allocation13 + $0xc4] sm:$0xf] }
 0x448   : > { %3847 = vmatpush.bf16.msra.mxu1 %v6596_v45  ;;  %3822 = vmatpush.bf16.msrb.mxu3 %v6576_v0  ;;  %v3282_v45 = vld [vmem:[#allocation3] sm:$0xff]  ;;  %v3336_v0 = vand.u32 2147483648, %v8672_v53 }
 0x449   : > { %3832 = vmatpush.bf16.msra.mxu0 %v6500_v36  ;;  %v7439_v36 = vld [vmem:[#allocation15 + $0x2c] sm:$0xf]  ;;  %v3341_v47 = vmul.f32 %v3323_v31, %v3282_v45  ;;  %v6766_v45 = vld [vmem:[#allocation13 + $0x90] sm:$0xf0] }
 0x44a   : > { %v6436_v28 = vor.u32 %v7439_v36, %v6433_v8  ;;  %v3337_v37 = vor.u32 1.1754944e-38, %v3336_v0 }
 0x44c   : > { %3848 = vmatpush.bf16.msra.mxu1 %v6580_v39 }
 0x44d   : > { %3833 = vmatpush.bf16.msra.mxu0 %v6484_v29  ;;  %v3304_v29 = vand.u32 2147483647, %v8665_v13 }
 0x44f   : > { %vm3305_vm9 = vcmp.eq.f32.partialorder %v3304_v29, 8.507059e+37 }
 0x450   : > { %3849 = vmatpush.bf16.msra.mxu1 %v6564_v22  ;;  %v6796_v22 = vld [vmem:[#allocation13 + $0xc0] sm:$0xf] }
 0x451   : > { %3834 = vmatpush.bf16.msra.mxu0 %v6468_v50 }
 0x455   : > { %3835 = vmatpush.bf16.msra.mxu0 %v6452_v2  ;;  %v3334_v2 = vand.u32 2147483647, %v8672_v53 }
 0x457   : > { %vm3335_vm13 = vcmp.eq.f32.partialorder %v3334_v2, 8.507059e+37 }
 0x459   : > { %3836 = vmatpush.bf16.msra.mxu0 %v6436_v28 }
 0x45d   : > { %3837 = vmatpush.bf16.msra.mxu0 %v6420_v62 }
 0x494   : > { %v3003_v61 = vpop.f32.mrf.mxu1 }
 0x495   : > { %v3016_v40 = vmul.f32 %v7723_v21, %v3003_v61  ;;  %v7465_v21 = vld [vmem:[#allocation15 + $0xf4] sm:$0xf0] }
 0x496   : > { %v6528_v54 = vor.u32 %v7465_v21, %v6527_v5  ;;  %v7461_v61 = vld [vmem:[#allocation15 + $0xd4] sm:$0xf0]  ;;  %v6480_v5 = vor.u32 %v7453_v24, %v6479_v16  ;;  %v6814_v16 = vld [vmem:[#allocation13 + $0xf0] sm:$0xf0] }
 0x497   : > { %6273 = vst [vmem:[%s8342_s30 + $0x8] sm:$0xff] %v3016_v40  ;;  %v6512_v11 = vor.u32 %v7461_v61, %v6511_v46  ;;  %v8686_v40 = vpop.eup %7803  ;;  %v6464_v61 = vor.u32 %v7449_v35, %v6463_v32  ;;  %v6817_v18 = vor.u32 %v7534_v34, %v6814_v16  ;;  %v6798_v21 = vld [vmem:[#allocation13 + $0xd0] sm:$0xf0]  ;;  %v6764_v32 = vld [vmem:[#allocation13 + $0x80] sm:$0xf] }
 0x498   : > { %3804 = vmatpush.bf16.msrb.mxu2 %v6528_v54  ;;  %v3326_v10 = vmul.f32 %v8686_v40, %v8672_v53  ;;  %v3307_v54 = vor.u32 1.1754944e-38, %v3306_v1  ;;  %v6548_v1 = vor.u32 %v7467_v43, %v6545_v44  ;;  %vm3331_vm10 = vweird.f32 %v8686_v40  ;;  %v7536_v53 = vld [vmem:[#allocation13 + $0xec] sm:$0xf0]  ;;  %v6782_v43 = vld [vmem:[#allocation13 + $0xb0] sm:$0xf0] }
 0x499   : > { %vm3332_vm12 = vmor %vm3330_vm11, %vm3331_vm10  ;;  %v6801_v17 = vor.u32 %v7530_v33, %v6798_v21  ;;  %v6788_v44 = vld [vmem:[#allocation13 + $0xa8] sm:$0xf]  ;;  %v6718_v34 = vld [vmem:[#allocation13 + $0x30] sm:$0xf0] }
 0x49a   : > { %v3327_v30 = vsub.f32 1.0, %v3326_v10  ;;  %v3308_v46 = vsel %vm3305_vm9, %v3307_v54, %v3303_v26  ;;  %3850 = vmatpush.bf16.msra.mxu1 %v6548_v1  ;;  %v6812_v10 = vld [vmem:[#allocation13 + $0xe0] sm:$0xf]  ;;  %v6804_v54 = vld [vmem:[#allocation13 + $0xc8] sm:$0xf]  ;;  %v6785_v1 = vor.u32 %v7526_v55, %v6782_v43  ;;  %v7501_v55 = vld [vmem:[#allocation16 + $0x18] sm:$0xff] }
 0x49b   : > { %v6813_v29 = vor.u32 %v7536_v53, %v6812_v10  ;;  %v7533_v26 = vld [vmem:[#allocation13 + $0xd4] sm:$0xf0]  ;;  %v7512_v53 = vld [vmem:[#allocation13 + $0x2c] sm:$0xf0]  ;;  %v6724_v16 = vld [vmem:[#allocation13 + $0x28] sm:$0xf] }
 0x49c   : > { %v3005_v9 = vpop.f32.mrf.mxu1  ;;  %3805 = vmatpush.bf16.msrb.mxu2 %v6512_v11  ;;  %v3328_v58 = vmul.f32 %v8686_v40, %v3327_v30  ;;  %v7532_v30 = vld [vmem:[#allocation13 + $0xcc] sm:$0xf0]  ;;  %v6805_v31 = vor.u32 %v7533_v26, %v6804_v54  ;;  %v7505_v26 = vld [vmem:[#allocation16 + $0x38] sm:$0xff] }
 0x49d   : > { %v7537_v9 = vld [vmem:[#allocation13 + $0xf4] sm:$0xf0]  ;;  %v6797_v25 = vor.u32 %v7532_v30, %v6796_v22  ;;  %v6708_v22 = vld [vmem:[#allocation13 + $0x8] sm:$0xf] }
 0x49e   : > { %v3329_v60 = vadd.f32 %v8686_v40, %v3328_v58  ;;  %v7522_v58 = vld [vmem:[#allocation13 + $0x84] sm:$0xf] }
 0x4a0   : > { %3806 = vmatpush.bf16.msrb.mxu2 %v6496_v3 }
 0x4a4   : > { %v3274_v59 = vpop.f32.mrf.mxu1  ;;  %3807 = vmatpush.bf16.msrb.mxu2 %v6480_v5  ;;  %v6821_v5 = vor.u32 %v7537_v9, %v6820_v27  ;;  %v6700_v9 = vld [vmem:[#allocation13] sm:$0xf] }
 0x4a5   : > { %v3281_v38 = vadd.f32 %v3274_v59, %v8390_v19  ;;  %v6560_v19 = vor.u32 %v7473_v52, %v6559_v23  ;;  %v3333_v23 = vsel %vm3332_vm12, %v8686_v40, %v3329_v60  ;;  %v6415_v52 = vld [vmem:[#allocation15 + $0x8] sm:$0xf]  ;;  %v7437_v59 = vld [vmem:[#allocation15 + $0x14] sm:$0xf0]  ;;  %v6750_v60 = vld [vmem:[#allocation13 + $0x70] sm:$0xf0] }
 0x4a6   : > { %v3338_v3 = vsel %vm3335_vm13, %v3337_v37, %v3333_v23  ;;  %v6416_v36 = vor.u32 %v7437_v59, %v6415_v52  ;;  %v6757_v23 = vor.u32 %v7521_v63, %v6756_v42  ;;  %v7516_v52 = vld [vmem:[#allocation13 + $0x4c] sm:$0xf0]  ;;  %v7514_v59 = vld [vmem:[#allocation13 + $0x44] sm:$0xf]  ;;  %v6734_v37 = vld [vmem:[#allocation13 + $0x50] sm:$0xf0] }
 0x4a7   : > { %7805 = vtanh.f32 %v3281_v38  ;;  %3823 = vmatpush.bf16.msrb.mxu3 %v6560_v19 }
 0x4a8   : > { %3808 = vmatpush.bf16.msrb.mxu2 %v6464_v61  ;;  %v7525_v61 = vld [vmem:[#allocation13 + $0x94] sm:$0xf0] }
 0x4ab   : > { %3824 = vmatpush.bf16.msrb.mxu3 %v6544_v6  ;;  %v7528_v6 = vld [vmem:[#allocation13 + $0xac] sm:$0xf0] }
 0x4ac   : > { %v3276_v13 = vpop.f32.mrf.mxu1  ;;  %3809 = vmatpush.bf16.msrb.mxu2 %v6448_v57  ;;  %v6781_v62 = vor.u32 %v7528_v6, %v6780_v7  ;;  %v7518_v57 = vld [vmem:[#allocation13 + $0x64] sm:$0xf] }
 0x4ad   : > { %v7806_v50 = vpop.eup %7805  ;;  %v7529_v13 = vld [vmem:[#allocation13 + $0xb4] sm:$0xf0]  ;;  %v6753_v2 = vor.u32 %v7518_v57, %v6750_v60  ;;  %v8750_v7 = vld [vmem:[%s8972_s8] sm:$0xf]  ;;  %v6822_v57 = vld [vmem:[#allocation13 + $0xf8] sm:$0xf0] }
 0x4ae   : > { %v3342_v11 = vmul.f32 %v7806_v50, %v3308_v46  ;;  %v6789_v35 = vor.u32 %v7529_v13, %v6788_v44  ;;  %v7524_v50 = vld [vmem:[#allocation13 + $0x8c] sm:$0xf0]  ;;  %v6772_v46 = vld [vmem:[#allocation13 + $0x88] sm:$0xf]  ;;  %v3418_v6 = vperm.slane %v8750_v7, 1 }
 0x4af   : > { %v6773_v51 = vor.u32 %v7525_v61, %v6772_v46  ;;  %v7499_v46 = vld [vmem:[#allocation16 + $0x8] sm:$0xff] }
 0x4b0   : > { %v3343_v41 = vadd.f32 %v3342_v11, %v3341_v47  ;;  %3810 = vmatpush.bf16.msrb.mxu2 %v6432_v4  ;;  %v6765_v47 = vor.u32 %v7524_v50, %v6764_v32  ;;  %v6769_v11 = vor.u32 %v7522_v58, %v6766_v45  ;;  %v6732_v4 = vld [vmem:[#allocation13 + $0x40] sm:$0xf]  ;;  %v7500_v32 = vld [vmem:[#allocation16 + $0x10] sm:$0xff] }
 0x4b2   : > { %7807 = vtanh.f32 %v3343_v41  ;;  %3346 = vst [vmem:[#allocation3] sm:$0xff] %v3343_v41  ;;  %v7520_v41 = vld [vmem:[#allocation13 + $0x6c] sm:$0xf0] }
 0x4b3   : > { %v6749_v0 = vor.u32 %v7520_v41, %v6748_v49  ;;  %v7535_v41 = vld [vmem:[#allocation13 + $0xec] sm:$0xf] }
 0x4b4   : > { %3811 = vmatpush.bf16.msrb.mxu2 %v6416_v36  ;;  %v6733_v36 = vor.u32 %v7516_v52, %v6732_v4  ;;  %v6825_v60 = vor.u32 %v7535_v41, %v6822_v57  ;;  %v7531_v4 = vld [vmem:[#allocation13 + $0xcc] sm:$0xf] }
 0x4b8   : > { %v7808_v39 = vpop.eup %7807 }
 0x4b9   : > { %v3345_v8 = vmul.f32 %v7808_v39, %v3338_v3  ;;  %v6740_v39 = vld [vmem:[#allocation13 + $0x48] sm:$0xf]  ;;  %v7517_v3 = vld [vmem:[#allocation13 + $0x54] sm:$0xf0] }
 0x4ba   : > { %v6741_v10 = vor.u32 %v7517_v3, %v6740_v39  ;;  %v3419_v3 = vperm.slane %v8750_v7, 2 }
 0x4bb   : > { %v3347_v12 = vpack.c.bf16 %v3345_v8, %v3345_v8  ;;  %v6737_v8 = vor.u32 %v7514_v59, %v6734_v37 }
 0x4bd   : > { %3348 = vst [vmem:[#allocation2] sm:$0xf] %v3347_v12 }
 0x4be   : > { %3349 = vst [vmem:[#allocation4] sm:$0xf] %v3347_v12  ;;  %v6716_v12 = vld [vmem:[#allocation13 + $0x20] sm:$0xf] }
 0x4c4   : > { %v8742_v54 = vld [vmem:[#allocation2] sm:$0xf] }
 0x4c5   : > { %v3350_v38 = vld [vmem:[#allocation4] sm:$0xff] }
 0x4c6   : > { %v3426_v24 = vunpack.c.l.b16 %v3350_v38  ;;  %v3427_v40 = vunpack.c.h.b16 %v3350_v38  ;;  %v7510_v38 = vld [vmem:[#allocation13 + $0x24] sm:$0xf] }
 0x4c7   : > { %v6721_v27 = vor.u32 %v7510_v38, %v6718_v34 }
 0x4c8   : > { %v8730_v19 = vpack.c.b16 %v3426_v24, %v3426_v24  ;;  %v8732_v28 = vpack.c.b16 %v3427_v40, %v3427_v40  ;;  %v7513_v24 = vld [vmem:[#allocation13 + $0x34] sm:$0xf0]  ;;  %v6717_v40 = vor.u32 %v7512_v53, %v6716_v12  ;;  %v6790_v12 = vld [vmem:[#allocation13 + $0xb8] sm:$0xf0]  ;;  %v3420_v53 = vperm.slane %v8750_v7, 3 }
 0x4ca   : > { %3760 = vmatmul.bf16.vlgmr.msra.gmra.mxu2 %v8730_v19  ;;  %3773 = vmatmul.bf16.vlgmr.msra.gmra.mxu3 %v8732_v28 }
 0x4cb   : > { %3786 = vmatmul.bf16.vlgmr.msrb.gmra.mxu0 %v8730_v19  ;;  %3799 = vmatmul.bf16.vlgmr.msrb.gmra.mxu1 %v8732_v28 }
 0x4cc   : > { %4219 = vmatpush.bf16.msra.mxu3 %v6813_v29  ;;  %4232 = vmatpush.bf16.msrb.mxu0 %v6817_v18  ;;  %v7506_v29 = vld [vmem:[#allocation13 + $0x4] sm:$0xf]  ;;  %v6702_v18 = vld [vmem:[#allocation13 + $0x10] sm:$0xf0] }
 0x4cd   : > { %4245 = vmatpush.bf16.msrb.mxu1 %v6821_v5  ;;  %v7509_v5 = vld [vmem:[#allocation13 + $0x14] sm:$0xf0]  ;;  %v6705_v33 = vor.u32 %v7506_v29, %v6702_v18  ;;  %3987 = vmatpush.bf16.msra.mxu2 %v7505_v26  ;;  %v6758_v26 = vld [vmem:[#allocation13 + $0x78] sm:$0xf0] }
 0x4ce   : > { %v6709_v21 = vor.u32 %v7509_v5, %v6708_v22 }
 0x4d0   : > { %4220 = vmatpush.bf16.msra.mxu3 %v6797_v25  ;;  %4233 = vmatpush.bf16.msrb.mxu0 %v6801_v17  ;;  %v7504_v25 = vld [vmem:[#allocation16 + $0x30] sm:$0xff]  ;;  %v7503_v17 = vld [vmem:[#allocation16 + $0x28] sm:$0xff] }
 0x4d1   : > { %4246 = vmatpush.bf16.msrb.mxu1 %v6805_v31  ;;  %3988 = vmatpush.bf16.msra.mxu2 %v7504_v25  ;;  %v7502_v31 = vld [vmem:[#allocation16 + $0x20] sm:$0xff] }
 0x4d4   : > { %4221 = vmatpush.bf16.msra.mxu3 %v6781_v62  ;;  %4234 = vmatpush.bf16.msrb.mxu0 %v6785_v1  ;;  %v3417_v62 = vperm.slane %v8750_v7, 0 }
 0x4d5   : > { %4247 = vmatpush.bf16.msrb.mxu1 %v6789_v35  ;;  %3989 = vmatpush.bf16.msra.mxu2 %v7503_v17 }
 0x4d8   : > { %4222 = vmatpush.bf16.msra.mxu3 %v6765_v47  ;;  %4235 = vmatpush.bf16.msrb.mxu0 %v6769_v11 }
 0x4d9   : > { %4248 = vmatpush.bf16.msrb.mxu1 %v6773_v51  ;;  %3990 = vmatpush.bf16.msra.mxu2 %v7502_v31  ;;  %v7498_v51 = vld [vmem:[#allocation16] sm:$0xff]  ;;  %v7860_v31 = vld [vmem:[#allocation5 + $0x10] sm:$0xff] }
 0x4da   : > { %3812 = vmatmul.bf16.vlgmr.msrb.gmra.mxu2 %v8730_v19  ;;  %3825 = vmatmul.bf16.vlgmr.msrb.gmra.mxu3 %v8732_v28 }
 0x4db   : > { %3838 = vmatmul.bf16.vlgmr.msra.gmra.mxu0 %v8730_v19  ;;  %3851 = vmatmul.bf16.vlgmr.msra.gmra.mxu1 %v8732_v28  ;;  %v6725_v19 = vor.u32 %v7513_v24, %v6724_v16  ;;  %v7508_v28 = vld [vmem:[#allocation13 + $0xc] sm:$0xf0] }
 0x4dc   : > { %4223 = vmatpush.bf16.msra.mxu3 %v6749_v0  ;;  %4236 = vmatpush.bf16.msrb.mxu0 %v6753_v2  ;;  %v6701_v30 = vor.u32 %v7508_v28, %v6700_v9  ;;  %v6774_v9 = vld [vmem:[#allocation13 + $0x98] sm:$0xf0] }
 0x4dd   : > { %4249 = vmatpush.bf16.msrb.mxu1 %v6757_v23  ;;  %3991 = vmatpush.bf16.msra.mxu2 %v7501_v55  ;;  %v6806_v23 = vld [vmem:[#allocation13 + $0xd8] sm:$0xf0] }
 0x4de   : > { %v6809_v37 = vor.u32 %v7531_v4, %v6806_v23 }
 0x4e0   : > { %4224 = vmatpush.bf16.msra.mxu3 %v6733_v36  ;;  %4237 = vmatpush.bf16.msrb.mxu0 %v6737_v8  ;;  %v7527_v8 = vld [vmem:[#allocation13 + $0xac] sm:$0xf] }
 0x4e1   : > { %4250 = vmatpush.bf16.msrb.mxu1 %v6741_v10  ;;  %3992 = vmatpush.bf16.msra.mxu2 %v7500_v32  ;;  %v6793_v10 = vor.u32 %v7527_v8, %v6790_v12  ;;  %v7507_v8 = vld [vmem:[#allocation13 + $0xc] sm:$0xf]  ;;  %v6710_v12 = vld [vmem:[#allocation13 + $0x18] sm:$0xf0] }
 0x4e4   : > { %4225 = vmatpush.bf16.msra.mxu3 %v6717_v40  ;;  %4238 = vmatpush.bf16.msrb.mxu0 %v6721_v27  ;;  %v7523_v27 = vld [vmem:[#allocation13 + $0x8c] sm:$0xf] }
 0x4e5   : > { %4251 = vmatpush.bf16.msrb.mxu1 %v6725_v19  ;;  %3993 = vmatpush.bf16.msra.mxu2 %v7499_v46  ;;  %v6777_v18 = vor.u32 %v7523_v27, %v6774_v9 }
 0x4e8   : > { %4226 = vmatpush.bf16.msra.mxu3 %v6701_v30  ;;  %4239 = vmatpush.bf16.msrb.mxu0 %v6705_v33 }
 0x4e9   : > { %4252 = vmatpush.bf16.msrb.mxu1 %v6709_v21  ;;  %3994 = vmatpush.bf16.msra.mxu2 %v7498_v51  ;;  %v7519_v21 = vld [vmem:[#allocation13 + $0x6c] sm:$0xf] }
 0x4ea   : > { %v6761_v7 = vor.u32 %v7519_v21, %v6758_v26 }
 0x4eb   : > { %4227 = vmatmul.bf16.vlgmr.msra.gmra.mxu3 %v8742_v54  ;;  %4240 = vmatmul.bf16.vlgmr.msrb.gmra.mxu0 %v8742_v54 }
 0x4ec   : > { %4253 = vmatmul.bf16.vlgmr.msrb.gmra.mxu1 %v8742_v54 }
 0x4ed   : > { %4258 = vmatpush.bf16.msrb.mxu2 %v6825_v60  ;;  %v7862_v60 = vld [vmem:[%s8964_s0] sm:$0xff] }
 0x4f1   : > { %4259 = vmatpush.bf16.msrb.mxu2 %v6809_v37 }
 0x4f5   : > { %4260 = vmatpush.bf16.msrb.mxu2 %v6793_v10 }
 0x4f9   : > { %4261 = vmatpush.bf16.msrb.mxu2 %v6777_v18 }
 0x4fd   : > { %4262 = vmatpush.bf16.msrb.mxu2 %v6761_v7 }
 0x548   : > { %v3787_v43 = vpop.f32.mrf.mxu0  ;;  %v3800_v44 = vpop.f32.mrf.mxu1 }
 0x549   : > { %v3788_v13 = vadd.f32 %v3787_v43, %v3418_v6  ;;  %v4023_v6 = vadd.f32 %v7860_v31, %v8392_v20 }
 0x54b   : > { %v3801_v1 = vadd.f32 %v3800_v44, %v3788_v13  ;;  %v7861_v13 = vld [vmem:[#allocation5] sm:$0xff] }
 0x54d   : > { %v6662_v35 = vmul.f32 -1.442695, %v3801_v1  ;;  %v3761_v50 = vpop.f32.mrf.mxu2  ;;  %v3774_v58 = vpop.f32.mrf.mxu3 }
 0x54e   : > { %v3762_v45 = vadd.f32 %v3761_v50, %v3417_v62  ;;  %v4024_v62 = vadd.f32 %v7861_v13, %v8396_v48  ;;  %v7515_v50 = vld [vmem:[#allocation13 + $0x4c] sm:$0xf] }
 0x54f   : > { %7809 = vpow2.f32 %v6662_v35 }
 0x550   : > { %v3775_v61 = vadd.f32 %v3774_v58, %v3762_v45  ;;  %v3789_v47 = vpop.f32.mrf.mxu0  ;;  %v3802_v11 = vpop.f32.mrf.mxu1  ;;  %v6742_v58 = vld [vmem:[#allocation13 + $0x58] sm:$0xf0] }
 0x551   : > { %v7511_v47 = vld [vmem:[#allocation13 + $0x2c] sm:$0xf]  ;;  %v6726_v11 = vld [vmem:[#allocation13 + $0x38] sm:$0xf0] }
 0x552   : > { %v6661_v49 = vmul.f32 -1.442695, %v3775_v61  ;;  %v6745_v61 = vor.u32 %v7515_v50, %v6742_v58  ;;  %v6729_v37 = vor.u32 %v7511_v47, %v6726_v11  ;;  %v7568_v50 = vld [vmem:[#allocation15 + $0xec] sm:$0xf0]  ;;  %v7071_v58 = vld [vmem:[#allocation15 + $0x1e0] sm:$0xf] }
 0x554   : > { %7811 = vpow2.f32 %v6661_v49  ;;  %v4000_v49 = vstv %s3019_s27  ;;  %4263 = vmatpush.bf16.msrb.mxu2 %v6745_v61  ;;  %v6945_v61 = vld [vmem:[#allocation15 + $0xf0] sm:$0xf0]  ;;  %s8059_s27 = sshra.s32 %s5021_s21, 4  ;;  %s8060_s27 = int_to_ptr.hbm [resolvable:$true] %s8059_s27 }
 0x555   : > { %v7810_v42 = vpop.eup %7809  ;;  %v3763_v63 = vpop.f32.mrf.mxu2  ;;  %vm4001_vm1 = vcmp.gt.s32.totalorder %v7862_v60, %v4000_v49  ;;  %v7598_v49 = vld [vmem:[#allocation15 + $0x1e4] sm:$0xf]  ;;  %p8066_p9 = scmp.lt.s32.totalorder %s8060_s27, %s8974_s10 }
 0x556   : > { %v3776_v0 = vpop.f32.mrf.mxu3  ;;  %v8754_v2 = vadd.f32 1.0, %v7810_v42  ;;  %v6696_v10 = vsel %vm4001_vm1, 1.0, %v8136_v15 }
 0x558   : > { %7813 = vrcp.f32 %v8754_v2  ;;  %v3839_v52 = vpop.f32.mrf.mxu0  ;;  %v3852_v59 = vpop.f32.mrf.mxu1  ;;  %vm3889_vm14 = vweird.f32 %v8754_v2  ;;  %v3895_v35 = vand.u32 2147483648, %v8754_v2  ;;  %v3893_v51 = vand.u32 2147483647, %v8754_v2  ;;  %4264 = vmatpush.bf16.msrb.mxu2 %v6729_v37 }
 0x559   : > { %v3840_v5 = vadd.f32 %v3839_v52, %v3420_v53  ;;  %v7863_v53 = vld [vmem:[#allocation5 + $0x8] sm:$0xff]  ;;  %v7562_v52 = vld [vmem:[#allocation15 + $0xc4] sm:$0xf] }
 0x55a   : > { %v7812_v39 = vpop.eup %7811  ;;  %vm3894_vm7 = vcmp.eq.f32.partialorder %v3893_v51, 8.507059e+37  ;;  %v7073_v51 = vld [vmem:[#allocation15 + $0x1f0] sm:$0xf0] }
 0x55b   : > { %v8758_v36 = vadd.f32 1.0, %v7812_v39  ;;  %v3853_v55 = vadd.f32 %v3852_v59, %v3840_v5  ;;  %v4993_v39 = vstv %s4012_s24  ;;  %v3856_v5 = vld [vmem:[#allocation3 + $0x8] sm:$0xff]  ;;  %s8061_s24 = scalar_lea.hbm %s8060_s27, 32 }
 0x55c   : > { %vm4994_vm6 = vcmp.gt.s32.totalorder %v7862_v60, %v4993_v39  ;;  %v7076_v60 = vor.u32 %v7598_v49, %v7073_v51  ;;  %v7057_v39 = vld [vmem:[#allocation15 + $0x1d0] sm:$0xf0]  ;;  %v6991_v49 = vld [vmem:[#allocation15 + $0x140] sm:$0xf]  ;;  %p8062_p1 = scmp.ne.s32.totalorder %s8060_s27, %s8061_s24  ;;  %p8067_p8 = scmp.lt.s32.totalorder %s8065_s26, %s8061_s24 }
 0x55d   : > { %7815 = vrcp.f32 %v8758_v36  ;;  %v3813_v38 = vpop.f32.mrf.mxu2  ;;  %v3878_v32 = vand.u32 2147483647, %v8758_v36  ;;  %v3880_v20 = vand.u32 2147483648, %v8758_v36  ;;  %vm3874_vm3 = vweird.f32 %v8758_v36 }
 0x55e   : > { %v3826_v34 = vpop.f32.mrf.mxu3  ;;  %v8762_v16 = vpop.eup %7813  ;;  %v3814_v24 = vadd.f32 %v3813_v38, %v3419_v3  ;;  %v4022_v38 = vadd.f32 %v7863_v53, %v8387_v14  ;;  %v7120_v27 = vsel %vm4994_vm6, 1.0, %v8136_v15  ;;  %v7560_v53 = vld [vmem:[#allocation15 + $0xac] sm:$0xf0]  ;;  %p8063_p4 = pnand %p8062_p1, %p8285_p0  ;;  %p8068_p10 = por %p8067_p8, %p8066_p9 }
 0x55f   : > { %v3885_v40 = vmul.f32 %v8762_v16, %v8754_v2  ;;  %vm3890_vm15 = vweird.f32 %v8762_v16  ;;  %vm8799_vm4 = vcmp.eq.f32.partialorder %v3878_v32, 8.507059e+37  ;;  %v3881_v2 = vor.u32 1.1754944e-38, %v3880_v20  ;;  %v6943_v20 = vld [vmem:[#allocation15 + $0xe0] sm:$0xf] }
 0x560   : > { %v3827_v19 = vadd.f32 %v3826_v34, %v3814_v24  ;;  %v3841_v28 = vpop.f32.mrf.mxu0  ;;  %v3854_v29 = vpop.f32.mrf.mxu1  ;;  %vm8793_vm2 = vmor %vm3889_vm14, %vm3890_vm15  ;;  %v3896_v34 = vor.u32 1.1754944e-38, %v3895_v35  ;;  %p8064_p13 = pneg %p8063_p4 }
 0x561   : > { %v3886_v22 = vsub.f32 1.0, %v3885_v40  ;;  %v6713_v28 = vor.u32 %v7507_v8, %v6710_v12  ;;  %v7724_v29 = vpack.i.bf16 %v7120_v27, %v6696_v10  ;;  %v6911_v10 = vld [vmem:[#allocation15 + $0xa0] sm:$0xf]  ;;  %v6913_v27 = vld [vmem:[#allocation15 + $0xb0] sm:$0xf0] }
 0x562   : > { %v6663_v30 = vmul.f32 -1.442695, %v3827_v19  ;;  %p8069_p11 = pnand %p8068_p10, %p8064_p13 }
 0x563   : > { %v8766_v33 = vpop.eup %7815  ;;  %v3887_v25 = vmul.f32 %v8762_v16, %v3886_v22  ;;  %7725 = vperm.xlu0 %7718, %v7724_v29   ;;  %4265 = vmatpush.bf16.msrb.mxu2 %v6713_v28  ;;  %v7590_v28 = vld [vmem:[#allocation15 + $0x1a4] sm:$0xf]  ;;  %v7041_v29 = vld [vmem:[#allocation15 + $0x1b0] sm:$0xf0] }
 0x564   : > { %v3870_v17 = vmul.f32 %v8766_v33, %v8758_v36  ;;  %7817 = vpow2.f32 %v6663_v30  ;;  %vm3875_vm0 = vweird.f32 %v8766_v33 }
 0x565   : > { %v3815_v43 = vpop.f32.mrf.mxu2  ;;  %v3888_v48 = vadd.f32 %v8762_v16, %v3887_v25  ;;  %7819 = vtanh.f32 %v3853_v55  ;;  %vm8807_vm5 = vmor %vm3874_vm3, %vm3875_vm0 }
 0x566   : > { %v3828_v44 = vpop.f32.mrf.mxu3  ;;  %v3871_v1 = vsub.f32 1.0, %v3870_v17 }
 0x567   : > { %v3892_v36 = vsel %vm8793_vm2, %v8762_v16, %v3888_v48  ;;  %v7600_v48 = vld [vmem:[#allocation15 + $0x1ec] sm:$0xf0] }
 0x568   : > { %v3872_v45 = vmul.f32 %v8766_v33, %v3871_v1  ;;  %v4241_v46 = vpop.f32.mrf.mxu0  ;;  %v3897_v16 = vsel %vm3894_vm7, %v3896_v34, %v3892_v36  ;;  %v7072_v47 = vor.u32 %v7600_v48, %v7071_v58  ;;  %v6912_v34 = vor.u32 %v7560_v53, %v6911_v10  ;;  %v7582_v58 = vld [vmem:[#allocation15 + $0x164] sm:$0xf]  ;;  %v6975_v10 = vld [vmem:[#allocation15 + $0x120] sm:$0xf] }
 0x569   : > { %v8784_v41 = vadd.f32 %v4241_v46, %v4023_v6  ;;  %v4254_v57 = vpop.f32.mrf.mxu1  ;;  %v3915_v14 = vmul.f32 %v3897_v16, %v3856_v5  ;;  %v7566_v46 = vld [vmem:[#allocation15 + $0xe4] sm:$0xf]  ;;  %v7023_v5 = vld [vmem:[#allocation15 + $0x180] sm:$0xf] }
 0x56a   : > { %v7818_v42 = vpop.eup %7817  ;;  %v3873_v0 = vadd.f32 %v8766_v33, %v3872_v45  ;;  %v8803_v23 = vadd.f32 %v4254_v57, %v4024_v62  ;;  %v6944_v45 = vor.u32 %v7568_v50, %v6943_v20  ;;  %v6948_v11 = vor.u32 %v7566_v46, %v6945_v61  ;;  %v6927_v57 = vld [vmem:[#allocation15 + $0xc0] sm:$0xf]  ;;  %4758 = vmatpush.bf16.msra.mxu0 %v7072_v47 }
 0x56b   : > { %v3868_v59 = vadd.f32 1.0, %v7818_v42  ;;  %v7820_v9 = vpop.eup %7819  ;;  %v6827_v32 = vmul.f32 -1.442695, %v8784_v41  ;;  %v7055_v42 = vld [vmem:[#allocation15 + $0x1c0] sm:$0xf] }
 0x56c   : > { %v3877_v3 = vsel %vm8807_vm5, %v8766_v33, %v3873_v0  ;;  %4745 = vmatpush.bf16.msrb.mxu3 %v6944_v45  ;;  %v7596_v41 = vld [vmem:[#allocation15 + $0x1cc] sm:$0xf0]  ;;  %4771 = vmatpush.bf16.msra.mxu1 %v6948_v11  ;;  %v6828_v12 = vmul.f32 -1.442695, %v8803_v23  ;;  %v6895_v23 = vld [vmem:[#allocation15 + $0x80] sm:$0xf] }
 0x56d   : > { %v3882_v24 = vsel %vm8799_vm4, %v3881_v2, %v3877_v3  ;;  %7821 = vrcp.f32 %v3868_v59  ;;  %v3910_v15 = vand.u32 2147483648, %v3868_v59  ;;  %v3908_v31 = vand.u32 2147483647, %v3868_v59  ;;  %v6929_v2 = vld [vmem:[#allocation15 + $0xd0] sm:$0xf0] }
 0x56e   : > { %v4228_v40 = vpop.f32.mrf.mxu3  ;;  %v3916_v18 = vmul.f32 %v7820_v9, %v3882_v24  ;;  %vm3904_vm9 = vweird.f32 %v3868_v59  ;;  %v7056_v4 = vor.u32 %v7596_v41, %v7055_v42  ;;  %v6932_v37 = vor.u32 %v7562_v52, %v6929_v2  ;;  %v7592_v24 = vld [vmem:[#allocation15 + $0x1ac] sm:$0xf0]  ;;  %v7009_v45 = vld [vmem:[#allocation15 + $0x170] sm:$0xf0]  ;;  %v6863_v47 = vld [vmem:[#allocation15 + $0x40] sm:$0xf] }
 0x56f   : > { %v4271_v19 = vadd.f32 %v4228_v40, %v4022_v38  ;;  %v3911_v55 = vor.u32 1.1754944e-38, %v3910_v15  ;;  %vm3909_vm11 = vcmp.eq.f32.partialorder %v3908_v31, 8.507059e+37  ;;  %v7039_v38 = vld [vmem:[#allocation15 + $0x1a0] sm:$0xf]  ;;  %v7558_v40 = vld [vmem:[#allocation15 + $0xa4] sm:$0xf]  ;;  %v7012_v46 = vor.u32 %v7582_v58, %v7009_v45 }
 0x570   : > { %v4243_v22 = vpop.f32.mrf.mxu0  ;;  %v8823_v21 = vadd.f32 %v3916_v18, %v3915_v14  ;;  %4759 = vmatpush.bf16.msra.mxu0 %v7056_v4  ;;  %4772 = vmatpush.bf16.msra.mxu1 %v6932_v37  ;;  %v7040_v16 = vor.u32 %v7592_v24, %v7039_v38  ;;  %v7044_v18 = vor.u32 %v7590_v28, %v7041_v29  ;;  %v7588_v14 = vld [vmem:[#allocation15 + $0x18c] sm:$0xf0]  ;;  %v7586_v15 = vld [vmem:[#allocation15 + $0x184] sm:$0xf]  ;;  %v6865_v42 = vld [vmem:[#allocation15 + $0x50] sm:$0xf0] }
 0x571   : > { %v4256_v30 = vpop.f32.mrf.mxu1  ;;  %v6826_v35 = vmul.f32 -1.442695, %v4271_v19  ;;  %v6916_v19 = vor.u32 %v7558_v40, %v6913_v27  ;;  %v7556_v22 = vld [vmem:[#allocation15 + $0x8c] sm:$0xf0]  ;;  %v7578_v4 = vld [vmem:[#allocation15 + $0x144] sm:$0xf] }
 0x572   : > { %7823 = vtanh.f32 %v8823_v21  ;;  %v6896_v30 = vor.u32 %v7556_v22, %v6895_v23  ;;  %v7548_v11 = vld [vmem:[#allocation15 + $0x4c] sm:$0xf0]  ;;  %v6993_v52 = vld [vmem:[#allocation15 + $0x150] sm:$0xf0]  ;;  %v7542_v24 = vld [vmem:[#allocation15 + $0x24] sm:$0xf] }
 0x573   : > { %v7822_v33 = vpop.eup %7821  ;;  %7825 = vpow2.f32 %v6827_v32  ;;  %v6849_v40 = vld [vmem:[#allocation15 + $0x30] sm:$0xf0]  ;;  %v7574_v28 = vld [vmem:[#allocation15 + $0x124] sm:$0xf]  ;;  %v7567_v58 = vld [vmem:[#allocation15 + $0xec] sm:$0xf] }
 0x574   : > { %v3900_v26 = vmul.f32 %v7822_v33, %v3868_v59  ;;  %vm3905_vm8 = vweird.f32 %v7822_v33  ;;  %7827 = vpow2.f32 %v6826_v35  ;;  %v7594_v59 = vld [vmem:[#allocation15 + $0x1c4] sm:$0xf]  ;;  %4760 = vmatpush.bf16.msra.mxu0 %v7040_v16  ;;  %4773 = vmatpush.bf16.msra.mxu1 %v6916_v19  ;;  %v6852_v19 = vor.u32 %v7542_v24, %v6849_v40  ;;  %v6977_v29 = vld [vmem:[#allocation15 + $0x130] sm:$0xf0]  ;;  %v6953_v45 = vld [vmem:[#allocation15 + $0xf8] sm:$0xf0] }
 0x575   : > { %vm3906_vm10 = vmor %vm3904_vm9, %vm3905_vm8  ;;  %v7060_v3 = vor.u32 %v7594_v59, %v7057_v39  ;;  %7829 = vpow2.f32 %v6828_v12  ;;  %v6996_v39 = vor.u32 %v7578_v4, %v6993_v52  ;;  %v7544_v12 = vld [vmem:[#allocation15 + $0x2c] sm:$0xf0]  ;;  %v6937_v52 = vld [vmem:[#allocation15 + $0xd8] sm:$0xf0] }
 0x576   : > { %v3901_v25 = vsub.f32 1.0, %v3900_v26  ;;  %v4230_v17 = vpop.f32.mrf.mxu3  ;;  %v6897_v26 = vld [vmem:[#allocation15 + $0x90] sm:$0xf0]  ;;  %v6921_v24 = vld [vmem:[#allocation15 + $0xb8] sm:$0xf0] }
 0x578   : > { %v3902_v7 = vmul.f32 %v7822_v33, %v3901_v25  ;;  %v7824_v44 = vpop.eup %7823  ;;  %v7024_v25 = vor.u32 %v7588_v14, %v7023_v5  ;;  %v6980_v5 = vor.u32 %v7574_v28, %v6977_v29  ;;  %v7540_v14 = vld [vmem:[#allocation15 + $0xc] sm:$0xf0]  ;;  %v7591_v28 = vld [vmem:[#allocation15 + $0x1ac] sm:$0xf]  ;;  %v7049_v29 = vld [vmem:[#allocation15 + $0x1b8] sm:$0xf0] }
 0x579   : > { %v7826_v63 = vpop.eup %7825 }
 0x57a   : > { %v3903_v6 = vadd.f32 %v7822_v33, %v3902_v7  ;;  %v7828_v36 = vpop.eup %7827  ;;  %v8828_v8 = vadd.f32 1.0, %v7826_v63  ;;  %v7025_v7 = vld [vmem:[#allocation15 + $0x190] sm:$0xf0]  ;;  %4761 = vmatpush.bf16.msra.mxu0 %v7024_v25  ;;  %v7572_v25 = vld [vmem:[#allocation15 + $0x10c] sm:$0xf0] }
 0x57b   : > { %v8831_v9 = vadd.f32 1.0, %v7828_v36  ;;  %v7028_v31 = vor.u32 %v7586_v15, %v7025_v7  ;;  %v7830_v32 = vpop.eup %7829  ;;  %v6847_v36 = vld [vmem:[#allocation15 + $0x20] sm:$0xf]  ;;  %v6833_v15 = vld [vmem:[#allocation15 + $0x10] sm:$0xf0] }
 0x57c   : > { %v3907_v43 = vsel %vm3906_vm10, %v7822_v33, %v3903_v6  ;;  %7831 = vrcp.f32 %v8828_v8  ;;  %v7554_v33 = vld [vmem:[#allocation15 + $0x84] sm:$0xf]  ;;  %v6879_v6 = vld [vmem:[#allocation15 + $0x60] sm:$0xf]  ;;  %v8842_v41 = vadd.f32 1.0, %v7830_v32  ;;  %v4314_v59 = vand.u32 2147483648, %v8828_v8 }
 0x57d   : > { %v3912_v13 = vsel %vm3909_vm11, %v3911_v55, %v3907_v43  ;;  %7833 = vrcp.f32 %v8831_v9  ;;  %v6900_v17 = vor.u32 %v7554_v33, %v6897_v26  ;;  %v7552_v55 = vld [vmem:[#allocation15 + $0x6c] sm:$0xf0]  ;;  %v7007_v43 = vld [vmem:[#allocation15 + $0x160] sm:$0xf]  ;;  %v6848_v38 = vor.u32 %v7544_v12, %v6847_v36  ;;  %v6919_v36 = vld [vmem:[#allocation15 + $0xa8] sm:$0xf] }
 0x57e   : > { %v3919_v62 = vmul.f32 %v7824_v44, %v3912_v13  ;;  %v6880_v44 = vor.u32 %v7552_v55, %v6879_v6  ;;  %v7584_v13 = vld [vmem:[#allocation15 + $0x16c] sm:$0xf0]  ;;  %v4312_v27 = vand.u32 2147483647, %v8828_v8  ;;  %v4297_v22 = vand.u32 2147483647, %v8831_v9 }
 0x57f   : > { %4774 = vmatpush.bf16.msra.mxu1 %v6900_v17  ;;  %v7008_v20 = vor.u32 %v7584_v13, %v7007_v43  ;;  %v6959_v33 = vld [vmem:[#allocation15 + $0x100] sm:$0xf]  ;;  %v7538_v17 = vld [vmem:[#allocation15 + $0x4] sm:$0xf]  ;;  %v6961_v55 = vld [vmem:[#allocation15 + $0x110] sm:$0xf0]  ;;  %7835 = vrcp.f32 %v8842_v41  ;;  %vm4308_vm13 = vweird.f32 %v8828_v8  ;;  %vm4293_vm1 = vweird.f32 %v8831_v9 }
 0x580   : > { %v3921_v1 = vpack.c.bf16 %v3919_v62, %v3919_v62  ;;  %v7550_v62 = vld [vmem:[#allocation15 + $0x64] sm:$0xf]  ;;  %v6960_v7 = vor.u32 %v7572_v25, %v6959_v33  ;;  %v6951_v43 = vld [vmem:[#allocation15 + $0xe8] sm:$0xf]  ;;  %v7569_v13 = vld [vmem:[#allocation15 + $0xf4] sm:$0xf0]  ;;  %vm4323_vm5 = vweird.f32 %v8842_v41 }
 0x581   : > { %4762 = vmatpush.bf16.msra.mxu0 %v7008_v20  ;;  %v7570_v6 = vld [vmem:[#allocation15 + $0x104] sm:$0xf]  ;;  %v6952_v20 = vor.u32 %v7569_v13, %v6951_v43  ;;  %v7561_v12 = vld [vmem:[#allocation15 + $0xb4] sm:$0xf0]  ;;  %v7031_v25 = vld [vmem:[#allocation15 + $0x188] sm:$0xf] }
 0x582   : > { %3922 = vst [vmem:[#allocation4 + $0x4] sm:$0xf] %v3921_v1  ;;  %3995 = vmatmul.bf16.vlgmr.msra.gmra.mxu2 %v3921_v1  ;;  %v6881_v1 = vld [vmem:[#allocation15 + $0x70] sm:$0xf0]  ;;  %v8837_v48 = vpop.eup %7831  ;;  %v7033_v13 = vld [vmem:[#allocation15 + $0x198] sm:$0xf0] }
 0x583   : > { %4784 = vmatpush.bf16.msra.mxu2 %v7076_v60  ;;  %v6884_v50 = vor.u32 %v7550_v62, %v6881_v1  ;;  %v8839_v61 = vpop.eup %7833  ;;  %v7580_v60 = vld [vmem:[#allocation15 + $0x14c] sm:$0xf0]  ;;  %v8846_v2 = vmul.f32 %v8837_v48, %v8828_v8  ;;  %v7079_v62 = vld [vmem:[#allocation15 + $0x1e8] sm:$0xf]  ;;  %v7601_v1 = vld [vmem:[#allocation15 + $0x1f4] sm:$0xf0]  ;;  %vm4309_vm12 = vweird.f32 %v8837_v48 }
 0x584   : > { %v6992_v63 = vor.u32 %v7580_v60, %v6991_v49  ;;  %v8851_v37 = vmul.f32 %v8839_v61, %v8831_v9  ;;  %v6935_v49 = vld [vmem:[#allocation15 + $0xc8] sm:$0xf]  ;;  %vm4294_vm14 = vweird.f32 %v8839_v61  ;;  %vm8875_vm15 = vmor %vm4308_vm13, %vm4309_vm12  ;;  %vm8882_vm0 = vcmp.eq.f32.partialorder %v4312_v27, 8.507059e+37  ;;  %v6969_v27 = vld [vmem:[#allocation15 + $0x118] sm:$0xf0] }
 0x585   : > { %4775 = vmatpush.bf16.msra.mxu1 %v6884_v50  ;;  %v7080_v50 = vor.u32 %v7601_v1, %v7079_v62  ;;  %vm8892_vm2 = vmor %vm4293_vm1, %vm4294_vm14  ;;  %vm8898_vm3 = vcmp.eq.f32.partialorder %v4297_v22, 8.507059e+37  ;;  %v7585_v22 = vld [vmem:[#allocation15 + $0x174] sm:$0xf0] }
 0x586   : > { %4763 = vmatpush.bf16.msra.mxu0 %v6992_v63  ;;  %v4290_v23 = vsub.f32 1.0, %v8851_v37  ;;  %v7563_v63 = vld [vmem:[#allocation15 + $0xcc] sm:$0xf]  ;;  %v7065_v37 = vld [vmem:[#allocation15 + $0x1d8] sm:$0xf0] }
 0x587   : > { %4785 = vmatpush.bf16.msra.mxu2 %v7060_v3 }
 0x588   : > { %v4291_v40 = vmul.f32 %v8839_v61, %v4290_v23 }
 0x58a   : > { %v4292_v1 = vadd.f32 %v8839_v61, %v4291_v40  ;;  %v6873_v40 = vld [vmem:[#allocation15 + $0x58] sm:$0xf0] }
 0x58b   : > { %4786 = vmatpush.bf16.msra.mxu2 %v7044_v18  ;;  %v4305_v18 = vsub.f32 1.0, %v8846_v2  ;;  %v7595_v2 = vld [vmem:[#allocation15 + $0x1cc] sm:$0xf] }
 0x58f   : > { %4787 = vmatpush.bf16.msra.mxu2 %v7028_v31  ;;  %v6836_v31 = vor.u32 %v7538_v17, %v6833_v15  ;;  %v7589_v17 = vld [vmem:[#allocation15 + $0x194] sm:$0xf0] }
 0x592   : > { %4266 = vmatmul.bf16.vlgmr.msrb.gmra.mxu2 %v8742_v54  ;;  %v7564_v54 = vld [vmem:[#allocation15 + $0xcc] sm:$0xf0] }
 0x593   : > { %v6928_v0 = vor.u32 %v7564_v54, %v6927_v57  ;;  %4788 = vmatpush.bf16.msra.mxu2 %v7012_v46  ;;  %v6864_v57 = vor.u32 %v7548_v11, %v6863_v47  ;;  %v7546_v54 = vld [vmem:[#allocation15 + $0x44] sm:$0xf]  ;;  %v7599_v46 = vld [vmem:[#allocation15 + $0x1ec] sm:$0xf]  ;;  %v6956_v47 = vor.u32 %v7567_v58, %v6953_v45  ;;  %v7081_v11 = vld [vmem:[#allocation15 + $0x1f8] sm:$0xf0] }
 0x595   : > { %4746 = vmatpush.bf16.msrb.mxu3 %v6928_v0  ;;  %v6868_v0 = vor.u32 %v7546_v54, %v6865_v42  ;;  %v7063_v54 = vld [vmem:[#allocation15 + $0x1c8] sm:$0xf]  ;;  %v7597_v42 = vld [vmem:[#allocation15 + $0x1d4] sm:$0xf0] }
 0x596   : > { %v7064_v4 = vor.u32 %v7597_v42, %v7063_v54  ;;  %v7551_v54 = vld [vmem:[#allocation15 + $0x6c] sm:$0xf]  ;;  %v6889_v42 = vld [vmem:[#allocation15 + $0x78] sm:$0xf0] }
 0x597   : > { %4776 = vmatpush.bf16.msra.mxu1 %v6868_v0  ;;  %4789 = vmatpush.bf16.msra.mxu2 %v6996_v39  ;;  %v4306_v0 = vmul.f32 %v8837_v48, %v4305_v18  ;;  %v6940_v39 = vor.u32 %v7563_v63, %v6937_v52  ;;  %v6903_v18 = vld [vmem:[#allocation15 + $0x88] sm:$0xf]  ;;  %v7017_v52 = vld [vmem:[#allocation15 + $0x178] sm:$0xf0] }
 0x599   : > { %4747 = vmatpush.bf16.msrb.mxu3 %v6912_v34  ;;  %v7576_v34 = vld [vmem:[#allocation15 + $0x12c] sm:$0xf0] }
 0x59a   : > { %v6976_v16 = vor.u32 %v7576_v34, %v6975_v10  ;;  %v7047_v10 = vld [vmem:[#allocation15 + $0x1a8] sm:$0xf]  ;;  %v7559_v34 = vld [vmem:[#allocation15 + $0xac] sm:$0xf] }
 0x59b   : > { %4777 = vmatpush.bf16.msra.mxu1 %v6852_v19  ;;  %4790 = vmatpush.bf16.msra.mxu2 %v6980_v5  ;;  %v7864_v5 = vld [vmem:[#allocation5 + $0x18] sm:$0xff]  ;;  %v6924_v33 = vor.u32 %v7559_v34, %v6921_v24  ;;  %v7547_v24 = vld [vmem:[#allocation15 + $0x4c] sm:$0xf] }
 0x59c   : > { %4764 = vmatpush.bf16.msra.mxu0 %v6976_v16  ;;  %v6920_v16 = vor.u32 %v7561_v12, %v6919_v36  ;;  %v7581_v36 = vld [vmem:[#allocation15 + $0x154] sm:$0xf0] }
 0x59d   : > { %4748 = vmatpush.bf16.msrb.mxu3 %v6896_v30  ;;  %v6831_v30 = vld [vmem:[#allocation15] sm:$0xf] }
 0x59e   : > { %v6832_v26 = vor.u32 %v7540_v14, %v6831_v30  ;;  %v4025_v30 = vadd.f32 %v7864_v5, %v8400_v56  ;;  %v4307_v14 = vadd.f32 %v8837_v48, %v4306_v0  ;;  %v4315_v56 = vor.u32 1.1754944e-38, %v4314_v59  ;;  %v6855_v5 = vld [vmem:[#allocation15 + $0x28] sm:$0xf] }
 0x59f   : > { %4778 = vmatpush.bf16.msra.mxu1 %v6836_v31  ;;  %v7052_v31 = vor.u32 %v7591_v28, %v7049_v29  ;;  %v6892_v0 = vor.u32 %v7551_v54, %v6889_v42 }
 0x5a0   : > { %4765 = vmatpush.bf16.msra.mxu0 %v6960_v7  ;;  %v4299_v7 = vand.u32 2147483648, %v8831_v9 }
 0x5a1   : > { %4749 = vmatpush.bf16.msrb.mxu3 %v6880_v44  ;;  %v6964_v44 = vor.u32 %v7570_v6, %v6961_v55  ;;  %v7555_v6 = vld [vmem:[#allocation15 + $0x8c] sm:$0xf]  ;;  %v6905_v55 = vld [vmem:[#allocation15 + $0x98] sm:$0xf0] }
 0x5a2   : > { %v6908_v58 = vor.u32 %v7555_v6, %v6905_v55  ;;  %v7575_v6 = vld [vmem:[#allocation15 + $0x12c] sm:$0xf]  ;;  %v6985_v55 = vld [vmem:[#allocation15 + $0x138] sm:$0xf0] }
 0x5a3   : > { %4791 = vmatpush.bf16.msra.mxu2 %v6964_v44  ;;  %4823 = vmatpush.bf16.msrb.mxu1 %v6956_v47  ;;  %v7587_v44 = vld [vmem:[#allocation15 + $0x18c] sm:$0xf] }
 0x5a4   : > { %4810 = vmatpush.bf16.msrb.mxu0 %v7080_v50  ;;  %v4311_v50 = vsel %vm8875_vm15, %v8837_v48, %v4307_v14  ;;  %v7036_v47 = vor.u32 %v7587_v44, %v7033_v13  ;;  %v6887_v48 = vld [vmem:[#allocation15 + $0x68] sm:$0xf]  ;;  %v7545_v14 = vld [vmem:[#allocation15 + $0x34] sm:$0xf0] }
 0x5a5   : > { %4750 = vmatpush.bf16.msrb.mxu3 %v6864_v57  ;;  %v7084_v57 = vor.u32 %v7599_v46, %v7081_v11  ;;  %v4300_v46 = vor.u32 1.1754944e-38, %v4299_v7  ;;  %v7553_v11 = vld [vmem:[#allocation15 + $0x74] sm:$0xf0]  ;;  %v6839_v13 = vld [vmem:[#allocation15 + $0x8] sm:$0xf] }
 0x5a6   : > { %v6888_v9 = vor.u32 %v7553_v11, %v6887_v48 }
 0x5a7   : > { %4836 = vmatpush.bf16.msrb.mxu2 %v7084_v57  ;;  %4824 = vmatpush.bf16.msrb.mxu1 %v6940_v39  ;;  %v4296_v57 = vsel %vm8892_vm2, %v8839_v61, %v4292_v1  ;;  %v6999_v61 = vld [vmem:[#allocation15 + $0x148] sm:$0xf]  ;;  %v7541_v1 = vld [vmem:[#allocation15 + $0x14] sm:$0xf0] }
 0x5a8   : > { %4811 = vmatpush.bf16.msrb.mxu0 %v7064_v4  ;;  %v7583_v4 = vld [vmem:[#allocation15 + $0x16c] sm:$0xf]  ;;  %v7000_v29 = vor.u32 %v7581_v36, %v6999_v61 }
 0x5a9   : > { %4751 = vmatpush.bf16.msrb.mxu3 %v6848_v38  ;;  %v7593_v38 = vld [vmem:[#allocation15 + $0x1b4] sm:$0xf0]  ;;  %v7020_v39 = vor.u32 %v7583_v4, %v7017_v52  ;;  %v4408_v4 = vld [vmem:[%s8972_s8] sm:$0xf]  ;;  %v7607_v61 = vld [vmem:[#allocation16 + $0x28] sm:$0xff] }
 0x5aa   : > { %v7048_v19 = vor.u32 %v7593_v38, %v7047_v10  ;;  %v4301_v38 = vsel %vm8898_vm3, %v4300_v46, %v4296_v57 }
 0x5ab   : > { %4825 = vmatpush.bf16.msrb.mxu1 %v6924_v33  ;;  %v6983_v33 = vld [vmem:[#allocation15 + $0x128] sm:$0xf] }
 0x5ac   : > { %4812 = vmatpush.bf16.msrb.mxu0 %v7048_v19 }
 0x5ad   : > { %4752 = vmatpush.bf16.msrb.mxu3 %v6832_v26  ;;  %v7557_v26 = vld [vmem:[#allocation15 + $0x94] sm:$0xf0] }
 0x5ae   : > { %v6904_v59 = vor.u32 %v7557_v26, %v6903_v18  ;;  %v7001_v18 = vld [vmem:[#allocation15 + $0x158] sm:$0xf0]  ;;  %v7577_v26 = vld [vmem:[#allocation15 + $0x134] sm:$0xf0] }
 0x5af   : > { %4826 = vmatpush.bf16.msrb.mxu1 %v6908_v58  ;;  %v6984_v44 = vor.u32 %v7577_v26, %v6983_v33  ;;  %v7539_v58 = vld [vmem:[#allocation15 + $0xc] sm:$0xf]  ;;  %v7604_v33 = vld [vmem:[#allocation16 + $0x10] sm:$0xff] }
 0x5b1   : > { %4797 = vmatpush.bf16.msra.mxu3 %v6952_v20  ;;  %v7032_v20 = vor.u32 %v7589_v17, %v7031_v25 }
 0x5b3   : > { %4813 = vmatpush.bf16.msrb.mxu0 %v7032_v20  ;;  %4827 = vmatpush.bf16.msrb.mxu1 %v6892_v0  ;;  %v7609_v0 = vld [vmem:[#allocation16 + $0x38] sm:$0xff] }
 0x5d5   : > { %v8835_v35 = vpop.permute.xlu0 %7725 }
 0x5d6   : > { %v7727_v51 = vunpack.i.l.bf16 %v8835_v35 }
 0x605   : > { %v3996_v3 = vpop.f32.mrf.mxu2 }
 0x606   : > { %v4009_v53 = vmul.f32 %v7727_v51, %v3996_v3  ;;  %v7565_v51 = vld [vmem:[#allocation15 + $0xd4] sm:$0xf0]  ;;  %v7068_v3 = vor.u32 %v7595_v2, %v7065_v37  ;;  %v6871_v2 = vld [vmem:[#allocation15 + $0x48] sm:$0xf] }
 0x607   : > { %v6936_v60 = vor.u32 %v7565_v51, %v6935_v49  ;;  %v7015_v49 = vld [vmem:[#allocation15 + $0x168] sm:$0xf] }
 0x608   : > { %6697 = vst [vmem:[%s8342_s30 + $0x10] sm:$0xff] %v4009_v53  ;;  %v8860_v53 = vpop.eup %7835  ;;  %4837 = vmatpush.bf16.msrb.mxu2 %v7068_v3  ;;  %v4275_v51 = vld [vmem:[#allocation3] sm:$0xff]  ;;  %v7016_v63 = vor.u32 %v7585_v22, %v7015_v49  ;;  %v7549_v3 = vld [vmem:[#allocation15 + $0x54] sm:$0xf0] }
 0x609   : > { %4798 = vmatpush.bf16.msra.mxu3 %v6936_v60  ;;  %v4319_v23 = vmul.f32 %v8860_v53, %v8842_v41  ;;  %v4316_v60 = vsel %vm8882_vm0, %v4315_v56, %v4311_v50  ;;  %v6872_v28 = vor.u32 %v7549_v3, %v6871_v2  ;;  %vm4324_vm4 = vweird.f32 %v8860_v53  ;;  %v7608_v2 = vld [vmem:[#allocation16 + $0x30] sm:$0xff] }
 0x60a   : > { %v4334_v34 = vmul.f32 %v4316_v60, %v4275_v51  ;;  %4814 = vmatpush.bf16.msrb.mxu0 %v7016_v63  ;;  %v4329_v56 = vand.u32 2147483648, %v8842_v41  ;;  %vm8917_vm6 = vmor %vm4323_vm5, %vm4324_vm4  ;;  %v6988_v50 = vor.u32 %v7575_v6, %v6985_v55  ;;  %v4410_v3 = vperm.slane %v4408_v4, 0 }
 0x60b   : > { %v4320_v45 = vsub.f32 1.0, %v4319_v23  ;;  %v7543_v23 = vld [vmem:[#allocation15 + $0x2c] sm:$0xf]  ;;  %v4413_v6 = vperm.slane %v4408_v4, 3 }
 0x60c   : > { %4838 = vmatpush.bf16.msrb.mxu2 %v7052_v31  ;;  %v4327_v31 = vand.u32 2147483647, %v8842_v41  ;;  %v7571_v41 = vld [vmem:[#allocation15 + $0x10c] sm:$0xf]  ;;  %v4330_v46 = vor.u32 1.1754944e-38, %v4329_v56  ;;  %v7602_v56 = vld [vmem:[#allocation16] sm:$0xff] }
 0x60d   : > { %v3998_v32 = vpop.f32.mrf.mxu2  ;;  %4799 = vmatpush.bf16.msra.mxu3 %v6920_v16  ;;  %v4321_v10 = vmul.f32 %v8860_v53, %v4320_v45  ;;  %v7579_v16 = vld [vmem:[#allocation15 + $0x14c] sm:$0xf]  ;;  %v6841_v45 = vld [vmem:[#allocation15 + $0x18] sm:$0xf0]  ;;  %v6972_v57 = vor.u32 %v7571_v41, %v6969_v27 }
 0x60e   : > { %v7004_v17 = vor.u32 %v7579_v16, %v7001_v18  ;;  %4815 = vmatpush.bf16.msrb.mxu0 %v7000_v29  ;;  %v6967_v32 = vld [vmem:[#allocation15 + $0x108] sm:$0xf]  ;;  %vm4328_vm7 = vcmp.eq.f32.partialorder %v4327_v31, 8.507059e+37  ;;  %v6844_v11 = vor.u32 %v7539_v58, %v6841_v45  ;;  %v7605_v18 = vld [vmem:[#allocation16 + $0x18] sm:$0xff] }
 0x60f   : > { %v4322_v7 = vadd.f32 %v8860_v53, %v4321_v10 }
 0x610   : > { %4839 = vmatpush.bf16.msrb.mxu2 %v7036_v47  ;;  %v6840_v47 = vor.u32 %v7541_v1, %v6839_v13 }
 0x611   : > { %4800 = vmatpush.bf16.msra.mxu3 %v6904_v59  ;;  %v7573_v59 = vld [vmem:[#allocation15 + $0x114] sm:$0xf0]  ;;  %v4326_v8 = vsel %vm8917_vm6, %v8860_v53, %v4322_v7  ;;  %v4412_v7 = vperm.slane %v4408_v4, 2 }
 0x612   : > { %4816 = vmatpush.bf16.msrb.mxu0 %v6984_v44  ;;  %v6968_v48 = vor.u32 %v7573_v59, %v6967_v32  ;;  %v4331_v51 = vsel %vm4328_vm7, %v4330_v46, %v4326_v8 }
 0x614   : > { %4840 = vmatpush.bf16.msrb.mxu2 %v7020_v39  ;;  %v4411_v39 = vperm.slane %v4408_v4, 1 }
 0x615   : > { %v4267_v15 = vpop.f32.mrf.mxu2  ;;  %4801 = vmatpush.bf16.msra.mxu3 %v6888_v9 }
 0x616   : > { %v4274_v43 = vadd.f32 %v4267_v15, %v4025_v30  ;;  %v6876_v30 = vor.u32 %v7547_v24, %v6873_v40  ;;  %v6857_v15 = vld [vmem:[#allocation15 + $0x38] sm:$0xf0]  ;;  %4817 = vmatpush.bf16.msrb.mxu0 %v6968_v48  ;;  %v7606_v40 = vld [vmem:[#allocation16 + $0x20] sm:$0xff] }
 0x617   : > { %v6860_v62 = vor.u32 %v7543_v23, %v6857_v15 }
 0x618   : > { %7837 = vtanh.f32 %v4274_v43  ;;  %v6856_v43 = vor.u32 %v7545_v14, %v6855_v5  ;;  %4828 = vmatpush.bf16.msrb.mxu1 %v6876_v30  ;;  %4841 = vmatpush.bf16.msrb.mxu2 %v7004_v17  ;;  %v7603_v17 = vld [vmem:[#allocation16 + $0x8] sm:$0xff] }
 0x619   : > { %4802 = vmatpush.bf16.msra.mxu3 %v6872_v28 }
 0x61c   : > { %4829 = vmatpush.bf16.msrb.mxu1 %v6860_v62  ;;  %4842 = vmatpush.bf16.msrb.mxu2 %v6988_v50 }
 0x61d   : > { %v4269_v37 = vpop.f32.mrf.mxu2  ;;  %4803 = vmatpush.bf16.msra.mxu3 %v6856_v43 }
 0x61e   : > { %v7838_v12 = vpop.eup %7837 }
 0x61f   : > { %v4335_v19 = vmul.f32 %v7838_v12, %v4301_v38 }
 0x620   : > { %4830 = vmatpush.bf16.msrb.mxu1 %v6844_v11  ;;  %4843 = vmatpush.bf16.msrb.mxu2 %v6972_v57 }
 0x621   : > { %v4336_v25 = vadd.f32 %v4335_v19, %v4334_v34  ;;  %4804 = vmatpush.bf16.msra.mxu3 %v6840_v47 }
 0x623   : > { %7839 = vtanh.f32 %v4336_v25  ;;  %4339 = vst [vmem:[#allocation3] sm:$0xff] %v4336_v25 }
 0x629   : > { %v7840_v49 = vpop.eup %7839 }
 0x62a   : > { %v4338_v60 = vmul.f32 %v7840_v49, %v4331_v51 }
 0x62c   : > { %v4340_v9 = vpack.c.bf16 %v4338_v60, %v4338_v60 }
 0x62e   : > { %4341 = vst [vmem:[#allocation2] sm:$0xf] %v4340_v9 }
 0x62f   : > { %4342 = vst [vmem:[#allocation4] sm:$0xf] %v4340_v9 }
 0x636   : > { %v4343_v53 = vld [vmem:[#allocation4] sm:$0xff] }
 0x637   : > { %v4419_v22 = vunpack.c.l.b16 %v4343_v53  ;;  %v4420_v54 = vunpack.c.h.b16 %v4343_v53 }
 0x639   : > { %v4421_v42 = vpack.c.b16 %v4419_v22, %v4419_v22  ;;  %v4422_v63 = vpack.c.b16 %v4420_v54, %v4420_v54 }
 0x63b   : > { %4753 = vmatmul.bf16.vlgmr.msrb.gmra.mxu3 %v4421_v42  ;;  %4766 = vmatmul.bf16.vlgmr.msra.gmra.mxu0 %v4422_v63 }
 0x63c   : > { %4779 = vmatmul.bf16.vlgmr.msra.gmra.mxu1 %v4421_v42  ;;  %4792 = vmatmul.bf16.vlgmr.msra.gmra.mxu2 %v4422_v63 }
 0x63d   : > { %4980 = vmatpush.bf16.msrb.mxu3 %v7609_v0 }
 0x641   : > { %4981 = vmatpush.bf16.msrb.mxu3 %v7608_v2 }
 0x645   : > { %4982 = vmatpush.bf16.msrb.mxu3 %v7607_v61 }
 0x649   : > { %4983 = vmatpush.bf16.msrb.mxu3 %v7606_v40 }
 0x64b   : > { %4805 = vmatmul.bf16.vlgmr.msra.gmra.mxu3 %v4421_v42  ;;  %4818 = vmatmul.bf16.vlgmr.msrb.gmra.mxu0 %v4422_v63 }
 0x64c   : > { %4831 = vmatmul.bf16.vlgmr.msrb.gmra.mxu1 %v4421_v42  ;;  %4844 = vmatmul.bf16.vlgmr.msrb.gmra.mxu2 %v4422_v63 }
 0x64d   : > { %4984 = vmatpush.bf16.msrb.mxu3 %v7605_v18 }
 0x651   : > { %4985 = vmatpush.bf16.msrb.mxu3 %v7604_v33 }
 0x655   : > { %4986 = vmatpush.bf16.msrb.mxu3 %v7603_v17 }
 0x659   : > { %4987 = vmatpush.bf16.msrb.mxu3 %v7602_v56 }
 0x6b8   : > { %v4767_v52 = vpop.f32.mrf.mxu0 }
 0x6b9   : > { %v4780_v37 = vpop.f32.mrf.mxu1 }
 0x6ba   : > { %v4781_v36 = vadd.f32 %v4780_v37, %v4411_v39 }
 0x6be   : > { %v4754_v12 = vpop.f32.mrf.mxu3 }
 0x6bf   : > { %v4755_v10 = vadd.f32 %v4754_v12, %v4410_v3  ;;  %v4793_v38 = vpop.f32.mrf.mxu2 }
 0x6c0   : > { %v4794_v34 = vadd.f32 %v4793_v38, %v4781_v36  ;;  %v4769_v24 = vpop.f32.mrf.mxu0 }
 0x6c1   : > { %v4768_v16 = vadd.f32 %v4767_v52, %v4755_v10  ;;  %v4782_v19 = vpop.f32.mrf.mxu1 }
 0x6c2   : > { %v7086_v28 = vmul.f32 -1.442695, %v4794_v34 }
 0x6c3   : > { %v7085_v29 = vmul.f32 -1.442695, %v4768_v16 }
 0x6c4   : > { %7841 = vpow2.f32 %v7086_v28 }
 0x6c5   : > { %7843 = vpow2.f32 %v7085_v29 }
 0x6c6   : > { %v4756_v5 = vpop.f32.mrf.mxu3 }
 0x6c7   : > { %v4795_v30 = vpop.f32.mrf.mxu2  ;;  %v7728_v5 = vunpack.i.h.bf16 %v8835_v35 }
 0x6c8   : > { %v4819_v14 = vpop.f32.mrf.mxu0 }
 0x6c9   : > { %v4832_v26 = vpop.f32.mrf.mxu1 }
 0x6ca   : > { %v7842_v25 = vpop.eup %7841  ;;  %v4833_v32 = vadd.f32 %v4832_v26, %v4413_v6 }
 0x6cb   : > { %v7844_v23 = vpop.eup %7843  ;;  %v4860_v15 = vadd.f32 1.0, %v7842_v25 }
 0x6cc   : > { %v4859_v31 = vadd.f32 1.0, %v7844_v23 }
 0x6cd   : > { %7845 = vrcp.f32 %v4860_v15  ;;  %v4888_v47 = vand.u32 2147483648, %v4860_v15  ;;  %v4886_v48 = vand.u32 2147483647, %v4860_v15  ;;  %vm4882_vm10 = vweird.f32 %v4860_v15 }
 0x6ce   : > { %7847 = vrcp.f32 %v4859_v31  ;;  %v4806_v55 = vpop.f32.mrf.mxu3  ;;  %v4873_v51 = vand.u32 2147483648, %v4859_v31  ;;  %v4871_v60 = vand.u32 2147483647, %v4859_v31  ;;  %vm4867_vm12 = vweird.f32 %v4859_v31 }
 0x6cf   : > { %v4807_v43 = vadd.f32 %v4806_v55, %v4412_v7  ;;  %v4845_v44 = vpop.f32.mrf.mxu2  ;;  %v4889_v22 = vor.u32 1.1754944e-38, %v4888_v47  ;;  %vm4887_vm14 = vcmp.eq.f32.partialorder %v4886_v48, 8.507059e+37 }
 0x6d0   : > { %v4821_v13 = vpop.f32.mrf.mxu0  ;;  %v4846_v45 = vadd.f32 %v4845_v44, %v4833_v32  ;;  %v4874_v63 = vor.u32 1.1754944e-38, %v4873_v51  ;;  %vm4872_vm15 = vcmp.eq.f32.partialorder %v4871_v60, 8.507059e+37 }
 0x6d1   : > { %v4820_v62 = vadd.f32 %v4819_v14, %v4807_v43  ;;  %v4834_v1 = vpop.f32.mrf.mxu1 }
 0x6d3   : > { %v7846_v59 = vpop.eup %7845  ;;  %v7087_v20 = vmul.f32 -1.442695, %v4820_v62 }
 0x6d4   : > { %v7848_v50 = vpop.eup %7847  ;;  %v4878_v58 = vmul.f32 %v7846_v59, %v4860_v15  ;;  %vm4883_vm8 = vweird.f32 %v7846_v59 }
 0x6d5   : > { %v4863_v8 = vmul.f32 %v7848_v50, %v4859_v31  ;;  %7849 = vpow2.f32 %v7087_v20  ;;  %vm4868_vm9 = vweird.f32 %v7848_v50  ;;  %vm4884_vm11 = vmor %vm4882_vm10, %vm4883_vm8 }
 0x6d6   : > { %v4879_v41 = vsub.f32 1.0, %v4878_v58  ;;  %v4808_v27 = vpop.f32.mrf.mxu3  ;;  %7851 = vtanh.f32 %v4846_v45  ;;  %vm4869_vm13 = vmor %vm4867_vm12, %vm4868_vm9 }
 0x6d7   : > { %v4864_v46 = vsub.f32 1.0, %v4863_v8  ;;  %v4847_v11 = vpop.f32.mrf.mxu2 }
 0x6d8   : > { %v4880_v49 = vmul.f32 %v7846_v59, %v4879_v41 }
 0x6d9   : > { %v4865_v57 = vmul.f32 %v7848_v50, %v4864_v46 }
 0x6da   : > { %v4881_v9 = vadd.f32 %v7846_v59, %v4880_v49 }
 0x6db   : > { %v7850_v53 = vpop.eup %7849  ;;  %v4866_v54 = vadd.f32 %v7848_v50, %v4865_v57 }
 0x6dc   : > { %v4861_v42 = vadd.f32 1.0, %v7850_v53  ;;  %v4885_v0 = vsel %vm4884_vm11, %v7846_v59, %v4881_v9  ;;  %v7852_v2 = vpop.eup %7851 }
 0x6dd   : > { %v4870_v4 = vsel %vm4869_vm13, %v7848_v50, %v4866_v54  ;;  %v4890_v52 = vsel %vm4887_vm14, %v4889_v22, %v4885_v0 }
 0x6de   : > { %7853 = vrcp.f32 %v4861_v42  ;;  %v4875_v37 = vsel %vm4872_vm15, %v4874_v63, %v4870_v4  ;;  %v4908_v39 = vmul.f32 %v4890_v52, %v8823_v21  ;;  %v4903_v38 = vand.u32 2147483648, %v4861_v42 }
 0x6df   : > { %v4909_v3 = vmul.f32 %v7852_v2, %v4875_v37  ;;  %v4901_v24 = vand.u32 2147483647, %v4861_v42  ;;  %vm4897_vm1 = vweird.f32 %v4861_v42 }
 0x6e0   : > { %v4904_v16 = vor.u32 1.1754944e-38, %v4903_v38 }
 0x6e1   : > { %v4910_v61 = vadd.f32 %v4909_v3, %v4908_v39  ;;  %vm4902_vm3 = vcmp.eq.f32.partialorder %v4901_v24, 8.507059e+37 }
 0x6e3   : > { %4913 = vst [vmem:[#allocation3 + $0x8] sm:$0xff] %v4910_v61  ;;  %7855 = vtanh.f32 %v4910_v61 }
 0x6e4   : > { %v7854_v36 = vpop.eup %7853 }
 0x6e5   : > { %v4893_v12 = vmul.f32 %v7854_v36, %v4861_v42  ;;  %vm4898_vm0 = vweird.f32 %v7854_v36 }
 0x6e6   : > { %vm4899_vm2 = vmor %vm4897_vm1, %vm4898_vm0 }
 0x6e7   : > { %v4894_v10 = vsub.f32 1.0, %v4893_v12 }
 0x6e9   : > { %v4895_v34 = vmul.f32 %v7854_v36, %v4894_v10  ;;  %v7856_v21 = vpop.eup %7855 }
 0x6eb   : > { %v4896_v40 = vadd.f32 %v7854_v36, %v4895_v34 }
 0x6ed   : > { %v4900_v19 = vsel %vm4899_vm2, %v7854_v36, %v4896_v40 }
 0x6ee   : > { %v4905_v28 = vsel %vm4902_vm3, %v4904_v16, %v4900_v19 }
 0x6ef   : > { %v4912_v29 = vmul.f32 %v7856_v21, %v4905_v28 }
 0x6f1   : > { %v4914_v18 = vpack.c.bf16 %v4912_v29, %v4912_v29 }
 0x6f3   : > { %4915 = vst [vmem:[#allocation4 + $0x4] sm:$0xf] %v4914_v18  ;;  %4988 = vmatmul.bf16.vlgmr.msrb.gmra.mxu3 %v4914_v18 }
 0x776   : > { %v4989_v30 = vpop.f32.mrf.mxu3 }
 0x777   : > { %v5002_v14 = vmul.f32 %v7728_v5, %v4989_v30 }
 0x779   : > { %7121 = vst [vmem:[%s8342_s30 + $0x18] sm:$0xff] %v5002_v14 }
 0x77a   : > { %8072 = shalt.err (!%p8069_p11)
}
 0x77b   : > { %s8138_s28 = smov 128   ;;  %s8139_s30 = smov 8  }
 0x77c   : > { %7633 = dma.vmem_to_hbm [thread:$0]  (%p8285_p0), %s5019_s29, 512, %s5021_s21, %s5006_s11, %s8138_s28, %s8138_s28, %s8139_s30  }
 0x77e   : > { %v4991_v35 = vpop.f32.mrf.mxu3 }
 0x77f PF: > { %s5035_s19 = sand.u32 1, %s8111_s13   ;;  %p9026_p12 = scmp.ge.s32.totalorder %s8123_s16, 2 }
 0x780   : > { %s5036_s17 = scalar_lea.sflag [#allocation9], %s5035_s19 }
 0x781   : > { %p7656_p6 = pnand %p9026_p12, %p8290_p7 }
 0x783   : > { %p7657_p2 = pneg %p7656_p6 }
 0x785   : > { %8106 = dma.done.wait (%p7657_p2), %s5036_s17, 512  }
 0x786   : > { %8108 = vsyncadd (%p7657_p2), %s5036_s17, 4294966784  ;;  %p26_p5 = scmp.ge.s32.totalorder %s8265_s22, 4   ;;  %s9027_s13 = smov %s8115_s14 }
 0x787   : > { %s9028_s14 = smov %s8119_s15  ;;  %s9029_s15 = smov %s8277_s18 }
 0x788   : > { %s9030_s16 = smov %s8265_s22  ;;  %28 = sbr.rel (!%p26_p5) target bundleno = 13 (0xd), region = 136 }
 0x78d   :  { %5042 = vsyncpa [#allocation8], 1 }
 0x78e   :  { %5044 = vsyncpa [#allocation8 + $0x1], 1 }
 0x78f   :  { %5045 = vsyncpa [#allocation11], 1 }
 0x790   :  { %5046 = vsyncpa [#allocation14], 1 }
 0x791   :  { %5047 = vsyncpa [#allocation17], 1 }
 0x792   :  { %5048 = vsyncpa [#allocation9], 1 }
 0x793   :  { %5050 = vsyncpa [#allocation9 + $0x1], 1 }

</bundles_post_ra>
